<compile_context>
chip_gen: v7x
topology: tpu7x:2x2x1
jax: 0.10.0
libtpu: 0.0.40
codegen_flags: <defaults>
</compile_context>

<pallas_src>
import jax
import jax.numpy as jnp
from jax import lax
from jax.experimental import pallas as pl
from jax.experimental.pallas import tpu as pltpu

# ---------------- config (small shapes consistent with PhaseGen defaults) ----------
N_VOCAB = 16
PAD_ID = 0
D_MODEL = 32
D_INNER = 64
N_LAYERS = 2
N_HEAD = 2
D_K = 16
D_V = 16
ANGLE_CYCLE = 10000.0
D_HID = D_MODEL // 2          # SinusoidEncoder(d_hid = d_model // 2); must be even

S = 8                         # sequence length
B = 32                        # sequences in the demo batch
G_SEQ = 16                    # sequences per grid step (block-diag attention)
R = G_SEQ * S                 # activation rows per grid step (128 = MXU rows)
N_STEPS = B // G_SEQ

LANES = 128
W_ROWS = 3 * D_MODEL + D_INNER   # 160: [Wqkv | Wo | W1 | W2] stacked on sublanes
F_ROWS = 8                       # f32 param slab rows per layer (6 used, 2 pad)


def _layer_norm(x, gamma, beta, eps=1e-6):
    # NOTE: eps=1e-6 matches the jadore-style EncoderLayer used by starry's
    # AttentionStack (torch nn.LayerNorm default would be 1e-5).
    mu = jnp.mean(x, axis=-1, keepdims=True)
    var = jnp.mean((x - mu) ** 2, axis=-1, keepdims=True)
    return (x - mu) * lax.rsqrt(var + eps) * gamma + beta


def phasegen_kernel(x0_ref, bias_ref, fpar_ref, w_ref, out_ref):
    # x0_ref   : (1, R, D_MODEL) f32   -- emb + pos_code + summary (precomputed)
    # bias_ref : (1, R, R)       f32   -- additive attention mask (0 keep / -1e9)
    # fpar_ref : (N_LAYERS, 8, 128) f32  rows: ln1_g, ln1_b, ln2_g, ln2_b, b1, b2
    # w_ref    : (N_LAYERS, 160, 128) bf16 rows: Wqkv(32) | Wo(32) | W1(32) | W2(64)
    x = x0_ref[0]                      # (R, D_MODEL) f32
    bias = bias_ref[0]                 # (R, R) f32
    inv_temp = 1.0 / (D_K ** 0.5)

    for l in range(N_LAYERS):          # static unroll, weights VMEM-resident
        # ---------------- multi-head self-attention (post-norm) ----------------
        residual = x
        wqkv = w_ref[l, 0:D_MODEL, :]                          # (32,128) bf16, lanes 96: zero pad
        qkv = jnp.dot(x.astype(jnp.bfloat16), wqkv,
                      preferred_element_type=jnp.float32)      # (R,128) f32; valid lanes 0:96

        ctx_heads = []
        for h in range(N_HEAD):        # static; column layout [q heads | k heads | v heads]
            qh = qkv[:, h * D_K:(h + 1) * D_K].astype(jnp.bfloat16)
            kh = qkv[:, (N_HEAD + h) * D_K:(N_HEAD + h + 1) * D_K].astype(jnp.bfloat16)
            vh = qkv[:, (2 * N_HEAD + h) * D_K:(2 * N_HEAD + h + 1) * D_K].astype(jnp.bfloat16)

            s = lax.dot_general(qh, kh, (((1,), (1,)), ((), ())),
                                preferred_element_type=jnp.float32)   # (R,R)
            s = s * inv_temp + bias                 # masked_fill(mask==0, -1e9)
            s = s - jnp.max(s, axis=-1, keepdims=True)
            p = jnp.exp(s)
            p = p * pl.reciprocal(jnp.sum(p, axis=-1, keepdims=True), approx=False)
            ctx_heads.append(jnp.dot(p.astype(jnp.bfloat16), vh,
                                     preferred_element_type=jnp.float32))   # (R,D_V)

        ctx = jnp.concatenate(ctx_heads, axis=-1)              # (R, H*D_V) = (R,32)
        wo = w_ref[l, D_MODEL:2 * D_MODEL, :]                  # (32,128) bf16
        o = jnp.dot(ctx.astype(jnp.bfloat16), wo,
                    preferred_element_type=jnp.float32)[:, 0:D_MODEL]

        g1 = fpar_ref[l, 0:1, 0:D_MODEL]
        be1 = fpar_ref[l, 1:2, 0:D_MODEL]
        x = _layer_norm(o + residual, g1, be1)

        # ---------------- position-wise feed-forward (post-norm) ----------------
        residual = x
        w1 = w_ref[l, 2 * D_MODEL:3 * D_MODEL, :]              # (32,128) bf16
        hid = jnp.dot(x.astype(jnp.bfloat16), w1,
                      preferred_element_type=jnp.float32)[:, 0:D_INNER]
        hid = jnp.maximum(hid + fpar_ref[l, 4:5, 0:D_INNER], 0.0)   # +b1, ReLU

        w2 = w_ref[l, 3 * D_MODEL:3 * D_MODEL + D_INNER, :]    # (64,128) bf16
        y = jnp.dot(hid.astype(jnp.bfloat16), w2,
                    preferred_element_type=jnp.float32)[:, 0:D_MODEL]
        y = y + fpar_ref[l, 5:6, 0:D_MODEL]                    # +b2

        g2 = fpar_ref[l, 2:3, 0:D_MODEL]
        be2 = fpar_ref[l, 3:4, 0:D_MODEL]
        x = _layer_norm(y + residual, g2, be2)

    out_ref[0] = x.astype(out_ref.dtype)


def _sinusoid_code(pos, rates):
    # Standard sinusoid table: sin on even channels, cos on odd channels.
    ang = pos[..., None].astype(jnp.float32) * rates           # (..., D_HID)
    idx = jnp.arange(D_HID)
    return jnp.where(idx % 2 == 0, jnp.sin(ang), jnp.cos(ang))


def phase_gen_forward(params, ids, f_pos, b_pos, summary, mask):
    """PhaseGen.forward, minus the trailing boolean gather x[next] (caller does it)."""
    Bn, Sn = ids.shape
    assert Sn == S and Bn % G_SEQ == 0
    n_steps = Bn // G_SEQ

    # ---- wrapper-level glue (same level as the torch forward's non-attention math) ----
    emb = params["embedding"][ids]                              # (B,S,D) embedding gather
    pos_code = jnp.concatenate([_sinusoid_code(f_pos, params["rates"]),
                                _sinusoid_code(b_pos, params["rates"])], axis=-1)
    x0 = (emb + pos_code + summary).astype(jnp.float32)         # (B,S,D)
    x0 = x0.reshape(n_steps, R, D_MODEL)

    # trg_mask = mask.unsqueeze(-2) & get_subsequent_mask(ids), expressed as an
    # additive block-diagonal bias over the G_SEQ sequences packed into a grid step.
    seq = jnp.arange(R) // S
    posn = jnp.arange(R) % S
    key_ok = mask.reshape(n_steps, R)
    keep = ((seq[:, None] == seq[None, :])
            & (posn[None, :] <= posn[:, None]))[None, :, :]     # (1,R,R) causal+same-seq
    keep = keep & (key_ok[:, None, :])                          # (n_steps,R,R) key pad
    attn_bias = jnp.where(keep, 0.0, -1e9).astype(jnp.float32)

    out = pl.pallas_call(
        phasegen_kernel,
        out_shape=jax.ShapeDtypeStruct((n_steps, R, D_MODEL), jnp.float32),
        grid=(n_steps,),
        in_specs=[
            pl.BlockSpec((1, R, D_MODEL), lambda i: (i, 0, 0)),            # x0 slab
            pl.BlockSpec((1, R, R), lambda i: (i, 0, 0)),                  # bias slab
            pl.BlockSpec((N_LAYERS, F_ROWS, LANES), lambda i: (0, 0, 0)),  # f32 params (resident)
            pl.BlockSpec((N_LAYERS, W_ROWS, LANES), lambda i: (0, 0, 0)),  # bf16 weights (resident)
        ],
        out_specs=pl.BlockSpec((1, R, D_MODEL), lambda i: (i, 0, 0)),
        compiler_params=pltpu.CompilerParams(
            dimension_semantics=("parallel",)),
    )(x0, attn_bias, params["fslab"], params["wslab"])
    return out.reshape(Bn, Sn, D_MODEL)


def _pad_lanes(a, width=LANES):
    return jnp.pad(a, [(0, 0)] * (a.ndim - 1) + [(0, width - a.shape[-1])])


def init_params(key):
    ks = jax.random.split(key, 8)

    def normal(k, shape, scale):
        return jax.random.normal(k, shape, dtype=jnp.float32) * scale

    emb = normal(ks[0], (N_VOCAB, D_MODEL), 1.0)
    emb = emb.at[PAD_ID].set(0.0)                               # padding_idx => zero row

    i = jnp.arange(D_HID)
    rates = 1.0 / (ANGLE_CYCLE ** (2.0 * (i // 2).astype(jnp.float32) / D_HID))

    sc = 1.0 / (D_MODEL ** 0.5)
    # Fused q/k/v weight: column blocks [q_h0..q_hH | k_h0.. | v_h0..], D_K lanes each.
    wqkv = normal(ks[1], (N_LAYERS, D_MODEL, 3 * N_HEAD * D_K), sc)       # (L,32,96)
    wo = normal(ks[2], (N_LAYERS, N_HEAD * D_V, D_MODEL), sc)             # (L,32,32)
    w1 = normal(ks[3], (N_LAYERS, D_MODEL, D_INNER), sc)                  # (L,32,64)
    w2 = normal(ks[4], (N_LAYERS, D_INNER, D_MODEL), 1.0 / (D_INNER ** 0.5))  # (L,64,32)

    # bf16 weight slab: sublane-stacked, each block lane-padded to 128 (unmasked DMA).
    wslab = jnp.concatenate(
        [_pad_lanes(wqkv), _pad_lanes(wo), _pad_lanes(w1), _pad_lanes(w2)],
        axis=1).astype(jnp.bfloat16)                                      # (L,160,128)

    ln1_g = jnp.ones((N_LAYERS, D_MODEL), jnp.float32)
    ln1_b = jnp.zeros((N_LAYERS, D_MODEL), jnp.float32)
    ln2_g = jnp.ones((N_LAYERS, D_MODEL), jnp.float32)
    ln2_b = jnp.zeros((N_LAYERS, D_MODEL), jnp.float32)
    b1 = normal(ks[5], (N_LAYERS, D_INNER), 0.02)
    b2 = normal(ks[6], (N_LAYERS, D_MODEL), 0.02)

    def row(v):
        return _pad_lanes(v)[:, None, :]

    # f32 param slab rows: [ln1_g, ln1_b, ln2_g, ln2_b, b1, b2] + 2 pad rows.
    fslab = jnp.concatenate(
        [row(ln1_g), row(ln1_b), row(ln2_g), row(ln2_b), row(b1), row(b2),
         jnp.zeros((N_LAYERS, F_ROWS - 6, LANES), jnp.float32)],
        axis=1).astype(jnp.float32)                                       # (L,8,128)

    return dict(embedding=emb, rates=rates, wslab=wslab, fslab=fslab)


if __name__ == "__main__":
    key = jax.random.PRNGKey(0)
    kp, kid, ksum = jax.random.split(key, 3)
    params = init_params(kp)

    ids = jax.random.randint(kid, (B, S), 1, N_VOCAB, dtype=jnp.int32)
    ids = ids.at[:, -2:].set(PAD_ID)                            # trailing padding
    mask = ids != PAD_ID                                        # (B, S) padding mask
    f_pos = jnp.broadcast_to(jnp.arange(S, dtype=jnp.float32), (B, S))
    b_pos = jnp.broadcast_to(jnp.arange(S - 1, -1, -1, dtype=jnp.float32), (B, S))
    # summary interpreted as one vector per sequence, broadcast over positions
    summary = jax.random.normal(ksum, (B, 1, D_MODEL), dtype=jnp.float32)
    nxt = mask                                                  # boolean "next" selector

    out_full = jax.block_until_ready(
        phase_gen_forward(params, ids, f_pos, b_pos, summary, mask))

    # final PhaseGen step: x[next]  (dynamic-shape boolean gather, eager plain JAX)
    result = jax.block_until_ready(out_full[nxt])

    assert out_full.shape == (B, S, D_MODEL)
    assert result.shape == (int(nxt.sum()), D_MODEL)
    assert bool(jnp.isfinite(result).all())
    # TODO(synk): dropout layers are identity in eval mode and therefore omitted.
    print("KERNEL_OK")
</pallas_src>

<mosaic_0001>
module attributes {stable_mosaic.version = 11 : i64} {
  func.func @phasegen_kernel(%arg0: i32, %arg1: memref<1x128x32xf32, #tpu.memory_space<vmem>>, %arg2: memref<1x128x128xf32, #tpu.memory_space<vmem>>, %arg3: memref<2x8x128xf32, #tpu.memory_space<vmem>>, %arg4: memref<2x160x128xbf16, #tpu.memory_space<vmem>>, %arg5: memref<1x128x32xf32, #tpu.memory_space<vmem>>) attributes {dimension_semantics = [#tpu.dimension_semantics<parallel>], iteration_bounds = array<i64: 2>, scalar_prefetch = 0 : i64, scratch_operands = 0 : i64, tpu.core_type = #tpu.core_type<tc>, window_params = [{transform_indices = @transform_0, window_bounds = array<i64: 1, 128, 32>}, {transform_indices = @transform_1, window_bounds = array<i64: 1, 128, 128>}, {pipeline_mode = #tpu.pipeline_mode<synchronous>, transform_indices = @transform_2, window_bounds = array<i64: 2, 8, 128>}, {pipeline_mode = #tpu.pipeline_mode<synchronous>, transform_indices = @transform_3, window_bounds = array<i64: 2, 160, 128>}, {transform_indices = @transform_4, window_bounds = array<i64: 1, 128, 32>}]} {
    %c0 = arith.constant 0 : index
    %c0_0 = arith.constant 0 : index
    %c0_1 = arith.constant 0 : index
    %0 = vector.load %arg1[%c0, %c0_0, %c0_1] : memref<1x128x32xf32, #tpu.memory_space<vmem>>, vector<1x128x32xf32>
    %1 = vector.shape_cast %0 : vector<1x128x32xf32> to vector<128x32xf32>
    %c0_2 = arith.constant 0 : index
    %c0_3 = arith.constant 0 : index
    %c0_4 = arith.constant 0 : index
    %2 = vector.load %arg2[%c0_2, %c0_3, %c0_4] : memref<1x128x128xf32, #tpu.memory_space<vmem>>, vector<1x128x128xf32>
    %3 = vector.shape_cast %2 : vector<1x128x128xf32> to vector<128x128xf32>
    %c0_5 = arith.constant 0 : index
    %c0_6 = arith.constant 0 : index
    %c0_7 = arith.constant 0 : index
    %4 = vector.load %arg4[%c0_5, %c0_6, %c0_7] : memref<2x160x128xbf16, #tpu.memory_space<vmem>>, vector<1x32x128xbf16>
    %5 = vector.shape_cast %4 : vector<1x32x128xbf16> to vector<32x128xbf16>
    %6 = arith.truncf %1 : vector<128x32xf32> to vector<128x32xbf16>
    %cst = arith.constant dense<0.000000e+00> : vector<128x128xf32>
    %7 = tpu.matmul %6, %5, %cst {dimension_numbers = #tpu.dot_dimension_numbers<[1], [0], [0], [1], [0, 0, 1, 1], [], []>} : vector<128x32xbf16>, vector<32x128xbf16>, vector<128x128xf32> -> vector<128x128xf32>
    %8 = vector.extract_strided_slice %7 {offsets = [0, 0], sizes = [128, 16], strides = [1, 1]} : vector<128x128xf32> to vector<128x16xf32>
    %9 = arith.truncf %8 : vector<128x16xf32> to vector<128x16xbf16>
    %10 = vector.extract_strided_slice %7 {offsets = [0, 32], sizes = [128, 16], strides = [1, 1]} : vector<128x128xf32> to vector<128x16xf32>
    %11 = arith.truncf %10 : vector<128x16xf32> to vector<128x16xbf16>
    %12 = vector.extract_strided_slice %7 {offsets = [0, 64], sizes = [128, 16], strides = [1, 1]} : vector<128x128xf32> to vector<128x16xf32>
    %13 = arith.truncf %12 : vector<128x16xf32> to vector<128x16xbf16>
    %cst_8 = arith.constant dense<0.000000e+00> : vector<128x128xf32>
    %14 = tpu.matmul %9, %11, %cst_8 {dimension_numbers = #tpu.dot_dimension_numbers<[1], [1], [0], [0], [0, 0, 1, 0], [], []>} : vector<128x16xbf16>, vector<128x16xbf16>, vector<128x128xf32> -> vector<128x128xf32>
    %cst_9 = arith.constant 2.500000e-01 : f32
    %15 = vector.broadcast %cst_9 : f32 to vector<128x128xf32>
    %16 = arith.mulf %14, %15 : vector<128x128xf32>
    %17 = arith.addf %16, %3 : vector<128x128xf32>
    %cst_10 = arith.constant dense<0xFF800000> : vector<128xf32>
    %18 = vector.multi_reduction <maximumf>, %17, %cst_10 [1] : vector<128x128xf32> to vector<128xf32>
    %19 = vector.shape_cast %18 : vector<128xf32> to vector<128x1xf32>
    %20 = vector.broadcast %19 : vector<128x1xf32> to vector<128x128xf32>
    %21 = arith.subf %17, %20 : vector<128x128xf32>
    %22 = math.exp %21 : vector<128x128xf32>
    %cst_11 = arith.constant dense<0.000000e+00> : vector<128xf32>
    %23 = vector.multi_reduction <add>, %22, %cst_11 [1] : vector<128x128xf32> to vector<128xf32>
    %24 = vector.shape_cast %23 : vector<128xf32> to vector<128x1xf32>
    %25 = tpu.reciprocal %24 : vector<128x1xf32> -> vector<128x1xf32>
    %26 = vector.broadcast %25 : vector<128x1xf32> to vector<128x128xf32>
    %27 = arith.mulf %22, %26 : vector<128x128xf32>
    %28 = arith.truncf %27 : vector<128x128xf32> to vector<128x128xbf16>
    %cst_12 = arith.constant dense<0.000000e+00> : vector<128x16xf32>
    %29 = tpu.matmul %28, %13, %cst_12 {dimension_numbers = #tpu.dot_dimension_numbers<[1], [0], [0], [1], [0, 0, 1, 1], [], []>} : vector<128x128xbf16>, vector<128x16xbf16>, vector<128x16xf32> -> vector<128x16xf32>
    %30 = vector.extract_strided_slice %7 {offsets = [0, 16], sizes = [128, 16], strides = [1, 1]} : vector<128x128xf32> to vector<128x16xf32>
    %31 = arith.truncf %30 : vector<128x16xf32> to vector<128x16xbf16>
    %32 = vector.extract_strided_slice %7 {offsets = [0, 48], sizes = [128, 16], strides = [1, 1]} : vector<128x128xf32> to vector<128x16xf32>
    %33 = arith.truncf %32 : vector<128x16xf32> to vector<128x16xbf16>
    %34 = vector.extract_strided_slice %7 {offsets = [0, 80], sizes = [128, 16], strides = [1, 1]} : vector<128x128xf32> to vector<128x16xf32>
    %35 = arith.truncf %34 : vector<128x16xf32> to vector<128x16xbf16>
    %cst_13 = arith.constant dense<0.000000e+00> : vector<128x128xf32>
    %36 = tpu.matmul %31, %33, %cst_13 {dimension_numbers = #tpu.dot_dimension_numbers<[1], [1], [0], [0], [0, 0, 1, 0], [], []>} : vector<128x16xbf16>, vector<128x16xbf16>, vector<128x128xf32> -> vector<128x128xf32>
    %cst_14 = arith.constant 2.500000e-01 : f32
    %37 = vector.broadcast %cst_14 : f32 to vector<128x128xf32>
    %38 = arith.mulf %36, %37 : vector<128x128xf32>
    %39 = arith.addf %38, %3 : vector<128x128xf32>
    %cst_15 = arith.constant dense<0xFF800000> : vector<128xf32>
    %40 = vector.multi_reduction <maximumf>, %39, %cst_15 [1] : vector<128x128xf32> to vector<128xf32>
    %41 = vector.shape_cast %40 : vector<128xf32> to vector<128x1xf32>
    %42 = vector.broadcast %41 : vector<128x1xf32> to vector<128x128xf32>
    %43 = arith.subf %39, %42 : vector<128x128xf32>
    %44 = math.exp %43 : vector<128x128xf32>
    %cst_16 = arith.constant dense<0.000000e+00> : vector<128xf32>
    %45 = vector.multi_reduction <add>, %44, %cst_16 [1] : vector<128x128xf32> to vector<128xf32>
    %46 = vector.shape_cast %45 : vector<128xf32> to vector<128x1xf32>
    %47 = tpu.reciprocal %46 : vector<128x1xf32> -> vector<128x1xf32>
    %48 = vector.broadcast %47 : vector<128x1xf32> to vector<128x128xf32>
    %49 = arith.mulf %44, %48 : vector<128x128xf32>
    %50 = arith.truncf %49 : vector<128x128xf32> to vector<128x128xbf16>
    %cst_17 = arith.constant dense<0.000000e+00> : vector<128x16xf32>
    %51 = tpu.matmul %50, %35, %cst_17 {dimension_numbers = #tpu.dot_dimension_numbers<[1], [0], [0], [1], [0, 0, 1, 1], [], []>} : vector<128x128xbf16>, vector<128x16xbf16>, vector<128x16xf32> -> vector<128x16xf32>
    %52 = tpu.concatenate %29, %51 in 1 : vector<128x16xf32>, vector<128x16xf32> -> vector<128x32xf32>
    %c0_18 = arith.constant 0 : index
    %c32 = arith.constant 32 : index
    %c0_19 = arith.constant 0 : index
    %53 = vector.load %arg4[%c0_18, %c32, %c0_19] : memref<2x160x128xbf16, #tpu.memory_space<vmem>>, vector<1x32x128xbf16>
    %54 = vector.shape_cast %53 : vector<1x32x128xbf16> to vector<32x128xbf16>
    %55 = arith.truncf %52 : vector<128x32xf32> to vector<128x32xbf16>
    %cst_20 = arith.constant dense<0.000000e+00> : vector<128x128xf32>
    %56 = tpu.matmul %55, %54, %cst_20 {dimension_numbers = #tpu.dot_dimension_numbers<[1], [0], [0], [1], [0, 0, 1, 1], [], []>} : vector<128x32xbf16>, vector<32x128xbf16>, vector<128x128xf32> -> vector<128x128xf32>
    %57 = vector.extract_strided_slice %56 {offsets = [0, 0], sizes = [128, 32], strides = [1, 1]} : vector<128x128xf32> to vector<128x32xf32>
    %c0_21 = arith.constant 0 : index
    %c0_22 = arith.constant 0 : index
    %c0_23 = arith.constant 0 : index
    %58 = vector.load %arg3[%c0_21, %c0_22, %c0_23] : memref<2x8x128xf32, #tpu.memory_space<vmem>>, vector<1x1x32xf32>
    %59 = vector.shape_cast %58 : vector<1x1x32xf32> to vector<1x32xf32>
    %c0_24 = arith.constant 0 : index
    %c1 = arith.constant 1 : index
    %c0_25 = arith.constant 0 : index
    %60 = vector.load %arg3[%c0_24, %c1, %c0_25] : memref<2x8x128xf32, #tpu.memory_space<vmem>>, vector<1x1x32xf32>
    %61 = vector.shape_cast %60 : vector<1x1x32xf32> to vector<1x32xf32>
    %62 = arith.addf %57, %1 : vector<128x32xf32>
    %cst_26 = arith.constant dense<0.000000e+00> : vector<128xf32>
    %63 = vector.multi_reduction <add>, %62, %cst_26 [1] : vector<128x32xf32> to vector<128xf32>
    %64 = vector.shape_cast %63 : vector<128xf32> to vector<128x1xf32>
    %cst_27 = arith.constant 3.200000e+01 : f32
    %65 = vector.broadcast %cst_27 : f32 to vector<128x1xf32>
    %66 = arith.divf %64, %65 : vector<128x1xf32>
    %67 = vector.broadcast %66 : vector<128x1xf32> to vector<128x32xf32>
    %68 = arith.subf %62, %67 : vector<128x32xf32>
    %69 = arith.mulf %68, %68 : vector<128x32xf32>
    %cst_28 = arith.constant dense<0.000000e+00> : vector<128xf32>
    %70 = vector.multi_reduction <add>, %69, %cst_28 [1] : vector<128x32xf32> to vector<128xf32>
    %71 = vector.shape_cast %70 : vector<128xf32> to vector<128x1xf32>
    %cst_29 = arith.constant 3.200000e+01 : f32
    %72 = vector.broadcast %cst_29 : f32 to vector<128x1xf32>
    %73 = arith.divf %71, %72 : vector<128x1xf32>
    %74 = vector.broadcast %66 : vector<128x1xf32> to vector<128x32xf32>
    %75 = arith.subf %62, %74 : vector<128x32xf32>
    %cst_30 = arith.constant 9.99999997E-7 : f32
    %76 = vector.broadcast %cst_30 : f32 to vector<128x1xf32>
    %77 = arith.addf %73, %76 : vector<128x1xf32>
    %78 = math.rsqrt %77 : vector<128x1xf32>
    %79 = vector.broadcast %78 : vector<128x1xf32> to vector<128x32xf32>
    %80 = arith.mulf %75, %79 : vector<128x32xf32>
    %81 = vector.broadcast %59 : vector<1x32xf32> to vector<128x32xf32>
    %82 = arith.mulf %80, %81 : vector<128x32xf32>
    %83 = vector.broadcast %61 : vector<1x32xf32> to vector<128x32xf32>
    %84 = arith.addf %82, %83 : vector<128x32xf32>
    %c0_31 = arith.constant 0 : index
    %c64 = arith.constant 64 : index
    %c0_32 = arith.constant 0 : index
    %85 = vector.load %arg4[%c0_31, %c64, %c0_32] : memref<2x160x128xbf16, #tpu.memory_space<vmem>>, vector<1x32x128xbf16>
    %86 = vector.shape_cast %85 : vector<1x32x128xbf16> to vector<32x128xbf16>
    %87 = arith.truncf %84 : vector<128x32xf32> to vector<128x32xbf16>
    %cst_33 = arith.constant dense<0.000000e+00> : vector<128x128xf32>
    %88 = tpu.matmul %87, %86, %cst_33 {dimension_numbers = #tpu.dot_dimension_numbers<[1], [0], [0], [1], [0, 0, 1, 1], [], []>} : vector<128x32xbf16>, vector<32x128xbf16>, vector<128x128xf32> -> vector<128x128xf32>
    %89 = vector.extract_strided_slice %88 {offsets = [0, 0], sizes = [128, 64], strides = [1, 1]} : vector<128x128xf32> to vector<128x64xf32>
    %c0_34 = arith.constant 0 : index
    %c4 = arith.constant 4 : index
    %c0_35 = arith.constant 0 : index
    %90 = vector.load %arg3[%c0_34, %c4, %c0_35] : memref<2x8x128xf32, #tpu.memory_space<vmem>>, vector<1x1x64xf32>
    %91 = vector.shape_cast %90 : vector<1x1x64xf32> to vector<1x64xf32>
    %92 = vector.broadcast %91 : vector<1x64xf32> to vector<128x64xf32>
    %93 = arith.addf %89, %92 : vector<128x64xf32>
    %cst_36 = arith.constant 0.000000e+00 : f32
    %94 = vector.broadcast %cst_36 : f32 to vector<128x64xf32>
    %95 = arith.maximumf %93, %94 : vector<128x64xf32>
    %c0_37 = arith.constant 0 : index
    %c96 = arith.constant 96 : index
    %c0_38 = arith.constant 0 : index
    %96 = vector.load %arg4[%c0_37, %c96, %c0_38] : memref<2x160x128xbf16, #tpu.memory_space<vmem>>, vector<1x64x128xbf16>
    %97 = vector.shape_cast %96 : vector<1x64x128xbf16> to vector<64x128xbf16>
    %98 = arith.truncf %95 : vector<128x64xf32> to vector<128x64xbf16>
    %cst_39 = arith.constant dense<0.000000e+00> : vector<128x128xf32>
    %99 = tpu.matmul %98, %97, %cst_39 {dimension_numbers = #tpu.dot_dimension_numbers<[1], [0], [0], [1], [0, 0, 1, 1], [], []>} : vector<128x64xbf16>, vector<64x128xbf16>, vector<128x128xf32> -> vector<128x128xf32>
    %100 = vector.extract_strided_slice %99 {offsets = [0, 0], sizes = [128, 32], strides = [1, 1]} : vector<128x128xf32> to vector<128x32xf32>
    %c0_40 = arith.constant 0 : index
    %c5 = arith.constant 5 : index
    %c0_41 = arith.constant 0 : index
    %101 = vector.load %arg3[%c0_40, %c5, %c0_41] : memref<2x8x128xf32, #tpu.memory_space<vmem>>, vector<1x1x32xf32>
    %102 = vector.shape_cast %101 : vector<1x1x32xf32> to vector<1x32xf32>
    %103 = vector.broadcast %102 : vector<1x32xf32> to vector<128x32xf32>
    %104 = arith.addf %100, %103 : vector<128x32xf32>
    %c0_42 = arith.constant 0 : index
    %c2 = arith.constant 2 : index
    %c0_43 = arith.constant 0 : index
    %105 = vector.load %arg3[%c0_42, %c2, %c0_43] : memref<2x8x128xf32, #tpu.memory_space<vmem>>, vector<1x1x32xf32>
    %106 = vector.shape_cast %105 : vector<1x1x32xf32> to vector<1x32xf32>
    %c0_44 = arith.constant 0 : index
    %c3 = arith.constant 3 : index
    %c0_45 = arith.constant 0 : index
    %107 = vector.load %arg3[%c0_44, %c3, %c0_45] : memref<2x8x128xf32, #tpu.memory_space<vmem>>, vector<1x1x32xf32>
    %108 = vector.shape_cast %107 : vector<1x1x32xf32> to vector<1x32xf32>
    %109 = arith.addf %104, %84 : vector<128x32xf32>
    %cst_46 = arith.constant dense<0.000000e+00> : vector<128xf32>
    %110 = vector.multi_reduction <add>, %109, %cst_46 [1] : vector<128x32xf32> to vector<128xf32>
    %111 = vector.shape_cast %110 : vector<128xf32> to vector<128x1xf32>
    %cst_47 = arith.constant 3.200000e+01 : f32
    %112 = vector.broadcast %cst_47 : f32 to vector<128x1xf32>
    %113 = arith.divf %111, %112 : vector<128x1xf32>
    %114 = vector.broadcast %113 : vector<128x1xf32> to vector<128x32xf32>
    %115 = arith.subf %109, %114 : vector<128x32xf32>
    %116 = arith.mulf %115, %115 : vector<128x32xf32>
    %cst_48 = arith.constant dense<0.000000e+00> : vector<128xf32>
    %117 = vector.multi_reduction <add>, %116, %cst_48 [1] : vector<128x32xf32> to vector<128xf32>
    %118 = vector.shape_cast %117 : vector<128xf32> to vector<128x1xf32>
    %cst_49 = arith.constant 3.200000e+01 : f32
    %119 = vector.broadcast %cst_49 : f32 to vector<128x1xf32>
    %120 = arith.divf %118, %119 : vector<128x1xf32>
    %121 = vector.broadcast %113 : vector<128x1xf32> to vector<128x32xf32>
    %122 = arith.subf %109, %121 : vector<128x32xf32>
    %cst_50 = arith.constant 9.99999997E-7 : f32
    %123 = vector.broadcast %cst_50 : f32 to vector<128x1xf32>
    %124 = arith.addf %120, %123 : vector<128x1xf32>
    %125 = math.rsqrt %124 : vector<128x1xf32>
    %126 = vector.broadcast %125 : vector<128x1xf32> to vector<128x32xf32>
    %127 = arith.mulf %122, %126 : vector<128x32xf32>
    %128 = vector.broadcast %106 : vector<1x32xf32> to vector<128x32xf32>
    %129 = arith.mulf %127, %128 : vector<128x32xf32>
    %130 = vector.broadcast %108 : vector<1x32xf32> to vector<128x32xf32>
    %131 = arith.addf %129, %130 : vector<128x32xf32>
    %c1_51 = arith.constant 1 : index
    %c0_52 = arith.constant 0 : index
    %c0_53 = arith.constant 0 : index
    %132 = vector.load %arg4[%c1_51, %c0_52, %c0_53] : memref<2x160x128xbf16, #tpu.memory_space<vmem>>, vector<1x32x128xbf16>
    %133 = vector.shape_cast %132 : vector<1x32x128xbf16> to vector<32x128xbf16>
    %134 = arith.truncf %131 : vector<128x32xf32> to vector<128x32xbf16>
    %cst_54 = arith.constant dense<0.000000e+00> : vector<128x128xf32>
    %135 = tpu.matmul %134, %133, %cst_54 {dimension_numbers = #tpu.dot_dimension_numbers<[1], [0], [0], [1], [0, 0, 1, 1], [], []>} : vector<128x32xbf16>, vector<32x128xbf16>, vector<128x128xf32> -> vector<128x128xf32>
    %136 = vector.extract_strided_slice %135 {offsets = [0, 0], sizes = [128, 16], strides = [1, 1]} : vector<128x128xf32> to vector<128x16xf32>
    %137 = arith.truncf %136 : vector<128x16xf32> to vector<128x16xbf16>
    %138 = vector.extract_strided_slice %135 {offsets = [0, 32], sizes = [128, 16], strides = [1, 1]} : vector<128x128xf32> to vector<128x16xf32>
    %139 = arith.truncf %138 : vector<128x16xf32> to vector<128x16xbf16>
    %140 = vector.extract_strided_slice %135 {offsets = [0, 64], sizes = [128, 16], strides = [1, 1]} : vector<128x128xf32> to vector<128x16xf32>
    %141 = arith.truncf %140 : vector<128x16xf32> to vector<128x16xbf16>
    %cst_55 = arith.constant dense<0.000000e+00> : vector<128x128xf32>
    %142 = tpu.matmul %137, %139, %cst_55 {dimension_numbers = #tpu.dot_dimension_numbers<[1], [1], [0], [0], [0, 0, 1, 0], [], []>} : vector<128x16xbf16>, vector<128x16xbf16>, vector<128x128xf32> -> vector<128x128xf32>
    %cst_56 = arith.constant 2.500000e-01 : f32
    %143 = vector.broadcast %cst_56 : f32 to vector<128x128xf32>
    %144 = arith.mulf %142, %143 : vector<128x128xf32>
    %145 = arith.addf %144, %3 : vector<128x128xf32>
    %cst_57 = arith.constant dense<0xFF800000> : vector<128xf32>
    %146 = vector.multi_reduction <maximumf>, %145, %cst_57 [1] : vector<128x128xf32> to vector<128xf32>
    %147 = vector.shape_cast %146 : vector<128xf32> to vector<128x1xf32>
    %148 = vector.broadcast %147 : vector<128x1xf32> to vector<128x128xf32>
    %149 = arith.subf %145, %148 : vector<128x128xf32>
    %150 = math.exp %149 : vector<128x128xf32>
    %cst_58 = arith.constant dense<0.000000e+00> : vector<128xf32>
    %151 = vector.multi_reduction <add>, %150, %cst_58 [1] : vector<128x128xf32> to vector<128xf32>
    %152 = vector.shape_cast %151 : vector<128xf32> to vector<128x1xf32>
    %153 = tpu.reciprocal %152 : vector<128x1xf32> -> vector<128x1xf32>
    %154 = vector.broadcast %153 : vector<128x1xf32> to vector<128x128xf32>
    %155 = arith.mulf %150, %154 : vector<128x128xf32>
    %156 = arith.truncf %155 : vector<128x128xf32> to vector<128x128xbf16>
    %cst_59 = arith.constant dense<0.000000e+00> : vector<128x16xf32>
    %157 = tpu.matmul %156, %141, %cst_59 {dimension_numbers = #tpu.dot_dimension_numbers<[1], [0], [0], [1], [0, 0, 1, 1], [], []>} : vector<128x128xbf16>, vector<128x16xbf16>, vector<128x16xf32> -> vector<128x16xf32>
    %158 = vector.extract_strided_slice %135 {offsets = [0, 16], sizes = [128, 16], strides = [1, 1]} : vector<128x128xf32> to vector<128x16xf32>
    %159 = arith.truncf %158 : vector<128x16xf32> to vector<128x16xbf16>
    %160 = vector.extract_strided_slice %135 {offsets = [0, 48], sizes = [128, 16], strides = [1, 1]} : vector<128x128xf32> to vector<128x16xf32>
    %161 = arith.truncf %160 : vector<128x16xf32> to vector<128x16xbf16>
    %162 = vector.extract_strided_slice %135 {offsets = [0, 80], sizes = [128, 16], strides = [1, 1]} : vector<128x128xf32> to vector<128x16xf32>
    %163 = arith.truncf %162 : vector<128x16xf32> to vector<128x16xbf16>
    %cst_60 = arith.constant dense<0.000000e+00> : vector<128x128xf32>
    %164 = tpu.matmul %159, %161, %cst_60 {dimension_numbers = #tpu.dot_dimension_numbers<[1], [1], [0], [0], [0, 0, 1, 0], [], []>} : vector<128x16xbf16>, vector<128x16xbf16>, vector<128x128xf32> -> vector<128x128xf32>
    %cst_61 = arith.constant 2.500000e-01 : f32
    %165 = vector.broadcast %cst_61 : f32 to vector<128x128xf32>
    %166 = arith.mulf %164, %165 : vector<128x128xf32>
    %167 = arith.addf %166, %3 : vector<128x128xf32>
    %cst_62 = arith.constant dense<0xFF800000> : vector<128xf32>
    %168 = vector.multi_reduction <maximumf>, %167, %cst_62 [1] : vector<128x128xf32> to vector<128xf32>
    %169 = vector.shape_cast %168 : vector<128xf32> to vector<128x1xf32>
    %170 = vector.broadcast %169 : vector<128x1xf32> to vector<128x128xf32>
    %171 = arith.subf %167, %170 : vector<128x128xf32>
    %172 = math.exp %171 : vector<128x128xf32>
    %cst_63 = arith.constant dense<0.000000e+00> : vector<128xf32>
    %173 = vector.multi_reduction <add>, %172, %cst_63 [1] : vector<128x128xf32> to vector<128xf32>
    %174 = vector.shape_cast %173 : vector<128xf32> to vector<128x1xf32>
    %175 = tpu.reciprocal %174 : vector<128x1xf32> -> vector<128x1xf32>
    %176 = vector.broadcast %175 : vector<128x1xf32> to vector<128x128xf32>
    %177 = arith.mulf %172, %176 : vector<128x128xf32>
    %178 = arith.truncf %177 : vector<128x128xf32> to vector<128x128xbf16>
    %cst_64 = arith.constant dense<0.000000e+00> : vector<128x16xf32>
    %179 = tpu.matmul %178, %163, %cst_64 {dimension_numbers = #tpu.dot_dimension_numbers<[1], [0], [0], [1], [0, 0, 1, 1], [], []>} : vector<128x128xbf16>, vector<128x16xbf16>, vector<128x16xf32> -> vector<128x16xf32>
    %180 = tpu.concatenate %157, %179 in 1 : vector<128x16xf32>, vector<128x16xf32> -> vector<128x32xf32>
    %c1_65 = arith.constant 1 : index
    %c32_66 = arith.constant 32 : index
    %c0_67 = arith.constant 0 : index
    %181 = vector.load %arg4[%c1_65, %c32_66, %c0_67] : memref<2x160x128xbf16, #tpu.memory_space<vmem>>, vector<1x32x128xbf16>
    %182 = vector.shape_cast %181 : vector<1x32x128xbf16> to vector<32x128xbf16>
    %183 = arith.truncf %180 : vector<128x32xf32> to vector<128x32xbf16>
    %cst_68 = arith.constant dense<0.000000e+00> : vector<128x128xf32>
    %184 = tpu.matmul %183, %182, %cst_68 {dimension_numbers = #tpu.dot_dimension_numbers<[1], [0], [0], [1], [0, 0, 1, 1], [], []>} : vector<128x32xbf16>, vector<32x128xbf16>, vector<128x128xf32> -> vector<128x128xf32>
    %185 = vector.extract_strided_slice %184 {offsets = [0, 0], sizes = [128, 32], strides = [1, 1]} : vector<128x128xf32> to vector<128x32xf32>
    %c1_69 = arith.constant 1 : index
    %c0_70 = arith.constant 0 : index
    %c0_71 = arith.constant 0 : index
    %186 = vector.load %arg3[%c1_69, %c0_70, %c0_71] : memref<2x8x128xf32, #tpu.memory_space<vmem>>, vector<1x1x32xf32>
    %187 = vector.shape_cast %186 : vector<1x1x32xf32> to vector<1x32xf32>
    %c1_72 = arith.constant 1 : index
    %c1_73 = arith.constant 1 : index
    %c0_74 = arith.constant 0 : index
    %188 = vector.load %arg3[%c1_72, %c1_73, %c0_74] : memref<2x8x128xf32, #tpu.memory_space<vmem>>, vector<1x1x32xf32>
    %189 = vector.shape_cast %188 : vector<1x1x32xf32> to vector<1x32xf32>
    %190 = arith.addf %185, %131 : vector<128x32xf32>
    %cst_75 = arith.constant dense<0.000000e+00> : vector<128xf32>
    %191 = vector.multi_reduction <add>, %190, %cst_75 [1] : vector<128x32xf32> to vector<128xf32>
    %192 = vector.shape_cast %191 : vector<128xf32> to vector<128x1xf32>
    %cst_76 = arith.constant 3.200000e+01 : f32
    %193 = vector.broadcast %cst_76 : f32 to vector<128x1xf32>
    %194 = arith.divf %192, %193 : vector<128x1xf32>
    %195 = vector.broadcast %194 : vector<128x1xf32> to vector<128x32xf32>
    %196 = arith.subf %190, %195 : vector<128x32xf32>
    %197 = arith.mulf %196, %196 : vector<128x32xf32>
    %cst_77 = arith.constant dense<0.000000e+00> : vector<128xf32>
    %198 = vector.multi_reduction <add>, %197, %cst_77 [1] : vector<128x32xf32> to vector<128xf32>
    %199 = vector.shape_cast %198 : vector<128xf32> to vector<128x1xf32>
    %cst_78 = arith.constant 3.200000e+01 : f32
    %200 = vector.broadcast %cst_78 : f32 to vector<128x1xf32>
    %201 = arith.divf %199, %200 : vector<128x1xf32>
    %202 = vector.broadcast %194 : vector<128x1xf32> to vector<128x32xf32>
    %203 = arith.subf %190, %202 : vector<128x32xf32>
    %cst_79 = arith.constant 9.99999997E-7 : f32
    %204 = vector.broadcast %cst_79 : f32 to vector<128x1xf32>
    %205 = arith.addf %201, %204 : vector<128x1xf32>
    %206 = math.rsqrt %205 : vector<128x1xf32>
    %207 = vector.broadcast %206 : vector<128x1xf32> to vector<128x32xf32>
    %208 = arith.mulf %203, %207 : vector<128x32xf32>
    %209 = vector.broadcast %187 : vector<1x32xf32> to vector<128x32xf32>
    %210 = arith.mulf %208, %209 : vector<128x32xf32>
    %211 = vector.broadcast %189 : vector<1x32xf32> to vector<128x32xf32>
    %212 = arith.addf %210, %211 : vector<128x32xf32>
    %c1_80 = arith.constant 1 : index
    %c64_81 = arith.constant 64 : index
    %c0_82 = arith.constant 0 : index
    %213 = vector.load %arg4[%c1_80, %c64_81, %c0_82] : memref<2x160x128xbf16, #tpu.memory_space<vmem>>, vector<1x32x128xbf16>
    %214 = vector.shape_cast %213 : vector<1x32x128xbf16> to vector<32x128xbf16>
    %215 = arith.truncf %212 : vector<128x32xf32> to vector<128x32xbf16>
    %cst_83 = arith.constant dense<0.000000e+00> : vector<128x128xf32>
    %216 = tpu.matmul %215, %214, %cst_83 {dimension_numbers = #tpu.dot_dimension_numbers<[1], [0], [0], [1], [0, 0, 1, 1], [], []>} : vector<128x32xbf16>, vector<32x128xbf16>, vector<128x128xf32> -> vector<128x128xf32>
    %217 = vector.extract_strided_slice %216 {offsets = [0, 0], sizes = [128, 64], strides = [1, 1]} : vector<128x128xf32> to vector<128x64xf32>
    %c1_84 = arith.constant 1 : index
    %c4_85 = arith.constant 4 : index
    %c0_86 = arith.constant 0 : index
    %218 = vector.load %arg3[%c1_84, %c4_85, %c0_86] : memref<2x8x128xf32, #tpu.memory_space<vmem>>, vector<1x1x64xf32>
    %219 = vector.shape_cast %218 : vector<1x1x64xf32> to vector<1x64xf32>
    %220 = vector.broadcast %219 : vector<1x64xf32> to vector<128x64xf32>
    %221 = arith.addf %217, %220 : vector<128x64xf32>
    %cst_87 = arith.constant 0.000000e+00 : f32
    %222 = vector.broadcast %cst_87 : f32 to vector<128x64xf32>
    %223 = arith.maximumf %221, %222 : vector<128x64xf32>
    %c1_88 = arith.constant 1 : index
    %c96_89 = arith.constant 96 : index
    %c0_90 = arith.constant 0 : index
    %224 = vector.load %arg4[%c1_88, %c96_89, %c0_90] : memref<2x160x128xbf16, #tpu.memory_space<vmem>>, vector<1x64x128xbf16>
    %225 = vector.shape_cast %224 : vector<1x64x128xbf16> to vector<64x128xbf16>
    %226 = arith.truncf %223 : vector<128x64xf32> to vector<128x64xbf16>
    %cst_91 = arith.constant dense<0.000000e+00> : vector<128x128xf32>
    %227 = tpu.matmul %226, %225, %cst_91 {dimension_numbers = #tpu.dot_dimension_numbers<[1], [0], [0], [1], [0, 0, 1, 1], [], []>} : vector<128x64xbf16>, vector<64x128xbf16>, vector<128x128xf32> -> vector<128x128xf32>
    %228 = vector.extract_strided_slice %227 {offsets = [0, 0], sizes = [128, 32], strides = [1, 1]} : vector<128x128xf32> to vector<128x32xf32>
    %c1_92 = arith.constant 1 : index
    %c5_93 = arith.constant 5 : index
    %c0_94 = arith.constant 0 : index
    %229 = vector.load %arg3[%c1_92, %c5_93, %c0_94] : memref<2x8x128xf32, #tpu.memory_space<vmem>>, vector<1x1x32xf32>
    %230 = vector.shape_cast %229 : vector<1x1x32xf32> to vector<1x32xf32>
    %231 = vector.broadcast %230 : vector<1x32xf32> to vector<128x32xf32>
    %232 = arith.addf %228, %231 : vector<128x32xf32>
    %c1_95 = arith.constant 1 : index
    %c2_96 = arith.constant 2 : index
    %c0_97 = arith.constant 0 : index
    %233 = vector.load %arg3[%c1_95, %c2_96, %c0_97] : memref<2x8x128xf32, #tpu.memory_space<vmem>>, vector<1x1x32xf32>
    %234 = vector.shape_cast %233 : vector<1x1x32xf32> to vector<1x32xf32>
    %c1_98 = arith.constant 1 : index
    %c3_99 = arith.constant 3 : index
    %c0_100 = arith.constant 0 : index
    %235 = vector.load %arg3[%c1_98, %c3_99, %c0_100] : memref<2x8x128xf32, #tpu.memory_space<vmem>>, vector<1x1x32xf32>
    %236 = vector.shape_cast %235 : vector<1x1x32xf32> to vector<1x32xf32>
    %237 = arith.addf %232, %212 : vector<128x32xf32>
    %cst_101 = arith.constant dense<0.000000e+00> : vector<128xf32>
    %238 = vector.multi_reduction <add>, %237, %cst_101 [1] : vector<128x32xf32> to vector<128xf32>
    %239 = vector.shape_cast %238 : vector<128xf32> to vector<128x1xf32>
    %cst_102 = arith.constant 3.200000e+01 : f32
    %240 = vector.broadcast %cst_102 : f32 to vector<128x1xf32>
    %241 = arith.divf %239, %240 : vector<128x1xf32>
    %242 = vector.broadcast %241 : vector<128x1xf32> to vector<128x32xf32>
    %243 = arith.subf %237, %242 : vector<128x32xf32>
    %244 = arith.mulf %243, %243 : vector<128x32xf32>
    %cst_103 = arith.constant dense<0.000000e+00> : vector<128xf32>
    %245 = vector.multi_reduction <add>, %244, %cst_103 [1] : vector<128x32xf32> to vector<128xf32>
    %246 = vector.shape_cast %245 : vector<128xf32> to vector<128x1xf32>
    %cst_104 = arith.constant 3.200000e+01 : f32
    %247 = vector.broadcast %cst_104 : f32 to vector<128x1xf32>
    %248 = arith.divf %246, %247 : vector<128x1xf32>
    %249 = vector.broadcast %241 : vector<128x1xf32> to vector<128x32xf32>
    %250 = arith.subf %237, %249 : vector<128x32xf32>
    %cst_105 = arith.constant 9.99999997E-7 : f32
    %251 = vector.broadcast %cst_105 : f32 to vector<128x1xf32>
    %252 = arith.addf %248, %251 : vector<128x1xf32>
    %253 = math.rsqrt %252 : vector<128x1xf32>
    %254 = vector.broadcast %253 : vector<128x1xf32> to vector<128x32xf32>
    %255 = arith.mulf %250, %254 : vector<128x32xf32>
    %256 = vector.broadcast %234 : vector<1x32xf32> to vector<128x32xf32>
    %257 = arith.mulf %255, %256 : vector<128x32xf32>
    %258 = vector.broadcast %236 : vector<1x32xf32> to vector<128x32xf32>
    %259 = arith.addf %257, %258 : vector<128x32xf32>
    %c0_106 = arith.constant 0 : index
    %c0_107 = arith.constant 0 : index
    %c0_108 = arith.constant 0 : index
    %260 = vector.load %arg5[%c0_106, %c0_107, %c0_108] : memref<1x128x32xf32, #tpu.memory_space<vmem>>, vector<1x128x32xf32>
    %261 = vector.shape_cast %260 : vector<1x128x32xf32> to vector<128x32xf32>
    %262 = vector.shape_cast %259 : vector<128x32xf32> to vector<1x128x32xf32>
    tpu.vector_store %arg5[%c0_106, %c0_107, %c0_108], %262 {strides = array<i32>} : memref<1x128x32xf32, #tpu.memory_space<vmem>>, vector<1x128x32xf32>,
    return
  }
  func.func @transform_0(%arg0: i32) -> (i32, i32, i32) {
    %c0_i32 = arith.constant 0 : i32
    %c0_i32_0 = arith.constant 0 : i32
    %c0_i32_1 = arith.constant 0 : i32
    return %arg0, %c0_i32, %c0_i32_0 : i32, i32, i32
  }
  func.func @transform_1(%arg0: i32) -> (i32, i32, i32) {
    %c0_i32 = arith.constant 0 : i32
    %c0_i32_0 = arith.constant 0 : i32
    %c0_i32_1 = arith.constant 0 : i32
    return %arg0, %c0_i32, %c0_i32_0 : i32, i32, i32
  }
  func.func @transform_2(%arg0: i32) -> (i32, i32, i32) {
    %c0_i32 = arith.constant 0 : i32
    %c0_i32_0 = arith.constant 0 : i32
    %c0_i32_1 = arith.constant 0 : i32
    %c0_i32_2 = arith.constant 0 : i32
    return %c0_i32, %c0_i32_0, %c0_i32_1 : i32, i32, i32
  }
  func.func @transform_3(%arg0: i32) -> (i32, i32, i32) {
    %c0_i32 = arith.constant 0 : i32
    %c0_i32_0 = arith.constant 0 : i32
    %c0_i32_1 = arith.constant 0 : i32
    %c0_i32_2 = arith.constant 0 : i32
    return %c0_i32, %c0_i32_0, %c0_i32_1 : i32, i32, i32
  }
  func.func @transform_4(%arg0: i32) -> (i32, i32, i32) {
    %c0_i32 = arith.constant 0 : i32
    %c0_i32_0 = arith.constant 0 : i32
    %c0_i32_1 = arith.constant 0 : i32
    return %arg0, %c0_i32, %c0_i32_0 : i32, i32, i32
  }
}

</mosaic_0001>

<bundles_post_ra>
// kernel: tpu_custom_call.1
= control target key start
LH: loop header
LB: loop body
LE: loop exit
PB: predicated region body
PF: predicated region fallthrough
CT: control target
= control target key end

     0   :  { %9 = vsyncpa [#allocation3], 0  ;;  %s6280_s15 = smov 0   ;;  %s8722_s0 = inlined_call_operand.vmem [shape: f32[2,128,32], index: 0, kind: input, shape index: {}]   ;;  %s8723_s1 = inlined_call_operand.vmem [shape: f32[2,128,128], index: 1, kind: input, shape index: {}]   ;;  %s8724_s2 = inlined_call_operand.vmem [shape: f32[2,8,128], index: 2, kind: input, shape index: {}]   ;;  %s8725_s3 = inlined_call_operand.hbm [shape: bf16[2,160,128], index: 3, kind: input, shape index: {}]   ;;  %s8726_s4 = inlined_call_operand.vmem [shape: f32[2,128,32], index: 4, kind: output, shape index: {}]  }
   0x1 LB: > { %s6286_s16 = sadd.s32 4294967295, %s6244_s15   ;;  %p4829_p0 = scmp.ge.s32.totalorder %s6244_s15, 1  ;;  %s6244_s15 = sphi %s6280_s15, %s15_s15  }
   0x2   : > { %p140_p1 = scmp.lt.s32.totalorder %s6244_s15, 3  ;;  %s6246_s17 = smov [#allocation2]  }
   0x3   : > { %s155_s18 = sshll.u32 %s6246_s17, 4  ;;  %p8727_p3 = scmp.eq.s32.totalorder %s6286_s16, 0  ;;  %s156_s18 = int_to_ptr.vmem [resolvable:$true] %s155_s18 }
   0x4   : > { %p6290_p2 = pnand %p4829_p0, %p140_p1  ;;  %s6206_s23 = scalar_lea.hbm %s8725_s3, 2560 }
   0x5   : > { %p6207_p6 = scmp.ne.s32.totalorder %s8725_s3, %s6206_s23  ;;  %p6213_p10 = scmp.lt.u32.totalorder %s6206_s23, %s8725_s3 }
   0x6   : > { %s8738_s19 = scalar_select %p6290_p2, 1, 0 }
   0x7   : > { %p5667_p4 = pneg %p6290_p2 }
   0x9   : > { %p6299_p5 = pnand %p8727_p3, %p5667_p4 }
   0xb   : > { %p6208_p7 = pneg %p6299_p5 }
   0xd   : > { %p6209_p8 = pnand %p6208_p7, %p6207_p6 }
   0xf   : > { %p6210_p9 = pneg %p6209_p8 }
  0x11   : > { %p6215_p11 = pnand %p6213_p10, %p6210_p9 }
  0x13   : > { %6218 = shalt.err (!%p6215_p11)
}
  0x14   : > { %s6219_s28 = scalar_lea.vmem %s156_s18, 2560  ;;  %p6227_p1 = scmp.lt.s32.totalorder %s156_s18, %s156_s18 }
  0x15   : > { %p6220_p12 = scmp.ne.s32.totalorder %s156_s18, %s6219_s28  ;;  %p6228_p4 = scmp.lt.s32.totalorder %s6219_s28, %s6219_s28 }
  0x17   : > { %p6222_p13 = pnand %p6220_p12, %p6208_p7  ;;  %p6229_p3 = por %p6228_p4, %p6227_p1 }
  0x19   : > { %p6223_p0 = pneg %p6222_p13 }
  0x1b   : > { %p6230_p2 = pnand %p6229_p3, %p6223_p0 }
  0x1d   : > { %6233 = shalt.err (!%p6230_p2)
}
  0x1e   : > { %s6247_s29 = smov 64   ;;  %s6248_s30 = smov 4  }
  0x1f   : > { %5670 = dma.hbm_to_vmem [thread:$0]  (!%p6299_p5), %s8725_s3, 2560, %s156_s18, [#allocation3], %s6247_s29, %s6247_s29, %s6248_s30  }
  0x20   : > { %p8740_p6 = scmp.ne.s32.totalorder %s8738_s19, 0 }
  0x22   : > { %187 = sbr.rel (%p8740_p6) target bundleno = 6645 (0x19f5), region = 36 }
  0x29   : > { %p8741_p8 = scmp.eq.s32.totalorder %s6286_s16, 0 }
  0x2b   : > { %6239 = dma.done.wait (%p8741_p8), [#allocation3], 2560   ;;  %p8742_p7 = pmov %p8741_p8 }
  0x2c   : > { %p218_p2 = scmp.lt.s32.totalorder %s6286_s16, 1  ;;  %v5770_v0 = vld [vmem:[#allocation2] sm:$0xff]   ;;  %v5771_v1 = vld [vmem:[#allocation2 + $0x8] sm:$0xff]   ;;  %vm290_vm0 = vcmask 261120   ;;  %vm444_vm1 = vcmask 130048   ;;  %s6249_s11 = smov 96  }
  0x2d   : > { %6241 = vsyncadd (%p8742_p7), [#allocation3], 4294964736  ;;  %5191 = vmatprep.subr.bf16.mxu0 %v5770_v0  ;;  %s6250_s12 = smov 64   ;;  %s6251_s17 = smov 80   ;;  %vm2091_vm2 = vcmask 523264  }
  0x2e   : > { %s8762_s16 = smov (!%p218_p2, %s6286_s16), 1  ;;  %5192 = vmatpush3.bf16.msra.mxu0 %v5770_v0  ;;  %s6252_s18 = smov 112  }
  0x2f   : > { %s6327_s7 = sshll.u32 %s8762_s16, 7  ;;  %5193 = vmatprep.subr.bf16.mxu0 %v5771_v1  ;;  %s6253_s19 = smov 48  }
  0x30   : > { %s6333_s10 = scalar_lea.vmem %s8722_s0, %s6327_s7  ;;  %s6443_s16 = scalar_lea.vmem %s8723_s1, %s6327_s7 }
  0x31   : > { %v234_v2 = vld [vmem:[%s6333_s10] sm:$0xff]  ;;  %v235_v3 = vld [vmem:[%s6333_s10 + $0x8] sm:$0xff]  ;;  %v236_v5 = vld [vmem:[%s6333_s10 + $0x10] sm:$0xff]  ;;  %s6254_s20 = smov 16   ;;  %s8640_s23 = scalar_lea.vmem %s8726_s4, %s6327_s7 }
  0x32   : > { %v270_v4 = vpack.c.bf16 %v235_v3, %v234_v2  ;;  %v237_v6 = vld [vmem:[%s6333_s10 + $0x18] sm:$0xff]  ;;  %v238_v7 = vld [vmem:[%s6333_s10 + $0x20] sm:$0xff]  ;;  %v239_v8 = vld [vmem:[%s6333_s10 + $0x28] sm:$0xff]  ;;  %5194 = vmatpush3.bf16.msra.mxu0 %v5771_v1 }
  0x33   : > { %v271_v9 = vpack.c.bf16 %v237_v6, %v236_v5  ;;  %v272_v10 = vpack.c.bf16 %v239_v8, %v238_v7  ;;  %v240_v11 = vld [vmem:[%s6333_s10 + $0x30] sm:$0xff]  ;;  %v241_v12 = vld [vmem:[%s6333_s10 + $0x38] sm:$0xff]  ;;  %v242_v13 = vld [vmem:[%s6333_s10 + $0x40] sm:$0xff] }
  0x34   : > { %5195 = vmatprep.mubr.msk.bf16.mxu0 %vm290_vm0, %v270_v4  ;;  %v243_v14 = vld [vmem:[%s6333_s10 + $0x48] sm:$0xff]  ;;  %v273_v15 = vpack.c.bf16 %v241_v12, %v240_v11  ;;  %v244_v17 = vld [vmem:[%s6333_s10 + $0x50] sm:$0xff]  ;;  %v245_v18 = vld [vmem:[%s6333_s10 + $0x58] sm:$0xff] }
  0x35   : > { %5196 = vmatmul.mubr.msk.bf16.vlgmr.msra.gmra.mrb[0].mxu0 %vm290_vm0, %v271_v9  ;;  %v274_v16 = vpack.c.bf16 %v243_v14, %v242_v13  ;;  %v246_v19 = vld [vmem:[%s6333_s10 + $0x60] sm:$0xff]  ;;  %v247_v20 = vld [vmem:[%s6333_s10 + $0x68] sm:$0xff]  ;;  %v275_v21 = vpack.c.bf16 %v245_v18, %v244_v17  ;;  %v248_v23 = vld [vmem:[%s6333_s10 + $0x70] sm:$0xff] }
  0x36   : > { %5199 = vmatprep.mubr.msk.bf16.mxu0 %vm290_vm0, %v272_v10  ;;  %v276_v22 = vpack.c.bf16 %v247_v20, %v246_v19  ;;  %v249_v24 = vld [vmem:[%s6333_s10 + $0x78] sm:$0xff]  ;;  %v6446_v11 = vld [vmem:[%s6443_s16 + $0x10] sm:$0xff]  ;;  %v6452_v18 = vld [vmem:[%s6443_s16 + $0x8] sm:$0xff] }
  0x37   : > { %v277_v25 = vpack.c.bf16 %v249_v24, %v248_v23  ;;  %v6455_v20 = vld [vmem:[%s6443_s16] sm:$0xff] }
  0x3d   : > { %5200 = vmatmul.mubr.msk.bf16.gmra.mrb[4].mxu0 %vm290_vm0, %v273_v15 }
  0x3e   : > { %5203 = vmatprep.mubr.msk.bf16.mxu0 %vm290_vm0, %v274_v16 }
  0x45   : > { %5204 = vmatmul.mubr.msk.bf16.gmra.mrb[8].mxu0 %vm290_vm0, %v275_v21 }
  0x46   : > { %5207 = vmatprep.mubr.msk.bf16.mxu0 %vm290_vm0, %v276_v22 }
  0x4d   : > { %5208 = vmatmul.mubr.msk.bf16.gmra.mrb[12].mxu0 %vm290_vm0, %v277_v25  ;;  %v6466_v25 = vld [vmem:[%s6443_s16 + $0x18] sm:$0xff] }
 0x108   : > { %v5197_v26 = vpop.f32.mrb[0].mxu0 }
 0x109   : > { %v349_v27 = vpop.f32.mrb[1].mxu0 }
 0x10a   : > { %v5198_v28 = vpop.f32.mrb[2].mxu0 }
 0x10b   : > { %v6359_v29 = vpack.c.bf16 %v5198_v28, %v5197_v26  ;;  %v352_v30 = vpop.f32.mrb[3].mxu0 }
 0x10c   : > { %v6361_v31 = vpack.c.bf16 %v352_v30, %v349_v27 }
 0x10e   : > { %428 = vrot.lane.b32.xlu0 %v6361_v31, %s6249_s11  ;;  %5227 = vmatprep.mubr.msk.bf16.mxu1 %vm444_vm1, %v6361_v31 }
 0x110   : > { %v5201_v32 = vpop.f32.mrb[4].mxu0 }
 0x111   : > { %v365_v33 = vpop.f32.mrb[5].mxu0 }
 0x112   : > { %430 = vrot.lane.b32.xlu0 %v6359_v29, %s6249_s11  ;;  %v5202_v34 = vpop.f32.mrb[6].mxu0 }
 0x113   : > { %v6369_v35 = vpack.c.bf16 %v5202_v34, %v5201_v32  ;;  %v368_v36 = vpop.f32.mrb[7].mxu0 }
 0x114   : > { %v6371_v37 = vpack.c.bf16 %v368_v36, %v365_v33 }
 0x116   : > { %432 = vrot.lane.b32.xlu1 %v6371_v37, %s6249_s11 }
 0x118   : > { %v5205_v38 = vpop.f32.mrb[8].mxu0 }
 0x119   : > { %v381_v39 = vpop.f32.mrb[9].mxu0 }
 0x11a   : > { %434 = vrot.lane.b32.xlu1 %v6369_v35, %s6249_s11  ;;  %v5206_v40 = vpop.f32.mrb[10].mxu0 }
 0x11b   : > { %v6377_v41 = vpack.c.bf16 %v5206_v40, %v5205_v38  ;;  %v384_v42 = vpop.f32.mrb[11].mxu0 }
 0x11c   : > { %v6379_v43 = vpack.c.bf16 %v384_v42, %v381_v39 }
 0x11e   : > { %438 = vrot.lane.b32.xlu1 %v6377_v41, %s6249_s11  ;;  %436 = vrot.lane.b32.xlu0 %v6379_v43, %s6249_s11 }
 0x120   : > { %v5209_v44 = vpop.f32.mrb[12].mxu0 }
 0x121   : > { %v397_v45 = vpop.f32.mrb[13].mxu0 }
 0x122   : > { %v5210_v46 = vpop.f32.mrb[14].mxu0 }
 0x123   : > { %v6385_v47 = vpack.c.bf16 %v5210_v46, %v5209_v44  ;;  %v400_v48 = vpop.f32.mrb[15].mxu0 }
 0x124   : > { %v6387_v49 = vpack.c.bf16 %v400_v48, %v397_v45  ;;  %v6478_v45 = vld [vmem:[%s6443_s16 + $0x30] sm:$0xff] }
 0x125   : > { %442 = vrot.lane.b32.xlu1 %v6385_v47, %s6249_s11 }
 0x126   : > { %440 = vrot.lane.b32.xlu0 %v6387_v49, %s6249_s11 }
 0x129   : > { %774 = vrot.lane.b32.xlu1 %v6361_v31, %s6250_s12 }
 0x12a   : > { %776 = vrot.lane.b32.xlu0 %v6359_v29, %s6250_s12 }
 0x12d   : > { %778 = vrot.lane.b32.xlu1 %v6371_v37, %s6250_s12 }
 0x12e   : > { %780 = vrot.lane.b32.xlu0 %v6369_v35, %s6250_s12 }
 0x131   : > { %782 = vrot.lane.b32.xlu1 %v6379_v43, %s6250_s12 }
 0x135   : > { %784 = vrot.lane.b32.xlu1 %v6377_v41, %s6250_s12 }
 0x139   : > { %788 = vrot.lane.b32.xlu1 %v6385_v47, %s6250_s12 }
 0x13d   : > { %786 = vrot.lane.b32.xlu1 %v6387_v49, %s6250_s12 }
 0x180   : > { %v429_v50 = vpop.permute.xlu0 %428 }
 0x181   : > { %5631 = vmatprep.subr.msk.bf16.mxu1 %vm444_vm1, %v429_v50  ;;  %v470_v51 = vsel %vm444_vm1, %v429_v50, 0 }
 0x182   : > { %5212 = vmatpush3.bf16.xpose.msra.mxu1 %v470_v51  ;;  %v6484_v51 = vld [vmem:[%s6443_s16 + $0x20] sm:$0xff] }
 0x184   : > { %v431_v52 = vpop.permute.xlu0 %430 }
 0x185   : > { %5632 = vmatprep.subr.msk.bf16.mxu1 %vm444_vm1, %v431_v52  ;;  %v473_v54 = vsel %vm444_vm1, %v431_v52, 0  ;;  %v6488_v52 = vld [vmem:[%s6443_s16 + $0x38] sm:$0xff] }
 0x188   : > { %v433_v53 = vpop.permute.xlu1 %432 }
 0x189   : > { %v476_v56 = vsel %vm444_vm1, %v433_v53, 0 }
 0x18a   : > { %5214 = vmatpush3.bf16.xpose.msra.mxu1 %v473_v54 }
 0x18b   : > { %5633 = vmatprep.subr.msk.bf16.mxu1 %vm444_vm1, %v433_v53 }
 0x18c   : > { %v435_v55 = vpop.permute.xlu1 %434 }
 0x18d   : > { %v479_v61 = vsel %vm444_vm1, %v435_v55, 0 }
 0x190   : > { %v439_v57 = vpop.permute.xlu1 %438  ;;  %v437_v58 = vpop.permute.xlu0 %436 }
 0x191   : > { %v482_v1 = vsel %vm444_vm1, %v437_v58, 0  ;;  %v485_v5 = vsel %vm444_vm1, %v439_v57, 0 }
 0x192   : > { %5216 = vmatpush3.bf16.xpose.msra.mxu1 %v476_v56 }
 0x193   : > { %5634 = vmatprep.subr.msk.bf16.mxu1 %vm444_vm1, %v435_v55 }
 0x197   : > { %v443_v59 = vpop.permute.xlu1 %442 }
 0x198   : > { %v441_v60 = vpop.permute.xlu0 %440  ;;  %v491_v9 = vsel %vm444_vm1, %v443_v59, 0 }
 0x199   : > { %v488_v8 = vsel %vm444_vm1, %v441_v60, 0 }
 0x19a   : > { %5218 = vmatpush3.bf16.xpose.msra.mxu1 %v479_v61 }
 0x19b   : > { %v775_v62 = vpop.permute.xlu1 %774  ;;  %5635 = vmatprep.subr.msk.bf16.mxu1 %vm444_vm1, %v437_v58  ;;  %v6501_v58 = vld [vmem:[%s6443_s16 + $0x28] sm:$0xff] }
 0x19c   : > { %5243 = vmatprep.subr.bf16.mxu0 %v775_v62  ;;  %v777_v63 = vpop.permute.xlu0 %776 }
 0x19d   : > { %5244 = vmatpush3.bf16.msra.mxu0 %v775_v62 }
 0x19e   : > { %5245 = vmatprep.subr.bf16.mxu0 %v777_v63 }
 0x19f   : > { %v779_v0 = vpop.permute.xlu1 %778 }
 0x1a0   : > { %v781_v3 = vpop.permute.xlu0 %780 }
 0x1a1   : > { %5246 = vmatpush3.bf16.msra.mxu0 %v777_v63  ;;  %v6511_v63 = vld [vmem:[%s6443_s16 + $0x40] sm:$0xff] }
 0x1a2   : > { %5220 = vmatpush3.bf16.xpose.msra.mxu1 %v482_v1  ;;  %5247 = vmatprep.subr.bf16.mxu0 %v779_v0 }
 0x1a3   : > { %5636 = vmatprep.subr.msk.bf16.mxu1 %vm444_vm1, %v439_v57  ;;  %v783_v2 = vpop.permute.xlu1 %782  ;;  %v6497_v57 = vld [vmem:[%s6443_s16 + $0x50] sm:$0xff] }
 0x1a5   : > { %5248 = vmatpush3.bf16.msra.mxu0 %v779_v0  ;;  %v6515_v0 = vld [vmem:[%s6443_s16 + $0x58] sm:$0xff] }
 0x1a6   : > { %5249 = vmatprep.subr.bf16.mxu0 %v781_v3 }
 0x1a7   : > { %v785_v4 = vpop.permute.xlu1 %784 }
 0x1a9   : > { %5250 = vmatpush3.bf16.msra.mxu0 %v781_v3 }
 0x1aa   : > { %5222 = vmatpush3.bf16.xpose.msra.mxu1 %v485_v5  ;;  %5251 = vmatprep.subr.bf16.mxu0 %v783_v2  ;;  %v6525_v5 = vld [vmem:[%s6443_s16 + $0x70] sm:$0xff] }
 0x1ab   : > { %v789_v6 = vpop.permute.xlu1 %788  ;;  %5637 = vmatprep.subr.msk.bf16.mxu1 %vm444_vm1, %v441_v60 }
 0x1ad   : > { %5252 = vmatpush3.bf16.msra.mxu0 %v783_v2 }
 0x1ae   : > { %5253 = vmatprep.subr.bf16.mxu0 %v785_v4 }
 0x1af   : > { %v787_v7 = vpop.permute.xlu1 %786 }
 0x1b1   : > { %5254 = vmatpush3.bf16.msra.mxu0 %v785_v4 }
 0x1b2   : > { %5224 = vmatpush3.bf16.xpose.msra.mxu1 %v488_v8  ;;  %5255 = vmatprep.subr.bf16.mxu0 %v787_v7 }
 0x1b3   : > { %5638 = vmatprep.subr.msk.bf16.mxu1 %vm444_vm1, %v443_v59 }
 0x1b5   : > { %5256 = vmatpush3.bf16.msra.mxu0 %v787_v7 }
 0x1b6   : > { %5257 = vmatprep.subr.bf16.mxu0 %v789_v6 }
 0x1b9   : > { %5258 = vmatpush3.bf16.msra.mxu0 %v789_v6  ;;  %v6529_v6 = vld [vmem:[%s6443_s16 + $0x48] sm:$0xff] }
 0x1ba   : > { %5226 = vmatpush3.bf16.xpose.msra.mxu1 %v491_v9 }
 0x1c1   : > { %5228 = vmatmul.mubr.msk.bf16.vlgmr.msra.gmra.mrb[0].mxu1 %vm444_vm1, %v6359_v29 }
 0x1c2   : > { %5231 = vmatprep.mubr.msk.bf16.mxu1 %vm444_vm1, %v6371_v37 }
 0x1c9   : > { %5232 = vmatmul.mubr.msk.bf16.gmra.mrb[4].mxu1 %vm444_vm1, %v6369_v35 }
 0x1ca   : > { %5235 = vmatprep.mubr.msk.bf16.mxu1 %vm444_vm1, %v6379_v43 }
 0x1d1   : > { %5236 = vmatmul.mubr.msk.bf16.gmra.mrb[8].mxu1 %vm444_vm1, %v6377_v41 }
 0x1d2   : > { %5239 = vmatprep.mubr.msk.bf16.mxu1 %vm444_vm1, %v6387_v49 }
 0x1d9   : > { %5240 = vmatmul.mubr.msk.bf16.gmra.mrb[12].mxu1 %vm444_vm1, %v6385_v47 }
 0x294   : > { %v5229_v10 = vpop.f32.mrb[0].mxu1 }
 0x295   : > { %v592_v12 = vmul.f32 0.25, %v5229_v10  ;;  %v527_v13 = vpop.f32.mrb[1].mxu1 }
 0x296   : > { %v5230_v14 = vpop.f32.mrb[2].mxu1  ;;  %v590_v15 = vmul.f32 0.25, %v527_v13  ;;  %v6543_v13 = vld [vmem:[%s6443_s16 + $0x78] sm:$0xff] }
 0x297   : > { %v530_v16 = vpop.f32.mrb[3].mxu1  ;;  %v6449_v17 = vadd.f32 %v592_v12, %v6446_v11  ;;  %v593_v22 = vmul.f32 0.25, %v5230_v14  ;;  %v6539_v12 = vld [vmem:[%s6443_s16 + $0x60] sm:$0xff] }
 0x298   : > { %v591_v19 = vmul.f32 0.25, %v530_v16  ;;  %v6462_v23 = vadd.f32 %v590_v15, %v6455_v20 }
 0x299   : > { %626 = vmax.xlane.f32.xlu0 %v6449_v17  ;;  %v6470_v30 = vadd.f32 %v593_v22, %v6466_v25 }
 0x29a   : > { %v6459_v21 = vadd.f32 %v591_v19, %v6452_v18  ;;  %v6554_v19 = vld [vmem:[%s6443_s16 + $0x68] sm:$0xff] }
 0x29c   : > { %624 = vmax.xlane.f32.xlu1 %v6459_v21  ;;  %v5233_v24 = vpop.f32.mrb[4].mxu1 }
 0x29d   : > { %622 = vmax.xlane.f32.xlu0 %v6462_v23  ;;  %v543_v26 = vpop.f32.mrb[5].mxu1  ;;  %v596_v44 = vmul.f32 0.25, %v5233_v24 }
 0x29e   : > { %v5234_v27 = vpop.f32.mrb[6].mxu1  ;;  %v594_v46 = vmul.f32 0.25, %v543_v26 }
 0x29f   : > { %v546_v28 = vpop.f32.mrb[7].mxu1  ;;  %v6481_v48 = vadd.f32 %v596_v44, %v6478_v45  ;;  %v597_v50 = vmul.f32 0.25, %v5234_v27 }
 0x2a0   : > { %v6491_v54 = vadd.f32 %v594_v46, %v6484_v51  ;;  %v595_v55 = vmul.f32 0.25, %v546_v28 }
 0x2a1   : > { %628 = vmax.xlane.f32.xlu0 %v6470_v30  ;;  %v6494_v56 = vadd.f32 %v597_v50, %v6488_v52 }
 0x2a2   : > { %v6508_v62 = vadd.f32 %v595_v55, %v6501_v58 }
 0x2a4   : > { %v5237_v32 = vpop.f32.mrb[8].mxu1 }
 0x2a5   : > { %v559_v33 = vpop.f32.mrb[9].mxu1  ;;  %v600_v53 = vmul.f32 0.25, %v5237_v32 }
 0x2a6   : > { %v5238_v34 = vpop.f32.mrb[10].mxu1  ;;  %v598_v59 = vmul.f32 0.25, %v559_v33 }
 0x2a7   : > { %v562_v36 = vpop.f32.mrb[11].mxu1  ;;  %v6505_v60 = vadd.f32 %v600_v53, %v6497_v57  ;;  %v601_v61 = vmul.f32 0.25, %v5238_v34 }
 0x2a8   : > { %v6519_v2 = vadd.f32 %v598_v59, %v6511_v63  ;;  %v599_v3 = vmul.f32 0.25, %v562_v36 }
 0x2a9   : > { %v6522_v4 = vadd.f32 %v601_v61, %v6515_v0 }
 0x2aa   : > { %v6536_v10 = vadd.f32 %v599_v3, %v6529_v6 }
 0x2ac   : > { %v5241_v38 = vpop.f32.mrb[12].mxu1 }
 0x2ad   : > { %913 = vrot.lane.b32.xlu1 %v6359_v29, %s6251_s17  ;;  %v575_v39 = vpop.f32.mrb[13].mxu1  ;;  %v604_v1 = vmul.f32 0.25, %v5241_v38 }
 0x2ae   : > { %v5242_v40 = vpop.f32.mrb[14].mxu1  ;;  %v602_v7 = vmul.f32 0.25, %v575_v39 }
 0x2af   : > { %v578_v42 = vpop.f32.mrb[15].mxu1  ;;  %v6533_v8 = vadd.f32 %v604_v1, %v6525_v5  ;;  %v605_v9 = vmul.f32 0.25, %v5242_v40 }
 0x2b0   : > { %v6547_v14 = vadd.f32 %v602_v7, %v6539_v12  ;;  %v603_v15 = vmul.f32 0.25, %v578_v42 }
 0x2b1   : > { %v6550_v16 = vadd.f32 %v605_v9, %v6543_v13 }
 0x2b2   : > { %v6558_v22 = vadd.f32 %v603_v15, %v6554_v19 }
 0x2b7   : > { %911 = vrot.lane.b32.xlu0 %v6361_v31, %s6251_s17 }
 0x2d1   : > { %634 = vmax.xlane.f32.xlu1 %v6481_v48 }
 0x2d5   : > { %630 = vmax.xlane.f32.xlu1 %v6491_v54 }
 0x2d6   : > { %636 = vmax.xlane.f32.xlu0 %v6494_v56 }
 0x2d9   : > { %642 = vmax.xlane.f32.xlu1 %v6505_v60 }
 0x2da   : > { %632 = vmax.xlane.f32.xlu0 %v6508_v62 }
 0x2dd   : > { %638 = vmax.xlane.f32.xlu1 %v6519_v2 }
 0x2de   : > { %644 = vmax.xlane.f32.xlu0 %v6522_v4 }
 0x2e1   : > { %650 = vmax.xlane.f32.xlu1 %v6533_v8 }
 0x2e2   : > { %640 = vmax.xlane.f32.xlu0 %v6536_v10 }
 0x2e5   : > { %646 = vmax.xlane.f32.xlu1 %v6547_v14 }
 0x2e6   : > { %652 = vmax.xlane.f32.xlu0 %v6550_v16 }
 0x2ea   : > { %648 = vmax.xlane.f32.xlu0 %v6558_v22 }
 0x2f6   : > { %915 = vrot.lane.b32.xlu1 %v6371_v37, %s6251_s17 }
 0x326   : > { %v627_v24 = vpop.xlane.xlu0 %626 }
 0x327   : > { %v656_v26 = vsub.f32 %v6449_v17, %v627_v24 }
 0x329   : > { %v674_v27 = vmul.f32 1.442695, %v656_v26  ;;  %v625_v33 = vpop.xlane.xlu1 %624 }
 0x32a   : > { %v623_v28 = vpop.xlane.xlu0 %622  ;;  %v655_v38 = vsub.f32 %v6459_v21, %v625_v33 }
 0x32b   : > { %5790 = vpow2.f32 %v674_v27  ;;  %v654_v32 = vsub.f32 %v6462_v23, %v623_v28 }
 0x32c   : > { %v672_v44 = vmul.f32 1.442695, %v655_v38 }
 0x32d   : > { %v670_v34 = vmul.f32 1.442695, %v654_v32  ;;  %v6583_v46 = vpop.permute.xlu1 %913 }
 0x32e   : > { %v629_v36 = vpop.xlane.xlu0 %628 }
 0x32f   : > { %5792 = vpow2.f32 %v670_v34  ;;  %v657_v39 = vsub.f32 %v6470_v30, %v629_v36 }
 0x331   : > { %v676_v40 = vmul.f32 1.442695, %v657_v39 }
 0x332   : > { %v6567_v42 = vpop.permute.xlu0 %911 }
 0x333   : > { %5794 = vpow2.f32 %v676_v40  ;;  %5639 = vmatprep.subr.msk.bf16.mxu0 %vm444_vm1, %v6567_v42 }
 0x334   : > { %5796 = vpow2.f32 %v672_v44 }
 0x335   : > { %v6571_v17 = vpop.eup %5790 }
 0x336   : > { %706 = vadd.xlane.f32.xlu0 %v6571_v17 }
 0x339   : > { %v6574_v23 = vpop.eup %5792 }
 0x33a   : > { %702 = vadd.xlane.f32.xlu1 %v6574_v23 }
 0x33d   : > { %v6577_v21 = vpop.eup %5794 }
 0x33e   : > { %708 = vadd.xlane.f32.xlu0 %v6577_v21  ;;  %v6580_v30 = vpop.eup %5796 }
 0x342   : > { %704 = vadd.xlane.f32.xlu0 %v6580_v30 }
 0x35e   : > { %v635_v50 = vpop.xlane.xlu1 %634 }
 0x35f   : > { %v660_v53 = vsub.f32 %v6481_v48, %v635_v50 }
 0x361   : > { %v682_v55 = vmul.f32 1.442695, %v660_v53 }
 0x362   : > { %v631_v59 = vpop.xlane.xlu1 %630 }
 0x363   : > { %5798 = vpow2.f32 %v682_v55  ;;  %v658_v61 = vsub.f32 %v6491_v54, %v631_v59  ;;  %v637_v1 = vpop.xlane.xlu0 %636 }
 0x364   : > { %v661_v3 = vsub.f32 %v6494_v56, %v637_v1 }
 0x365   : > { %v678_v7 = vmul.f32 1.442695, %v658_v61 }
 0x366   : > { %v684_v9 = vmul.f32 1.442695, %v661_v3  ;;  %v643_v34 = vpop.xlane.xlu1 %642 }
 0x367   : > { %5800 = vpow2.f32 %v678_v7  ;;  %v633_v15 = vpop.xlane.xlu0 %632  ;;  %v664_v38 = vsub.f32 %v6505_v60, %v643_v34 }
 0x368   : > { %v659_v24 = vsub.f32 %v6508_v62, %v633_v15  ;;  %5802 = vpow2.f32 %v684_v9 }
 0x369   : > { %v690_v44 = vmul.f32 1.442695, %v664_v38 }
 0x36a   : > { %v680_v26 = vmul.f32 1.442695, %v659_v24  ;;  %v639_v39 = vpop.xlane.xlu1 %638 }
 0x36b   : > { %v645_v62 = vpop.xlane.xlu0 %644  ;;  %v662_v50 = vsub.f32 %v6519_v2, %v639_v39 }
 0x36c   : > { %5804 = vpow2.f32 %v680_v26  ;;  %v665_v55 = vsub.f32 %v6522_v4, %v645_v62 }
 0x36d   : > { %v6589_v27 = vpop.eup %5798  ;;  %v686_v53 = vmul.f32 1.442695, %v662_v50 }
 0x36e   : > { %714 = vadd.xlane.f32.xlu0 %v6589_v27  ;;  %v651_v59 = vpop.xlane.xlu1 %650  ;;  %v692_v61 = vmul.f32 1.442695, %v665_v55 }
 0x36f   : > { %v641_v28 = vpop.xlane.xlu0 %640  ;;  %v668_v60 = vsub.f32 %v6533_v8, %v651_v59 }
 0x370   : > { %v663_v1 = vsub.f32 %v6536_v10, %v641_v28 }
 0x371   : > { %v6592_v48 = vpop.eup %5800  ;;  %v698_v9 = vmul.f32 1.442695, %v668_v60 }
 0x372   : > { %710 = vadd.xlane.f32.xlu0 %v6592_v48  ;;  %v6595_v54 = vpop.eup %5802  ;;  %v647_v7 = vpop.xlane.xlu1 %646 }
 0x373   : > { %v653_v32 = vpop.xlane.xlu0 %652  ;;  %v666_v4 = vsub.f32 %v6547_v14, %v647_v7 }
 0x374   : > { %v669_v8 = vsub.f32 %v6550_v16, %v653_v32 }
 0x375   : > { %v694_v10 = vmul.f32 1.442695, %v666_v4 }
 0x376   : > { %v6597_v56 = vpop.eup %5804  ;;  %716 = vadd.xlane.f32.xlu0 %v6595_v54  ;;  %v700_v26 = vmul.f32 1.442695, %v669_v8  ;;  %v916_v32 = vpop.permute.xlu1 %915 }
 0x377   : > { %712 = vadd.xlane.f32.xlu1 %v6597_v56  ;;  %v649_v33 = vpop.xlane.xlu0 %648 }
 0x378   : > { %v667_v36 = vsub.f32 %v6558_v22, %v649_v33  ;;  %v688_v22 = vmul.f32 1.442695, %v663_v1 }
 0x37a   : > { %v696_v40 = vmul.f32 1.442695, %v667_v36 }
 0x37c   : > { %5806 = vpow2.f32 %v696_v40 }
 0x37d   : > { %5808 = vpow2.f32 %v690_v44 }
 0x37e   : > { %5810 = vpow2.f32 %v686_v53 }
 0x37f   : > { %5812 = vpow2.f32 %v692_v61 }
 0x380   : > { %5814 = vpow2.f32 %v688_v22  ;;  %v952_v22 = vsel %vm444_vm1, %v6567_v42, 0  ;;  %v958_v42 = vsel %vm444_vm1, %v916_v32, 0 }
 0x381   : > { %5816 = vpow2.f32 %v698_v9 }
 0x382   : > { %5818 = vpow2.f32 %v694_v10 }
 0x383   : > { %5820 = vpow2.f32 %v700_v26 }
 0x386   : > { %v6612_v3 = vpop.eup %5806 }
 0x387   : > { %v6616_v2 = vpop.eup %5808 }
 0x388   : > { %917 = vrot.lane.b32.xlu1 %v6369_v35, %s6251_s17  ;;  %v6620_v15 = vpop.eup %5810 }
 0x389   : > { %v6624_v24 = vpop.eup %5812 }
 0x38a   : > { %v6627_v62 = vpop.eup %5814 }
 0x38b   : > { %v6632_v14 = vpop.eup %5816 }
 0x38c   : > { %919 = vrot.lane.b32.xlu0 %v6379_v43, %s6251_s17  ;;  %v6637_v16 = vpop.eup %5818 }
 0x38d   : > { %v6642_v28 = vpop.eup %5820 }
 0x390   : > { %921 = vrot.lane.b32.xlu0 %v6377_v41, %s6251_s17 }
 0x3ac   : > { %728 = vadd.xlane.f32.xlu1 %v6612_v3 }
 0x3af   : > { %722 = vadd.xlane.f32.xlu0 %v6616_v2 }
 0x3b3   : > { %718 = vadd.xlane.f32.xlu0 %v6620_v15 }
 0x3b7   : > { %724 = vadd.xlane.f32.xlu0 %v6624_v24 }
 0x3bb   : > { %720 = vadd.xlane.f32.xlu0 %v6627_v62 }
 0x3bd   : > { %925 = vrot.lane.b32.xlu1 %v6385_v47, %s6251_s17 }
 0x3bf   : > { %730 = vadd.xlane.f32.xlu0 %v6632_v14 }
 0x3c1   : > { %903 = vrot.lane.b32.xlu1 %v6379_v43, %s6252_s18 }
 0x3c3   : > { %726 = vadd.xlane.f32.xlu0 %v6637_v16  ;;  %v707_v33 = vpop.xlane.xlu0 %706 }
 0x3c5   : > { %907 = vrot.lane.b32.xlu1 %v6387_v49, %s6252_s18 }
 0x3c7   : > { %732 = vadd.xlane.f32.xlu0 %v6642_v28  ;;  %v703_v34 = vpop.xlane.xlu1 %702 }
 0x3c9   : > { %1258 = vrot.lane.b32.xlu1 %v6359_v29, %s6253_s19 }
 0x3cb   : > { %v709_v36 = vpop.xlane.xlu0 %708 }
 0x3cc   : > { %5822 = vrcp.f32 %v709_v36 }
 0x3cd   : > { %5824 = vrcp.f32 %v703_v34 }
 0x3ce   : > { %5826 = vrcp.f32 %v707_v33 }
 0x3cf   : > { %v705_v38 = vpop.xlane.xlu0 %704 }
 0x3d0   : > { %5828 = vrcp.f32 %v705_v38 }
 0x3d6   : > { %v5823_v39 = vpop.eup %5822 }
 0x3d7   : > { %v5825_v40 = vpop.eup %5824  ;;  %v753_v53 = vmul.f32 %v5823_v39, %v6577_v21 }
 0x3d8   : > { %v5827_v44 = vpop.eup %5826  ;;  %v750_v55 = vmul.f32 %v5825_v40, %v6574_v23 }
 0x3d9   : > { %v752_v61 = vmul.f32 %v5827_v44, %v6571_v17  ;;  %v955_v17 = vsel %vm444_vm1, %v6583_v46, 0 }
 0x3da   : > { %v5829_v50 = vpop.eup %5828 }
 0x3db   : > { %v751_v59 = vmul.f32 %v5829_v50, %v6580_v30  ;;  %v767_v60 = vpack.c.bf16 %v753_v53, %v752_v61 }
 0x3dd   : > { %923 = vrot.lane.b32.xlu0 %v6387_v49, %s6251_s17  ;;  %v766_v1 = vpack.c.bf16 %v751_v59, %v750_v55 }
 0x3df   : > { %5259 = vmatprep.mubr.bf16.mxu0 %v766_v1 }
 0x3e0   : > { %5260 = vmatmul.mubr.bf16.vlgmr.msra.gmra.mrb[16].mxu0 %v767_v60 }
 0x3e1   : > { %5276 = vmatpush3.bf16.xpose.msra.mxu0 %v952_v22  ;;  %895 = vrot.lane.b32.xlu0 %v6361_v31, %s6252_s18 }
 0x3e2   : > { %5640 = vmatprep.subr.msk.bf16.mxu0 %vm444_vm1, %v6583_v46 }
 0x3e5   : > { %897 = vrot.lane.b32.xlu0 %v6359_v29, %s6252_s18 }
 0x3e9   : > { %5278 = vmatpush3.bf16.xpose.msra.mxu0 %v955_v17  ;;  %899 = vrot.lane.b32.xlu0 %v6371_v37, %s6252_s18 }
 0x3ea   : > { %5641 = vmatprep.subr.msk.bf16.mxu0 %vm444_vm1, %v916_v32 }
 0x3ed   : > { %901 = vrot.lane.b32.xlu0 %v6369_v35, %s6252_s18 }
 0x3f1   : > { %5280 = vmatpush3.bf16.xpose.msra.mxu0 %v958_v42  ;;  %905 = vrot.lane.b32.xlu0 %v6377_v41, %s6252_s18 }
 0x3f5   : > { %909 = vrot.lane.b32.xlu0 %v6385_v47, %s6252_s18 }
 0x3f9   : > { %1256 = vrot.lane.b32.xlu0 %v6361_v31, %s6253_s19 }
 0x3fb   : > { %v715_v29 = vpop.xlane.xlu0 %714 }
 0x3fc   : > { %5830 = vrcp.f32 %v715_v29 }
 0x3fd   : > { %1260 = vrot.lane.b32.xlu0 %v6371_v37, %s6253_s19 }
 0x3ff   : > { %v711_v23 = vpop.xlane.xlu0 %710 }
 0x400   : > { %5832 = vrcp.f32 %v711_v23 }
 0x401   : > { %1262 = vrot.lane.b32.xlu0 %v6369_v35, %s6253_s19 }
 0x403   : > { %v717_v21 = vpop.xlane.xlu0 %716 }
 0x404   : > { %5834 = vrcp.f32 %v717_v21  ;;  %v713_v30 = vpop.xlane.xlu1 %712 }
 0x405   : > { %5836 = vrcp.f32 %v713_v30 }
 0x406   : > { %v5831_v37 = vpop.eup %5830 }
 0x407   : > { %v920_v31 = vpop.permute.xlu0 %919  ;;  %v756_v33 = vmul.f32 %v5831_v37, %v6589_v27 }
 0x408   : > { %v918_v46 = vpop.permute.xlu1 %917  ;;  %v964_v32 = vsel %vm444_vm1, %v920_v31, 0 }
 0x409   : > { %5642 = vmatprep.subr.msk.bf16.mxu0 %vm444_vm1, %v918_v46  ;;  %v961_v7 = vsel %vm444_vm1, %v918_v46, 0 }
 0x40a   : > { %5282 = vmatpush3.bf16.xpose.msra.mxu0 %v961_v7  ;;  %v5833_v9 = vpop.eup %5832 }
 0x40b   : > { %5643 = vmatprep.subr.msk.bf16.mxu0 %vm444_vm1, %v920_v31  ;;  %v754_v8 = vmul.f32 %v5833_v9, %v6592_v48  ;;  %v922_v34 = vpop.permute.xlu0 %921 }
 0x40c   : > { %v967_v39 = vsel %vm444_vm1, %v922_v34, 0 }
 0x40e   : > { %v5835_v4 = vpop.eup %5834 }
 0x40f   : > { %v5837_v10 = vpop.eup %5836  ;;  %v757_v35 = vmul.f32 %v5835_v4, %v6595_v54 }
 0x410   : > { %v755_v26 = vmul.f32 %v5837_v10, %v6597_v56 }
 0x411   : > { %v769_v38 = vpack.c.bf16 %v757_v35, %v756_v33 }
 0x412   : > { %5284 = vmatpush3.bf16.xpose.msra.mxu0 %v964_v32  ;;  %v768_v36 = vpack.c.bf16 %v755_v26, %v754_v8 }
 0x413   : > { %5644 = vmatprep.subr.msk.bf16.mxu0 %vm444_vm1, %v922_v34 }
 0x414   : > { %5263 = vmatprep.mubr.bf16.mxu0 %v768_v36 }
 0x415   : > { %5264 = vmatmul.mubr.bf16.gmra.mrb[20].mxu0 %v769_v38 }
 0x41a   : > { %5286 = vmatpush3.bf16.xpose.msra.mxu0 %v967_v39 }
 0x439   : > { %v729_v27 = vpop.xlane.xlu1 %728 }
 0x43c   : > { %v723_v54 = vpop.xlane.xlu0 %722 }
 0x43d   : > { %v926_v7 = vpop.permute.xlu1 %925 }
 0x43e   : > { %v973_v8 = vsel %vm444_vm1, %v926_v7, 0 }
 0x440   : > { %v719_v40 = vpop.xlane.xlu0 %718 }
 0x441   : > { %v904_v33 = vpop.permute.xlu1 %903 }
 0x444   : > { %v725_v48 = vpop.xlane.xlu0 %724 }
 0x445   : > { %5838 = vrcp.f32 %v725_v48  ;;  %v908_v34 = vpop.permute.xlu1 %907 }
 0x446   : > { %5840 = vrcp.f32 %v719_v40 }
 0x447   : > { %5842 = vrcp.f32 %v723_v54 }
 0x448   : > { %v721_v56 = vpop.xlane.xlu0 %720 }
 0x449   : > { %5844 = vrcp.f32 %v721_v56 }
 0x44a   : > { %5846 = vrcp.f32 %v729_v27 }
 0x44c   : > { %v731_v44 = vpop.xlane.xlu0 %730 }
 0x44f   : > { %v5839_v50 = vpop.eup %5838 }
 0x450   : > { %v727_v53 = vpop.xlane.xlu0 %726  ;;  %v5841_v55 = vpop.eup %5840  ;;  %v761_v1 = vmul.f32 %v5839_v50, %v6624_v24 }
 0x451   : > { %5848 = vrcp.f32 %v727_v53  ;;  %v5843_v59 = vpop.eup %5842  ;;  %v758_v22 = vmul.f32 %v5841_v55, %v6620_v15 }
 0x452   : > { %5850 = vrcp.f32 %v731_v44  ;;  %v760_v42 = vmul.f32 %v5843_v59, %v6616_v2 }
 0x453   : > { %v5845_v61 = vpop.eup %5844 }
 0x454   : > { %v733_v60 = vpop.xlane.xlu0 %732  ;;  %v759_v17 = vmul.f32 %v5845_v61, %v6627_v62  ;;  %v771_v23 = vpack.c.bf16 %v761_v1, %v760_v42  ;;  %v5847_v30 = vpop.eup %5846 }
 0x455   : > { %5852 = vrcp.f32 %v733_v60  ;;  %v763_v2 = vmul.f32 %v5847_v30, %v6612_v3 }
 0x456   : > { %v770_v29 = vpack.c.bf16 %v759_v17, %v758_v22 }
 0x458   : > { %5267 = vmatprep.mubr.bf16.mxu0 %v770_v29  ;;  %v924_v21 = vpop.permute.xlu0 %923 }
 0x459   : > { %5268 = vmatmul.mubr.bf16.gmra.mrb[24].mxu0 %v771_v23  ;;  %5645 = vmatprep.subr.msk.bf16.mxu0 %vm444_vm1, %v924_v21  ;;  %v970_v46 = vsel %vm444_vm1, %v924_v21, 0 }
 0x45a   : > { %5288 = vmatpush3.bf16.xpose.msra.mxu0 %v970_v46 }
 0x45b   : > { %v5849_v24 = vpop.eup %5848  ;;  %5646 = vmatprep.subr.msk.bf16.mxu0 %vm444_vm1, %v926_v7 }
 0x45c   : > { %v896_v15 = vpop.permute.xlu0 %895  ;;  %v762_v62 = vmul.f32 %v5849_v24, %v6637_v16  ;;  %v5851_v31 = vpop.eup %5850 }
 0x45d   : > { %v764_v10 = vmul.f32 %v5851_v31, %v6632_v14 }
 0x45e   : > { %v772_v37 = vpack.c.bf16 %v763_v2, %v762_v62 }
 0x45f   : > { %v5853_v9 = vpop.eup %5852 }
 0x460   : > { %5271 = vmatprep.mubr.bf16.mxu0 %v772_v37  ;;  %v898_v4 = vpop.permute.xlu0 %897  ;;  %v765_v35 = vmul.f32 %v5853_v9, %v6642_v28  ;;  %v1259_v28 = vpop.permute.xlu1 %1258 }
 0x462   : > { %5290 = vmatpush3.bf16.xpose.msra.mxu0 %v973_v8  ;;  %v773_v26 = vpack.c.bf16 %v765_v35, %v764_v10 }
 0x464   : > { %5272 = vmatmul.mubr.bf16.gmra.mrb[28].mxu0 %v773_v26  ;;  %v900_v32 = vpop.permute.xlu0 %899 }
 0x465   : > { %5291 = vmatprep.mubr.msk.bf16.mxu0 %vm444_vm1, %v896_v15 }
 0x468   : > { %v902_v16 = vpop.permute.xlu0 %901 }
 0x46c   : > { %5292 = vmatmul.mubr.msk.bf16.vlgmr.msra.gmra.mrb[32].mxu0 %vm444_vm1, %v898_v4  ;;  %v906_v3 = vpop.permute.xlu0 %905 }
 0x46d   : > { %5295 = vmatprep.mubr.msk.bf16.mxu0 %vm444_vm1, %v900_v32 }
 0x470   : > { %v910_v36 = vpop.permute.xlu0 %909 }
 0x474   : > { %5296 = vmatmul.mubr.msk.bf16.gmra.mrb[36].mxu0 %vm444_vm1, %v902_v16  ;;  %v1257_v14 = vpop.permute.xlu0 %1256 }
 0x475   : > { %5299 = vmatprep.mubr.msk.bf16.mxu0 %vm444_vm1, %v904_v33  ;;  %5307 = vmatprep.subr.bf16.mxu0 %v1257_v14 }
 0x476   : > { %5615 = vmatprep.subr.bf16.mxu1 %v1257_v14  ;;  %5308 = vmatpush3.bf16.msra.mxu0 %v1257_v14 }
 0x477   : > { %5623 = vmatpush3.bf16.msra.mxu1 %v1257_v14  ;;  %5309 = vmatprep.subr.bf16.mxu0 %v1259_v28 }
 0x478   : > { %5616 = vmatprep.subr.bf16.mxu1 %v1259_v28  ;;  %v1261_v38 = vpop.permute.xlu0 %1260 }
 0x47a   : > { %5310 = vmatpush3.bf16.msra.mxu0 %v1259_v28 }
 0x47b   : > { %5624 = vmatpush3.bf16.msra.mxu1 %v1259_v28  ;;  %5311 = vmatprep.subr.bf16.mxu0 %v1261_v38 }
 0x47c   : > { %5617 = vmatprep.subr.bf16.mxu1 %v1261_v38  ;;  %5300 = vmatmul.mubr.msk.bf16.gmra.mrb[40].mxu0 %vm444_vm1, %v906_v3  ;;  %v1263_v39 = vpop.permute.xlu0 %1262 }
 0x47d   : > { %5303 = vmatprep.mubr.msk.bf16.mxu0 %vm444_vm1, %v908_v34 }
 0x47e   : > { %5312 = vmatpush3.bf16.msra.mxu0 %v1261_v38 }
 0x47f   : > { %5625 = vmatpush3.bf16.msra.mxu1 %v1261_v38  ;;  %5313 = vmatprep.subr.bf16.mxu0 %v1263_v39 }
 0x480   : > { %5618 = vmatprep.subr.bf16.mxu1 %v1263_v39 }
 0x482   : > { %5314 = vmatpush3.bf16.msra.mxu0 %v1263_v39 }
 0x483   : > { %5626 = vmatpush3.bf16.msra.mxu1 %v1263_v39 }
 0x484   : > { %5304 = vmatmul.mubr.msk.bf16.gmra.mrb[44].mxu0 %vm444_vm1, %v910_v36 }
 0x4b3   : > { %v6709_v54 = vpop.f32.mrb[16].mxu0 }
 0x4b4   : > { %v6711_v40 = vpop.f32.mrb[17].mxu0 }
 0x4b5   : > { %v6713_v48 = vpop.f32.mrb[18].mxu0 }
 0x4b6   : > { %v6715_v56 = vpop.f32.mrb[19].mxu0 }
 0x4e8   : > { %v6717_v27 = vpop.f32.mrb[20].mxu0 }
 0x4e9   : > { %v6719_v44 = vpop.f32.mrb[21].mxu0 }
 0x4ea   : > { %v6721_v50 = vpop.f32.mrb[22].mxu0 }
 0x4eb   : > { %v6723_v53 = vpop.f32.mrb[23].mxu0 }
 0x52c   : > { %v6725_v55 = vpop.f32.mrb[24].mxu0 }
 0x52d   : > { %v6727_v59 = vpop.f32.mrb[25].mxu0 }
 0x52e   : > { %v6729_v61 = vpop.f32.mrb[26].mxu0 }
 0x52f   : > { %v6731_v1 = vpop.f32.mrb[27].mxu0 }
 0x537   : > { %v6733_v60 = vpop.f32.mrb[28].mxu0 }
 0x538   : > { %v6735_v22 = vpop.f32.mrb[29].mxu0 }
 0x539   : > { %v6737_v17 = vpop.f32.mrb[30].mxu0 }
 0x53a   : > { %v6739_v42 = vpop.f32.mrb[31].mxu0 }
 0x53f   : > { %v5293_v29 = vpop.f32.mrb[32].mxu0 }
 0x540   : > { %v1074_v23 = vmul.f32 0.25, %v5293_v29  ;;  %v1009_v21 = vpop.f32.mrb[33].mxu0 }
 0x541   : > { %v1072_v30 = vmul.f32 0.25, %v1009_v21  ;;  %v5294_v46 = vpop.f32.mrb[34].mxu0 }
 0x542   : > { %v1012_v7 = vpop.f32.mrb[35].mxu0  ;;  %v6742_v24 = vadd.f32 %v1074_v23, %v6446_v11  ;;  %v1075_v15 = vmul.f32 0.25, %v5294_v46 }
 0x543   : > { %v1073_v62 = vmul.f32 0.25, %v1012_v7  ;;  %v6745_v2 = vadd.f32 %v1072_v30, %v6455_v20 }
 0x544   : > { %1108 = vmax.xlane.f32.xlu0 %v6742_v24  ;;  %v6753_v9 = vadd.f32 %v1075_v15, %v6466_v25 }
 0x545   : > { %1104 = vmax.xlane.f32.xlu1 %v6745_v2  ;;  %v6750_v31 = vadd.f32 %v1073_v62, %v6452_v18 }
 0x547   : > { %v5297_v37 = vpop.f32.mrb[36].mxu0 }
 0x548   : > { %v1078_v4 = vmul.f32 0.25, %v5297_v37  ;;  %1106 = vmax.xlane.f32.xlu0 %v6750_v31  ;;  %v1025_v11 = vpop.f32.mrb[37].mxu0 }
 0x549   : > { %1110 = vmax.xlane.f32.xlu1 %v6753_v9  ;;  %v5298_v10 = vpop.f32.mrb[38].mxu0  ;;  %v1076_v20 = vmul.f32 0.25, %v1025_v11 }
 0x54a   : > { %v1079_v35 = vmul.f32 0.25, %v5298_v10  ;;  %v1028_v8 = vpop.f32.mrb[39].mxu0  ;;  %v1094_v26 = vadd.f32 %v1078_v4, %v6478_v45 }
 0x54b   : > { %v1077_v32 = vmul.f32 0.25, %v1028_v8  ;;  %v6763_v25 = vadd.f32 %v1076_v20, %v6484_v51 }
 0x54c   : > { %1116 = vmax.xlane.f32.xlu0 %v1094_v26  ;;  %v6759_v18 = vadd.f32 %v1079_v35, %v6488_v52 }
 0x54d   : > { %v6767_v34 = vadd.f32 %v1077_v32, %v6501_v58 }
 0x54e   : > { %1118 = vmax.xlane.f32.xlu1 %v6759_v18 }
 0x54f   : > { %v5301_v16 = vpop.f32.mrb[40].mxu0 }
 0x550   : > { %v1082_v33 = vmul.f32 0.25, %v5301_v16  ;;  %1112 = vmax.xlane.f32.xlu0 %v6763_v25  ;;  %v1041_v3 = vpop.f32.mrb[41].mxu0 }
 0x551   : > { %v5302_v36 = vpop.f32.mrb[42].mxu0  ;;  %v1080_v45 = vmul.f32 0.25, %v1041_v3 }
 0x552   : > { %v1083_v14 = vmul.f32 0.25, %v5302_v36  ;;  %1114 = vmax.xlane.f32.xlu1 %v6767_v34  ;;  %v1044_v52 = vpop.f32.mrb[43].mxu0  ;;  %v6771_v28 = vadd.f32 %v1082_v33, %v6497_v57 }
 0x553   : > { %v1081_v38 = vmul.f32 0.25, %v1044_v52  ;;  %v6779_v58 = vadd.f32 %v1080_v45, %v6511_v63 }
 0x554   : > { %1124 = vmax.xlane.f32.xlu0 %v6771_v28  ;;  %v6775_v51 = vadd.f32 %v1083_v14, %v6515_v0 }
 0x555   : > { %v6783_v21 = vadd.f32 %v1081_v38, %v6529_v6 }
 0x556   : > { %1126 = vmax.xlane.f32.xlu1 %v6775_v51 }
 0x557   : > { %v5305_v39 = vpop.f32.mrb[44].mxu0 }
 0x558   : > { %v1086_v29 = vmul.f32 0.25, %v5305_v39  ;;  %1120 = vmax.xlane.f32.xlu0 %v6779_v58  ;;  %v1057_v23 = vpop.f32.mrb[45].mxu0 }
 0x559   : > { %v5306_v57 = vpop.f32.mrb[46].mxu0  ;;  %v1084_v30 = vmul.f32 0.25, %v1057_v23 }
 0x55a   : > { %1122 = vmax.xlane.f32.xlu1 %v6783_v21  ;;  %v1060_v46 = vpop.f32.mrb[47].mxu0  ;;  %v6787_v0 = vadd.f32 %v1086_v29, %v6525_v5  ;;  %v1087_v6 = vmul.f32 0.25, %v5306_v57 }
 0x55b   : > { %v6791_v63 = vadd.f32 %v1084_v30, %v6539_v12  ;;  %v1085_v7 = vmul.f32 0.25, %v1060_v46 }
 0x55c   : > { %1132 = vmax.xlane.f32.xlu0 %v6787_v0  ;;  %v6799_v15 = vadd.f32 %v1087_v6, %v6543_v13 }
 0x55d   : > { %v6803_v5 = vadd.f32 %v1085_v7, %v6554_v19 }
 0x560   : > { %1128 = vmax.xlane.f32.xlu0 %v6791_v63 }
 0x56b   : > { %1266 = vrot.lane.b32.xlu1 %v6377_v41, %s6253_s19 }
 0x576   : > { %1264 = vrot.lane.b32.xlu0 %v6379_v43, %s6253_s19 }
 0x58f   : > { %1134 = vmax.xlane.f32.xlu1 %v6799_v15 }
 0x593   : > { %1130 = vmax.xlane.f32.xlu1 %v6803_v5 }
 0x5d1   : > { %v1109_v12 = vpop.xlane.xlu0 %1108 }
 0x5d2   : > { %v1138_v62 = vsub.f32 %v6742_v24, %v1109_v12  ;;  %v1105_v37 = vpop.xlane.xlu1 %1104 }
 0x5d3   : > { %v1136_v41 = vsub.f32 %v6745_v2, %v1105_v37 }
 0x5d4   : > { %v1156_v4 = vmul.f32 1.442695, %v1138_v62 }
 0x5d5   : > { %v1107_v43 = vpop.xlane.xlu0 %1106  ;;  %v1152_v11 = vmul.f32 1.442695, %v1136_v41 }
 0x5d6   : > { %5854 = vpow2.f32 %v1156_v4  ;;  %v1111_v10 = vpop.xlane.xlu1 %1110  ;;  %v1137_v20 = vsub.f32 %v6750_v31, %v1107_v43 }
 0x5d7   : > { %v1139_v13 = vsub.f32 %v6753_v9, %v1111_v10  ;;  %5856 = vpow2.f32 %v1152_v11 }
 0x5d8   : > { %v1154_v33 = vmul.f32 1.442695, %v1137_v20 }
 0x5d9   : > { %v1158_v35 = vmul.f32 1.442695, %v1139_v13  ;;  %v1117_v19 = vpop.xlane.xlu0 %1116 }
 0x5da   : > { %v1142_v8 = vsub.f32 %v1094_v26, %v1117_v19 }
 0x5db   : > { %v1119_v32 = vpop.xlane.xlu1 %1118  ;;  %5858 = vpow2.f32 %v1158_v35 }
 0x5dc   : > { %v1164_v16 = vmul.f32 1.442695, %v1142_v8  ;;  %v1143_v24 = vsub.f32 %v6759_v18, %v1119_v32 }
 0x5dd   : > { %v1113_v2 = vpop.xlane.xlu0 %1112 }
 0x5de   : > { %5860 = vpow2.f32 %v1164_v16  ;;  %v1140_v3 = vsub.f32 %v6763_v25, %v1113_v2  ;;  %v1166_v14 = vmul.f32 1.442695, %v1143_v24 }
 0x5df   : > { %v1115_v36 = vpop.xlane.xlu1 %1114  ;;  %5862 = vpow2.f32 %v1154_v33 }
 0x5e0   : > { %v6812_v45 = vpop.eup %5854  ;;  %v1160_v9 = vmul.f32 1.442695, %v1140_v3  ;;  %v1141_v31 = vsub.f32 %v6767_v34, %v1115_v36 }
 0x5e1   : > { %1188 = vadd.xlane.f32.xlu1 %v6812_v45  ;;  %v1125_v26 = vpop.xlane.xlu0 %1124  ;;  %v6816_v38 = vpop.eup %5856 }
 0x5e2   : > { %5864 = vpow2.f32 %v1160_v9  ;;  %v1162_v52 = vmul.f32 1.442695, %v1141_v31  ;;  %v1146_v4 = vsub.f32 %v6771_v28, %v1125_v26 }
 0x5e3   : > { %5866 = vpow2.f32 %v1166_v14  ;;  %v1127_v39 = vpop.xlane.xlu1 %1126 }
 0x5e4   : > { %5868 = vpow2.f32 %v1162_v52  ;;  %v1147_v11 = vsub.f32 %v6775_v51, %v1127_v39  ;;  %v1172_v13 = vmul.f32 1.442695, %v1146_v4 }
 0x5e5   : > { %1184 = vadd.xlane.f32.xlu1 %v6816_v38  ;;  %v1121_v18 = vpop.xlane.xlu0 %1120  ;;  %v6819_v25 = vpop.eup %5858 }
 0x5e6   : > { %v1144_v37 = vsub.f32 %v6779_v58, %v1121_v18  ;;  %v1174_v20 = vmul.f32 1.442695, %v1147_v11 }
 0x5e7   : > { %v1123_v30 = vpop.xlane.xlu1 %1122 }
 0x5e8   : > { %v6821_v29 = vpop.eup %5860  ;;  %v1145_v41 = vsub.f32 %v6783_v21, %v1123_v30  ;;  %v1168_v43 = vmul.f32 1.442695, %v1144_v37 }
 0x5e9   : > { %1190 = vadd.xlane.f32.xlu1 %v6819_v25  ;;  %1196 = vadd.xlane.f32.xlu0 %v6821_v29  ;;  %v1133_v34 = vpop.xlane.xlu0 %1132  ;;  %v6825_v23 = vpop.eup %5862 }
 0x5ea   : > { %v1170_v10 = vmul.f32 1.442695, %v1145_v41  ;;  %5870 = vpow2.f32 %v1168_v43 }
 0x5eb   : > { %v1267_v62 = vpop.permute.xlu1 %1266 }
 0x5ec   : > { %v6827_v57 = vpop.eup %5864  ;;  %5872 = vpow2.f32 %v1170_v10 }
 0x5ed   : > { %1186 = vadd.xlane.f32.xlu1 %v6825_v23  ;;  %1192 = vadd.xlane.f32.xlu0 %v6827_v57  ;;  %v1129_v46 = vpop.xlane.xlu0 %1128  ;;  %v6831_v6 = vpop.eup %5866  ;;  %5874 = vpow2.f32 %v1172_v13 }
 0x5ee   : > { %v6833_v7 = vpop.eup %5868  ;;  %v1148_v35 = vsub.f32 %v6791_v63, %v1129_v46  ;;  %5876 = vpow2.f32 %v1174_v20 }
 0x5f0   : > { %v1176_v58 = vmul.f32 1.442695, %v1148_v35 }
 0x5f1   : > { %1194 = vadd.xlane.f32.xlu1 %v6833_v7  ;;  %1198 = vadd.xlane.f32.xlu0 %v6831_v6  ;;  %v1265_v12 = vpop.permute.xlu0 %1264 }
 0x5f2   : > { %5315 = vmatprep.subr.bf16.mxu0 %v1265_v12  ;;  %5619 = vmatprep.subr.bf16.mxu1 %v1265_v12  ;;  %5878 = vpow2.f32 %v1176_v58 }
 0x5f3   : > { %5316 = vmatpush3.bf16.msra.mxu0 %v1265_v12  ;;  %5627 = vmatpush3.bf16.msra.mxu1 %v1265_v12 }
 0x5f4   : > { %5317 = vmatprep.subr.bf16.mxu0 %v1267_v62  ;;  %5620 = vmatprep.subr.bf16.mxu1 %v1267_v62  ;;  %v6849_v32 = vpop.eup %5870 }
 0x5f6   : > { %v6851_v16 = vpop.eup %5872 }
 0x5f7   : > { %5318 = vmatpush3.bf16.msra.mxu0 %v1267_v62  ;;  %5628 = vmatpush3.bf16.msra.mxu1 %v1267_v62 }
 0x602   : > { %1270 = vrot.lane.b32.xlu1 %v6385_v47, %s6253_s19 }
 0x607   : > { %1268 = vrot.lane.b32.xlu0 %v6387_v49, %s6253_s19  ;;  %v1150_v49 = vsub.f32 %v6787_v0, %v1133_v34  ;;  %v6855_v0 = vpop.eup %5874 }
 0x608   : > { %v6857_v63 = vpop.eup %5876 }
 0x609   : > { %v1180_v8 = vmul.f32 1.442695, %v1150_v49 }
 0x61c   : > { %v1135_v47 = vpop.xlane.xlu1 %1134 }
 0x61d   : > { %v1151_v21 = vsub.f32 %v6799_v15, %v1135_v47  ;;  %v6861_v15 = vpop.eup %5878 }
 0x61f   : > { %v1182_v33 = vmul.f32 1.442695, %v1151_v21 }
 0x620   : > { %v1131_v19 = vpop.xlane.xlu1 %1130 }
 0x621   : > { %v1149_v28 = vsub.f32 %v6803_v5, %v1131_v19 }
 0x623   : > { %v1178_v51 = vmul.f32 1.442695, %v1149_v28 }
 0x625   : > { %5880 = vpow2.f32 %v1178_v51 }
 0x626   : > { %1202 = vadd.xlane.f32.xlu0 %v6851_v16  ;;  %1200 = vadd.xlane.f32.xlu1 %v6849_v32  ;;  %5882 = vpow2.f32 %v1180_v8 }
 0x627   : > { %5884 = vpow2.f32 %v1182_v33 }
 0x62a   : > { %1204 = vadd.xlane.f32.xlu0 %v6855_v0  ;;  %1206 = vadd.xlane.f32.xlu1 %v6857_v63 }
 0x62e   : > { %1208 = vadd.xlane.f32.xlu0 %v6861_v15 }
 0x62f   : > { %v6864_v5 = vpop.eup %5880 }
 0x630   : > { %1210 = vadd.xlane.f32.xlu1 %v6864_v5  ;;  %v6867_v24 = vpop.eup %5882 }
 0x631   : > { %v6870_v2 = vpop.eup %5884 }
 0x632   : > { %1212 = vadd.xlane.f32.xlu0 %v6867_v24 }
 0x634   : > { %1214 = vadd.xlane.f32.xlu1 %v6870_v2 }
 0x66e   : > { %v1189_v3 = vpop.xlane.xlu1 %1188 }
 0x672   : > { %v1185_v36 = vpop.xlane.xlu1 %1184 }
 0x676   : > { %v1191_v9 = vpop.xlane.xlu1 %1190  ;;  %v1197_v31 = vpop.xlane.xlu0 %1196 }
 0x677   : > { %5886 = vrcp.f32 %v1191_v9 }
 0x678   : > { %5888 = vrcp.f32 %v1185_v36 }
 0x679   : > { %5890 = vrcp.f32 %v1189_v3 }
 0x67a   : > { %v1187_v14 = vpop.xlane.xlu1 %1186  ;;  %v1193_v26 = vpop.xlane.xlu0 %1192 }
 0x67b   : > { %5892 = vrcp.f32 %v1187_v14 }
 0x67c   : > { %5894 = vrcp.f32 %v1193_v26 }
 0x67d   : > { %5896 = vrcp.f32 %v1197_v31 }
 0x67e   : > { %v1195_v52 = vpop.xlane.xlu1 %1194  ;;  %v1199_v18 = vpop.xlane.xlu0 %1198 }
 0x67f   : > { %5898 = vrcp.f32 %v1195_v52 }
 0x680   : > { %5900 = vrcp.f32 %v1199_v18 }
 0x681   : > { %v5887_v39 = vpop.eup %5886 }
 0x682   : > { %v1269_v34 = vpop.permute.xlu0 %1268  ;;  %v5889_v30 = vpop.eup %5888  ;;  %v1235_v37 = vmul.f32 %v5887_v39, %v6819_v25 }
 0x683   : > { %5319 = vmatprep.subr.bf16.mxu0 %v1269_v34  ;;  %5621 = vmatprep.subr.bf16.mxu1 %v1269_v34  ;;  %v5891_v46 = vpop.eup %5890  ;;  %v1271_v12 = vpop.permute.xlu1 %1270  ;;  %v1232_v41 = vmul.f32 %v5889_v30, %v6816_v38 }
 0x684   : > { %5320 = vmatpush3.bf16.msra.mxu0 %v1269_v34  ;;  %5629 = vmatpush3.bf16.msra.mxu1 %v1269_v34  ;;  %v1234_v11 = vmul.f32 %v5891_v46, %v6812_v45 }
 0x685   : > { %v5893_v62 = vpop.eup %5892  ;;  %5321 = vmatprep.subr.bf16.mxu0 %v1271_v12  ;;  %5622 = vmatprep.subr.bf16.mxu1 %v1271_v12 }
 0x686   : > { %v1233_v4 = vmul.f32 %v5893_v62, %v6825_v23  ;;  %v5895_v43 = vpop.eup %5894  ;;  %v1249_v35 = vpack.c.bf16 %v1235_v37, %v1234_v11 }
 0x687   : > { %v5897_v10 = vpop.eup %5896  ;;  %v1236_v49 = vmul.f32 %v5895_v43, %v6827_v57 }
 0x688   : > { %5322 = vmatpush3.bf16.msra.mxu0 %v1271_v12  ;;  %5630 = vmatpush3.bf16.msra.mxu1 %v1271_v12  ;;  %v1248_v13 = vpack.c.bf16 %v1233_v4, %v1232_v41  ;;  %v1238_v58 = vmul.f32 %v5897_v10, %v6821_v29  ;;  %v5772_v41 = vld [vmem:[#allocation2 + $0x10] sm:$0xff]  }
 0x689   : > { %v5899_v20 = vpop.eup %5898  ;;  %5339 = vmatprep.subr.bf16.mxu1 %v5772_v41 }
 0x68a   : > { %v5901_v47 = vpop.eup %5900  ;;  %5323 = vmatprep.mubr.bf16.mxu0 %v1248_v13  ;;  %v1237_v25 = vmul.f32 %v5899_v20, %v6833_v7 }
 0x68b   : > { %v1239_v38 = vmul.f32 %v5901_v47, %v6831_v6  ;;  %5324 = vmatmul.mubr.bf16.vlgmr.msra.gmra.mrb[48].mxu0 %v1249_v35 }
 0x68c   : > { %v1250_v23 = vpack.c.bf16 %v1237_v25, %v1236_v49 }
 0x68d   : > { %v1251_v19 = vpack.c.bf16 %v1239_v38, %v1238_v58 }
 0x68e   : > { %5327 = vmatprep.mubr.bf16.mxu1 %v1250_v23 }
 0x68f   : > { %5328 = vmatmul.mubr.bf16.vlgmr.msra.gmra.mrb[16].mxu1 %v1251_v19 }
 0x690   : > { %5340 = vmatpush3.bf16.msra.mxu1 %v5772_v41 }
 0x6b3   : > { %v1201_v45 = vpop.xlane.xlu1 %1200  ;;  %v1203_v21 = vpop.xlane.xlu0 %1202 }
 0x6b4   : > { %5902 = vrcp.f32 %v1201_v45 }
 0x6b5   : > { %5904 = vrcp.f32 %v1203_v21 }
 0x6b7   : > { %v1207_v28 = vpop.xlane.xlu1 %1206  ;;  %v1205_v8 = vpop.xlane.xlu0 %1204 }
 0x6b8   : > { %5906 = vrcp.f32 %v1207_v28 }
 0x6b9   : > { %5908 = vrcp.f32 %v1205_v8 }
 0x6bb   : > { %v1209_v57 = vpop.xlane.xlu0 %1208 }
 0x6bc   : > { %5910 = vrcp.f32 %v1209_v57 }
 0x6bd   : > { %v1211_v7 = vpop.xlane.xlu1 %1210 }
 0x6be   : > { %v5903_v51 = vpop.eup %5902  ;;  %5912 = vrcp.f32 %v1211_v7 }
 0x6bf   : > { %v5905_v29 = vpop.eup %5904  ;;  %v1213_v6 = vpop.xlane.xlu0 %1212  ;;  %v1240_v33 = vmul.f32 %v5903_v51, %v6849_v32 }
 0x6c0   : > { %5914 = vrcp.f32 %v1213_v6  ;;  %v1241_v3 = vmul.f32 %v5905_v29, %v6851_v16 }
 0x6c1   : > { %v1215_v36 = vpop.xlane.xlu1 %1214 }
 0x6c2   : > { %v5907_v9 = vpop.eup %5906  ;;  %5916 = vrcp.f32 %v1215_v36  ;;  %v1252_v31 = vpack.c.bf16 %v1241_v3, %v1240_v33 }
 0x6c3   : > { %v5909_v14 = vpop.eup %5908  ;;  %v1243_v26 = vmul.f32 %v5907_v9, %v6857_v63 }
 0x6c4   : > { %5331 = vmatprep.mubr.bf16.mxu1 %v1252_v31  ;;  %v1242_v52 = vmul.f32 %v5909_v14, %v6855_v0  ;;  %v5773_v0 = vld [vmem:[#allocation2 + $0x18] sm:$0xff]  }
 0x6c5   : > { %5341 = vmatprep.subr.bf16.mxu1 %v5773_v0 }
 0x6c6   : > { %v5911_v18 = vpop.eup %5910  ;;  %v1253_v39 = vpack.c.bf16 %v1243_v26, %v1242_v52  ;;  %5342 = vmatpush3.bf16.msra.mxu1 %v5773_v0 }
 0x6c7   : > { %v1244_v30 = vmul.f32 %v5911_v18, %v6861_v15 }
 0x6c8   : > { %v5913_v34 = vpop.eup %5912  ;;  %5332 = vmatmul.mubr.bf16.gmra.mrb[20].mxu1 %v1253_v39 }
 0x6c9   : > { %v1245_v32 = vmul.f32 %v5913_v34, %v6864_v5 }
 0x6ca   : > { %v5915_v46 = vpop.eup %5914 }
 0x6cb   : > { %v1254_v16 = vpack.c.bf16 %v1245_v32, %v1244_v30  ;;  %v1246_v62 = vmul.f32 %v5915_v46, %v6867_v24 }
 0x6cc   : > { %v5917_v12 = vpop.eup %5916 }
 0x6cd   : > { %5335 = vmatprep.mubr.bf16.mxu1 %v1254_v16  ;;  %v1247_v37 = vmul.f32 %v5917_v12, %v6870_v2 }
 0x6cf   : > { %v1255_v63 = vpack.c.bf16 %v1247_v37, %v1246_v62 }
 0x6d1   : > { %5336 = vmatmul.mubr.bf16.gmra.mrb[24].mxu1 %v1255_v63 }
 0x75e   : > { %v5325_v4 = vpop.f32.mrb[48].mxu0 }
 0x75f   : > { %v1314_v15 = vpop.f32.mrb[49].mxu0 }
 0x760   : > { %v5326_v43 = vpop.f32.mrb[50].mxu0 }
 0x761   : > { %v5695_v5 = vpack.i.bf16 %v5326_v43, %v5325_v4  ;;  %v1317_v11 = vpop.f32.mrb[51].mxu0 }
 0x762   : > { %v5690_v10 = vpack.i.bf16 %v1317_v11, %v1314_v15  ;;  %v5329_v13 = vpop.f32.mrb[16].mxu1 }
 0x763   : > { %v1330_v20 = vpop.f32.mrb[17].mxu1  ;;  %5696 = vrot.lane.b32.xlu1 %v5695_v5, %s6254_s20 }
 0x764   : > { %v5330_v24 = vpop.f32.mrb[18].mxu1  ;;  %5691 = vrot.lane.b32.xlu0 %v5690_v10, %s6254_s20 }
 0x765   : > { %v5705_v2 = vpack.i.bf16 %v5330_v24, %v5329_v13  ;;  %v1333_v35 = vpop.f32.mrb[19].mxu1 }
 0x766   : > { %v5700_v47 = vpack.i.bf16 %v1333_v35, %v1330_v20 }
 0x768   : > { %5701 = vrot.lane.b32.xlu1 %v5700_v47, %s6254_s20  ;;  %5706 = vrot.lane.b32.xlu0 %v5705_v2, %s6254_s20 }
 0x79b   : > { %v5333_v49 = vpop.f32.mrb[20].mxu1 }
 0x79c   : > { %v1346_v25 = vpop.f32.mrb[21].mxu1 }
 0x79d   : > { %v5334_v58 = vpop.f32.mrb[22].mxu1 }
 0x79e   : > { %v5715_v38 = vpack.i.bf16 %v5334_v58, %v5333_v49  ;;  %v1349_v23 = vpop.f32.mrb[23].mxu1 }
 0x79f   : > { %v5710_v19 = vpack.i.bf16 %v1349_v23, %v1346_v25  ;;  %v6175_v23 = vld [vmem:[%s6333_s10 + $0x18] sm:$0xff] }
 0x7a0   : > { %5716 = vrot.lane.b32.xlu0 %v5715_v38, %s6254_s20 }
 0x7a1   : > { %5711 = vrot.lane.b32.xlu1 %v5710_v19, %s6254_s20  ;;  %v6176_v19 = vld [vmem:[%s6333_s10 + $0x8] sm:$0xff] }
 0x7a4   : > { %v5337_v45 = vpop.f32.mrb[24].mxu1 }
 0x7a5   : > { %v1362_v21 = vpop.f32.mrb[25].mxu1 }
 0x7a6   : > { %v5338_v28 = vpop.f32.mrb[26].mxu1 }
 0x7a7   : > { %v5725_v8 = vpack.i.bf16 %v5338_v28, %v5337_v45  ;;  %v1365_v57 = vpop.f32.mrb[27].mxu1 }
 0x7a8   : > { %v5720_v7 = vpack.i.bf16 %v1365_v57, %v1362_v21  ;;  %v6177_v21 = vld [vmem:[%s6333_s10 + $0x10] sm:$0xff] }
 0x7a9   : > { %5726 = vrot.lane.b32.xlu0 %v5725_v8, %s6254_s20 }
 0x7aa   : > { %5721 = vrot.lane.b32.xlu1 %v5720_v7, %s6254_s20 }
 0x7d5   : > { %v5697_v51 = vpop.permute.xlu1 %5696 }
 0x7d6   : > { %v5699_v29 = vunpack.i.h.bf16 %v5697_v51  ;;  %v5698_v6 = vunpack.i.l.bf16 %v5697_v51  ;;  %v5692_v33 = vpop.permute.xlu0 %5691 }
 0x7d7   : > { %v5694_v3 = vunpack.i.h.bf16 %v5692_v33  ;;  %v5693_v36 = vunpack.i.l.bf16 %v5692_v33 }
 0x7d8   : > { %v1444_v9 = vsel %vm444_vm1, %v6713_v48, %v5699_v29  ;;  %v1443_v31 = vsel %vm444_vm1, %v6709_v54, %v5698_v6  ;;  %v6178_v29 = vld [vmem:[%s6333_s10 + $0x20] sm:$0xff] }
 0x7d9   : > { %v1462_v14 = vpack.c.bf16 %v1444_v9, %v1443_v31  ;;  %v1442_v26 = vsel %vm444_vm1, %v6715_v56, %v5694_v3  ;;  %v1441_v52 = vsel %vm444_vm1, %v6711_v40, %v5693_v36  ;;  %v6179_v9 = vld [vmem:[%s6333_s10 + $0x28] sm:$0xff] }
 0x7da   : > { %v5702_v18 = vpop.permute.xlu1 %5701  ;;  %v5707_v39 = vpop.permute.xlu0 %5706  ;;  %v1461_v34 = vpack.c.bf16 %v1442_v26, %v1441_v52  ;;  %v6181_v52 = vld [vmem:[%s6333_s10 + $0x38] sm:$0xff] }
 0x7db   : > { %v5704_v30 = vunpack.i.h.bf16 %v5702_v18  ;;  %v5703_v32 = vunpack.i.l.bf16 %v5702_v18  ;;  %v5709_v46 = vunpack.i.h.bf16 %v5707_v39  ;;  %v5708_v16 = vunpack.i.l.bf16 %v5707_v39 }
 0x7dc   : > { %5343 = vmatprep.mubr.msk.bf16.mxu1 %vm290_vm0, %v1461_v34 }
 0x7dd   : > { %v1446_v48 = vsel %vm444_vm1, %v6723_v53, %v5704_v30  ;;  %v1445_v54 = vsel %vm444_vm1, %v6719_v44, %v5703_v32  ;;  %v1448_v56 = vsel %vm444_vm1, %v6721_v50, %v5709_v46  ;;  %v1447_v40 = vsel %vm444_vm1, %v6717_v27, %v5708_v16  ;;  %5344 = vmatmul.mubr.msk.bf16.vlgmr.msra.gmra.mrb[28].mxu1 %vm290_vm0, %v1462_v14  ;;  %v6180_v14 = vld [vmem:[%s6333_s10 + $0x30] sm:$0xff] }
 0x7de   : > { %v1463_v12 = vpack.c.bf16 %v1446_v48, %v1445_v54  ;;  %v1464_v62 = vpack.c.bf16 %v1448_v56, %v1447_v40  ;;  %v6182_v48 = vld [vmem:[%s6333_s10 + $0x40] sm:$0xff] }
 0x7e0   : > { %5347 = vmatprep.mubr.msk.bf16.mxu1 %vm290_vm0, %v1463_v12  ;;  %v6183_v12 = vld [vmem:[%s6333_s10 + $0x50] sm:$0xff] }
 0x7e5   : > { %5348 = vmatmul.mubr.msk.bf16.gmra.mrb[32].mxu1 %vm290_vm0, %v1464_v62 }
 0x812   : > { %v5717_v37 = vpop.permute.xlu0 %5716 }
 0x813   : > { %v5719_v63 = vunpack.i.h.bf16 %v5717_v37  ;;  %v5718_v53 = vunpack.i.l.bf16 %v5717_v37  ;;  %v5712_v41 = vpop.permute.xlu1 %5711  ;;  %v6184_v37 = vld [vmem:[%s6333_s10 + $0x48] sm:$0xff] }
 0x814   : > { %v5714_v0 = vunpack.i.h.bf16 %v5712_v41  ;;  %v5713_v44 = vunpack.i.l.bf16 %v5712_v41  ;;  %v6185_v41 = vld [vmem:[%s6333_s10 + $0x58] sm:$0xff] }
 0x815   : > { %v1452_v50 = vsel %vm444_vm1, %v6729_v61, %v5719_v63  ;;  %v1451_v27 = vsel %vm444_vm1, %v6725_v55, %v5718_v53 }
 0x816   : > { %v1450_v4 = vsel %vm444_vm1, %v6731_v1, %v5714_v0  ;;  %v1449_v15 = vsel %vm444_vm1, %v6727_v59, %v5713_v44  ;;  %v1466_v43 = vpack.c.bf16 %v1452_v50, %v1451_v27 }
 0x817   : > { %v1465_v5 = vpack.c.bf16 %v1450_v4, %v1449_v15 }
 0x819   : > { %5351 = vmatprep.mubr.msk.bf16.mxu1 %vm290_vm0, %v1465_v5 }
 0x81a   : > { %5352 = vmatmul.mubr.msk.bf16.gmra.mrb[36].mxu1 %vm290_vm0, %v1466_v43  ;;  %v6186_v43 = vld [vmem:[%s6333_s10 + $0x60] sm:$0xff] }
 0x81b   : > { %v5727_v11 = vpop.permute.xlu0 %5726 }
 0x81c   : > { %v5729_v10 = vunpack.i.h.bf16 %v5727_v11  ;;  %v5728_v13 = vunpack.i.l.bf16 %v5727_v11  ;;  %v5722_v61 = vpop.permute.xlu1 %5721 }
 0x81d   : > { %v5724_v20 = vunpack.i.h.bf16 %v5722_v61  ;;  %v5723_v55 = vunpack.i.l.bf16 %v5722_v61 }
 0x81e   : > { %v1456_v1 = vsel %vm444_vm1, %v6737_v17, %v5729_v10  ;;  %v1455_v59 = vsel %vm444_vm1, %v6733_v60, %v5728_v13  ;;  %v6174_v17 = vld [vmem:[%s6333_s10] sm:$0xff]  ;;  %v6187_v13 = vld [vmem:[%s6333_s10 + $0x70] sm:$0xff] }
 0x81f   : > { %v1454_v24 = vsel %vm444_vm1, %v6739_v42, %v5724_v20  ;;  %v1453_v2 = vsel %vm444_vm1, %v6735_v22, %v5723_v55  ;;  %v1468_v35 = vpack.c.bf16 %v1456_v1, %v1455_v59  ;;  %v6188_v20 = vld [vmem:[%s6333_s10 + $0x68] sm:$0xff]  ;;  %v6189_v59 = vld [vmem:[%s6333_s10 + $0x78] sm:$0xff] }
 0x820   : > { %v1467_v47 = vpack.c.bf16 %v1454_v24, %v1453_v2 }
 0x822   : > { %5355 = vmatprep.mubr.msk.bf16.mxu1 %vm290_vm0, %v1467_v47 }
 0x823   : > { %5356 = vmatmul.mubr.msk.bf16.gmra.mrb[40].mxu1 %vm290_vm0, %v1468_v35 }
 0x8b0   : > { %v5345_v49 = vpop.f32.mrb[28].mxu1 }
 0x8b1   : > { %v1539_v25 = vpop.f32.mrb[29].mxu1  ;;  %v6949_v28 = vadd.f32 %v6177_v21, %v5345_v49 }
 0x8b2   : > { %v6938_v58 = vadd.f32 %v6174_v17, %v1539_v25  ;;  %v5346_v38 = vpop.f32.mrb[30].mxu1 }
 0x8b3   : > { %v1542_v60 = vpop.f32.mrb[31].mxu1  ;;  %v6941_v42 = vadd.f32 %v6175_v23, %v5346_v38  ;;  %v1626_v3 = vsel %vm290_vm0, %v6949_v28, 0.0 }
 0x8b4   : > { %v6944_v22 = vadd.f32 %v6176_v19, %v1542_v60  ;;  %v1620_v45 = vsel %vm290_vm0, %v6938_v58, 0.0 }
 0x8b5   : > { %1621 = vadd.xlane.f32.xlu1 %v1620_v45  ;;  %v1629_v7 = vsel %vm290_vm0, %v6941_v42, 0.0 }
 0x8b6   : > { %v1623_v8 = vsel %vm290_vm0, %v6944_v22, 0.0 }
 0x8b7   : > { %1624 = vadd.xlane.f32.xlu0 %v1623_v8 }
 0x8b8   : > { %v5349_v57 = vpop.f32.mrb[32].mxu1 }
 0x8b9   : > { %1630 = vadd.xlane.f32.xlu1 %v1629_v7  ;;  %v1555_v51 = vpop.f32.mrb[33].mxu1  ;;  %v6964_v26 = vadd.f32 %v6180_v14, %v5349_v57 }
 0x8ba   : > { %v6956_v6 = vadd.f32 %v6178_v29, %v1555_v51  ;;  %v5350_v33 = vpop.f32.mrb[34].mxu1 }
 0x8bb   : > { %1627 = vadd.xlane.f32.xlu0 %v1626_v3  ;;  %v1558_v36 = vpop.f32.mrb[35].mxu1  ;;  %v6967_v18 = vadd.f32 %v6181_v52, %v5350_v33  ;;  %v1638_v30 = vsel %vm290_vm0, %v6964_v26, 0.0 }
 0x8bc   : > { %v6961_v31 = vadd.f32 %v6179_v9, %v1558_v36  ;;  %v1632_v39 = vsel %vm290_vm0, %v6956_v6, 0.0 }
 0x8bd   : > { %v1641_v32 = vsel %vm290_vm0, %v6967_v18, 0.0 }
 0x8be   : > { %v1635_v34 = vsel %vm290_vm0, %v6961_v31, 0.0 }
 0x8bf   : > { %1633 = vadd.xlane.f32.xlu0 %v1632_v39  ;;  %1636 = vadd.xlane.f32.xlu1 %v1635_v34 }
 0x8c3   : > { %1639 = vadd.xlane.f32.xlu0 %v1638_v30  ;;  %1642 = vadd.xlane.f32.xlu1 %v1641_v32 }
 0x8ed   : > { %v5353_v46 = vpop.f32.mrb[36].mxu1 }
 0x8ee   : > { %v1571_v16 = vpop.f32.mrb[37].mxu1  ;;  %v6981_v62 = vadd.f32 %v6183_v12, %v5353_v46 }
 0x8ef   : > { %v6978_v54 = vadd.f32 %v6182_v48, %v1571_v16  ;;  %v5354_v56 = vpop.f32.mrb[38].mxu1 }
 0x8f0   : > { %v1574_v40 = vpop.f32.mrb[39].mxu1  ;;  %v6989_v0 = vadd.f32 %v6185_v41, %v5354_v56  ;;  %v1650_v50 = vsel %vm290_vm0, %v6981_v62, 0.0 }
 0x8f1   : > { %v6984_v63 = vadd.f32 %v6184_v37, %v1574_v40  ;;  %v1644_v53 = vsel %vm290_vm0, %v6978_v54, 0.0 }
 0x8f2   : > { %1645 = vadd.xlane.f32.xlu0 %v1644_v53  ;;  %v1653_v4 = vsel %vm290_vm0, %v6989_v0, 0.0 }
 0x8f3   : > { %v1647_v44 = vsel %vm290_vm0, %v6984_v63, 0.0 }
 0x8f4   : > { %1648 = vadd.xlane.f32.xlu1 %v1647_v44  ;;  %v5775_v44 = vld [vmem:[#allocation2 + $0x28] sm:$0xff]  }
 0x8f6   : > { %1651 = vadd.xlane.f32.xlu0 %v1650_v50  ;;  %v5357_v27 = vpop.f32.mrb[40].mxu1 }
 0x8f7   : > { %v1587_v15 = vpop.f32.mrb[41].mxu1  ;;  %v7001_v61 = vadd.f32 %v6187_v13, %v5357_v27 }
 0x8f8   : > { %1654 = vadd.xlane.f32.xlu1 %v1653_v4  ;;  %v6998_v5 = vadd.f32 %v6186_v43, %v1587_v15  ;;  %v5358_v11 = vpop.f32.mrb[42].mxu1 }
 0x8f9   : > { %v1590_v10 = vpop.f32.mrb[43].mxu1  ;;  %v7009_v24 = vadd.f32 %v6189_v59, %v5358_v11  ;;  %v1662_v35 = vsel %vm290_vm0, %v7001_v61, 0.0 }
 0x8fa   : > { %v7004_v55 = vadd.f32 %v6188_v20, %v1590_v10  ;;  %v1656_v1 = vsel %vm290_vm0, %v6998_v5, 0.0 }
 0x8fb   : > { %1657 = vadd.xlane.f32.xlu0 %v1656_v1  ;;  %v1665_v47 = vsel %vm290_vm0, %v7009_v24, 0.0 }
 0x8fc   : > { %v1659_v2 = vsel %vm290_vm0, %v7004_v55, 0.0 }
 0x8fd   : > { %1660 = vadd.xlane.f32.xlu1 %v1659_v2 }
 0x8ff   : > { %1663 = vadd.xlane.f32.xlu0 %v1662_v35 }
 0x901   : > { %1666 = vadd.xlane.f32.xlu1 %v1665_v47 }
 0x942   : > { %v1622_v49 = vpop.xlane.xlu1 %1621 }
 0x943   : > { %v1669_v25 = vmul.f32 0.03125, %v1622_v49 }
 0x944   : > { %v1625_v17 = vpop.xlane.xlu0 %1624 }
 0x945   : > { %v7018_v38 = vsub.f32 %v6938_v58, %v1669_v25  ;;  %v1670_v60 = vmul.f32 0.03125, %v1625_v17 }
 0x946   : > { %v1631_v23 = vpop.xlane.xlu1 %1630 }
 0x947   : > { %v7021_v19 = vsub.f32 %v6944_v22, %v1670_v60  ;;  %v1672_v45 = vmul.f32 0.03125, %v1631_v23  ;;  %v1701_v21 = vmul.f32 %v7018_v38, %v7018_v38 }
 0x948   : > { %v1628_v8 = vpop.xlane.xlu0 %1627 }
 0x949   : > { %v7026_v57 = vsub.f32 %v6941_v42, %v1672_v45  ;;  %v1671_v7 = vmul.f32 0.03125, %v1628_v8  ;;  %v1717_v51 = vsel %vm290_vm0, %v1701_v21, 0.0  ;;  %v1702_v58 = vmul.f32 %v7021_v19, %v7021_v19 }
 0x94a   : > { %1718 = vadd.xlane.f32.xlu0 %v1717_v51 }
 0x94b   : > { %v7032_v29 = vsub.f32 %v6949_v28, %v1671_v7  ;;  %v1720_v22 = vsel %vm290_vm0, %v1702_v58, 0.0  ;;  %v1704_v33 = vmul.f32 %v7026_v57, %v7026_v57 }
 0x94c   : > { %v1634_v3 = vpop.xlane.xlu0 %1633  ;;  %v1637_v36 = vpop.xlane.xlu1 %1636  ;;  %1721 = vadd.xlane.f32.xlu1 %v1720_v22 }
 0x94d   : > { %v1673_v42 = vmul.f32 0.03125, %v1634_v3  ;;  %v1674_v9 = vmul.f32 0.03125, %v1637_v36  ;;  %v1703_v14 = vmul.f32 %v7032_v29, %v7032_v29  ;;  %v1726_v34 = vsel %vm290_vm0, %v1704_v33, 0.0 }
 0x94f   : > { %v7040_v52 = vsub.f32 %v6956_v6, %v1673_v42  ;;  %v7043_v39 = vsub.f32 %v6961_v31, %v1674_v9  ;;  %v1723_v28 = vsel %vm290_vm0, %v1703_v14, 0.0 }
 0x950   : > { %v1640_v30 = vpop.xlane.xlu0 %1639  ;;  %v1643_v32 = vpop.xlane.xlu1 %1642  ;;  %1724 = vadd.xlane.f32.xlu0 %v1723_v28  ;;  %1727 = vadd.xlane.f32.xlu1 %v1726_v34  ;;  %v5776_v34 = vld [vmem:[#allocation2 + $0x30] sm:$0xff]  }
 0x951   : > { %v1675_v46 = vmul.f32 0.03125, %v1640_v30  ;;  %v1676_v16 = vmul.f32 0.03125, %v1643_v32  ;;  %v1705_v48 = vmul.f32 %v7040_v52, %v7040_v52  ;;  %v1706_v6 = vmul.f32 %v7043_v39, %v7043_v39  ;;  %v5777_v30 = vld [vmem:[#allocation2 + $0x38] sm:$0xff]   ;;  %5379 = vmatprep.subr.bf16.mxu1 %v5776_v34 }
 0x952   : > { %5380 = vmatpush3.bf16.msra.mxu1 %v5776_v34 }
 0x953   : > { %v7052_v56 = vsub.f32 %v6964_v26, %v1675_v46  ;;  %v7055_v31 = vsub.f32 %v6967_v18, %v1676_v16  ;;  %v1729_v40 = vsel %vm290_vm0, %v1705_v48, 0.0  ;;  %v1732_v12 = vsel %vm290_vm0, %v1706_v6, 0.0  ;;  %v5774_v18 = vld [vmem:[#allocation2 + $0x20] sm:$0xff]   ;;  %5381 = vmatprep.subr.bf16.mxu1 %v5777_v30 }
 0x954   : > { %1730 = vadd.xlane.f32.xlu0 %v1729_v40  ;;  %1733 = vadd.xlane.f32.xlu1 %v1732_v12 }
 0x955   : > { %v1707_v37 = vmul.f32 %v7052_v56, %v7052_v56  ;;  %v1708_v53 = vmul.f32 %v7055_v31, %v7055_v31  ;;  %5359 = vmatprep.subr.bf16.mxu0 %v5774_v18 }
 0x956   : > { %5360 = vmatpush3.bf16.msra.mxu0 %v5774_v18  ;;  %5382 = vmatpush3.bf16.msra.mxu1 %v5777_v30 }
 0x957   : > { %v1735_v41 = vsel %vm290_vm0, %v1707_v37, 0.0  ;;  %v1738_v26 = vsel %vm290_vm0, %v1708_v53, 0.0  ;;  %5361 = vmatprep.subr.bf16.mxu0 %v5775_v44 }
 0x958   : > { %1736 = vadd.xlane.f32.xlu0 %v1735_v41  ;;  %1739 = vadd.xlane.f32.xlu1 %v1738_v26 }
 0x95a   : > { %5362 = vmatpush3.bf16.msra.mxu0 %v5775_v44 }
 0x97f   : > { %v1646_v50 = vpop.xlane.xlu0 %1645 }
 0x980   : > { %v1677_v27 = vmul.f32 0.03125, %v1646_v50 }
 0x981   : > { %v1649_v4 = vpop.xlane.xlu1 %1648 }
 0x982   : > { %v7066_v15 = vsub.f32 %v6978_v54, %v1677_v27  ;;  %v1678_v43 = vmul.f32 0.03125, %v1649_v4 }
 0x983   : > { %v1652_v11 = vpop.xlane.xlu0 %1651 }
 0x984   : > { %v7069_v10 = vsub.f32 %v6984_v63, %v1678_v43  ;;  %v1679_v13 = vmul.f32 0.03125, %v1652_v11  ;;  %v1709_v20 = vmul.f32 %v7066_v15, %v7066_v15 }
 0x985   : > { %v1655_v1 = vpop.xlane.xlu1 %1654 }
 0x986   : > { %v7074_v59 = vsub.f32 %v6981_v62, %v1679_v13  ;;  %v1680_v2 = vmul.f32 0.03125, %v1655_v1  ;;  %v1741_v35 = vsel %vm290_vm0, %v1709_v20, 0.0  ;;  %v1710_v54 = vmul.f32 %v7069_v10, %v7069_v10  ;;  %v7116_v1 = vld [vmem:[%s8724_s2] ss:$0 sm:$0xff] }
 0x987   : > { %1742 = vadd.xlane.f32.xlu0 %v1741_v35 }
 0x988   : > { %v7080_v47 = vsub.f32 %v6989_v0, %v1680_v2  ;;  %v1658_v63 = vpop.xlane.xlu0 %1657  ;;  %v1744_v49 = vsel %vm290_vm0, %v1710_v54, 0.0  ;;  %v1711_v25 = vmul.f32 %v7074_v59, %v7074_v59 }
 0x989   : > { %v1681_v17 = vmul.f32 0.03125, %v1658_v63  ;;  %1745 = vadd.xlane.f32.xlu1 %v1744_v49 }
 0x98a   : > { %v1747_v62 = vsel %vm290_vm0, %v1711_v25, 0.0  ;;  %v1661_v60 = vpop.xlane.xlu1 %1660  ;;  %v1712_v23 = vmul.f32 %v7080_v47, %v7080_v47 }
 0x98b   : > { %v7089_v45 = vsub.f32 %v6998_v5, %v1681_v17  ;;  %1748 = vadd.xlane.f32.xlu0 %v1747_v62  ;;  %v1682_v0 = vmul.f32 0.03125, %v1661_v60  ;;  %v7124_v60 = vld [vmem:[%s8724_s2 + $0x1] ss:$0 sm:$0xff] }
 0x98c   : > { %v1664_v21 = vpop.xlane.xlu0 %1663  ;;  %v1750_v8 = vsel %vm290_vm0, %v1712_v23, 0.0 }
 0x98d   : > { %v7093_v7 = vsub.f32 %v7004_v55, %v1682_v0  ;;  %v1683_v51 = vmul.f32 0.03125, %v1664_v21  ;;  %1751 = vadd.xlane.f32.xlu1 %v1750_v8  ;;  %v1713_v58 = vmul.f32 %v7089_v45, %v7089_v45 }
 0x98e   : > { %v1667_v22 = vpop.xlane.xlu1 %1666 }
 0x98f   : > { %v7098_v33 = vsub.f32 %v7001_v61, %v1683_v51  ;;  %v1684_v3 = vmul.f32 0.03125, %v1667_v22  ;;  %v1753_v5 = vsel %vm290_vm0, %v1713_v58, 0.0  ;;  %v1714_v36 = vmul.f32 %v7093_v7, %v7093_v7 }
 0x990   : > { %1754 = vadd.xlane.f32.xlu0 %v1753_v5 }
 0x991   : > { %v7104_v42 = vsub.f32 %v7009_v24, %v1684_v3  ;;  %v1756_v55 = vsel %vm290_vm0, %v1714_v36, 0.0  ;;  %v1715_v9 = vmul.f32 %v7098_v33, %v7098_v33 }
 0x992   : > { %1757 = vadd.xlane.f32.xlu1 %v1756_v55 }
 0x993   : > { %v1759_v14 = vsel %vm290_vm0, %v1715_v9, 0.0  ;;  %v1716_v61 = vmul.f32 %v7104_v42, %v7104_v42 }
 0x994   : > { %1760 = vadd.xlane.f32.xlu0 %v1759_v14 }
 0x995   : > { %v1762_v28 = vsel %vm290_vm0, %v1716_v61, 0.0 }
 0x996   : > { %1763 = vadd.xlane.f32.xlu1 %v1762_v28 }
 0x9d7   : > { %v1719_v24 = vpop.xlane.xlu0 %1718 }
 0x9d8   : > { %v1765_v32 = vmul.f32 0.03125, %v1719_v24 }
 0x9d9   : > { %v1722_v46 = vpop.xlane.xlu1 %1721 }
 0x9da   : > { %v1781_v16 = vadd.f32 1e-06, %v1765_v32  ;;  %v1766_v48 = vmul.f32 0.03125, %v1722_v46 }
 0x9dc   : > { %5918 = vrsqrt.f32 %v1781_v16  ;;  %v1782_v6 = vadd.f32 1e-06, %v1766_v48 }
 0x9dd   : > { %v1725_v40 = vpop.xlane.xlu0 %1724  ;;  %v1728_v12 = vpop.xlane.xlu1 %1727 }
 0x9de   : > { %5920 = vrsqrt.f32 %v1782_v6  ;;  %v1767_v37 = vmul.f32 0.03125, %v1725_v40  ;;  %v1768_v53 = vmul.f32 0.03125, %v1728_v12 }
 0x9e0   : > { %v1783_v41 = vadd.f32 1e-06, %v1767_v37  ;;  %v1784_v26 = vadd.f32 1e-06, %v1768_v53 }
 0x9e1   : > { %v1731_v18 = vpop.xlane.xlu0 %1730  ;;  %v1734_v44 = vpop.xlane.xlu1 %1733 }
 0x9e2   : > { %5922 = vrsqrt.f32 %v1783_v41  ;;  %v1769_v50 = vmul.f32 0.03125, %v1731_v18  ;;  %v1770_v27 = vmul.f32 0.03125, %v1734_v44 }
 0x9e3   : > { %5924 = vrsqrt.f32 %v1784_v26 }
 0x9e4   : > { %v1785_v4 = vadd.f32 1e-06, %v1769_v50  ;;  %v1786_v43 = vadd.f32 1e-06, %v1770_v27 }
 0x9e5   : > { %v1737_v11 = vpop.xlane.xlu0 %1736  ;;  %v1740_v13 = vpop.xlane.xlu1 %1739 }
 0x9e6   : > { %v5919_v20 = vpop.eup %5918  ;;  %5926 = vrsqrt.f32 %v1785_v4  ;;  %v1771_v2 = vmul.f32 0.03125, %v1737_v11  ;;  %v1772_v35 = vmul.f32 0.03125, %v1740_v13 }
 0x9e7   : > { %5928 = vrsqrt.f32 %v1786_v43  ;;  %v1813_v54 = vmul.f32 %v5919_v20, %v7018_v38 }
 0x9e8   : > { %v5921_v63 = vpop.eup %5920  ;;  %v1787_v49 = vadd.f32 1e-06, %v1771_v2  ;;  %v1788_v25 = vadd.f32 1e-06, %v1772_v35 }
 0x9e9   : > { %v1814_v17 = vmul.f32 %v5921_v63, %v7021_v19  ;;  %v1833_v62 = vmul.f32 %v7116_v1, %v1813_v54 }
 0x9ea   : > { %5930 = vrsqrt.f32 %v1787_v49 }
 0x9eb   : > { %5932 = vrsqrt.f32 %v1788_v25  ;;  %v1834_v23 = vmul.f32 %v7116_v1, %v1814_v17  ;;  %v7129_v8 = vadd.f32 %v7124_v60, %v1833_v62 }
 0x9ec   : > { %v5923_v0 = vpop.eup %5922 }
 0x9ed   : > { %v5925_v21 = vpop.eup %5924  ;;  %v1815_v38 = vmul.f32 %v5923_v0, %v7032_v29  ;;  %v7132_v19 = vadd.f32 %v7124_v60, %v1834_v23 }
 0x9ee   : > { %v1816_v51 = vmul.f32 %v5925_v21, %v7026_v57 }
 0x9ef   : > { %v1835_v58 = vmul.f32 %v7116_v1, %v1815_v38  ;;  %v1873_v22 = vpack.c.bf16 %v7132_v19, %v7129_v8 }
 0x9f0   : > { %v5927_v3 = vpop.eup %5926  ;;  %v1836_v5 = vmul.f32 %v7116_v1, %v1816_v51 }
 0x9f1   : > { %v5929_v36 = vpop.eup %5928  ;;  %5363 = vmatprep.mubr.msk.bf16.mxu0 %vm290_vm0, %v1873_v22  ;;  %v7141_v29 = vadd.f32 %v7124_v60, %v1835_v58  ;;  %v1817_v55 = vmul.f32 %v5927_v3, %v7040_v52 }
 0x9f2   : > { %v7145_v9 = vadd.f32 %v7124_v60, %v1836_v5  ;;  %v1818_v57 = vmul.f32 %v5929_v36, %v7043_v39 }
 0x9f3   : > { %v1837_v14 = vmul.f32 %v7116_v1, %v1817_v55 }
 0x9f4   : > { %v5931_v61 = vpop.eup %5930  ;;  %v1874_v28 = vpack.c.bf16 %v7145_v9, %v7141_v29  ;;  %v1838_v34 = vmul.f32 %v7116_v1, %v1818_v57 }
 0x9f5   : > { %v5933_v30 = vpop.eup %5932  ;;  %v7153_v24 = vadd.f32 %v7124_v60, %v1837_v14  ;;  %v1819_v32 = vmul.f32 %v5931_v61, %v7052_v56 }
 0x9f6   : > { %5364 = vmatmul.mubr.msk.bf16.vlgmr.msra.gmra.mrb[52].mxu0 %vm290_vm0, %v1874_v28  ;;  %v7158_v52 = vadd.f32 %v7124_v60, %v1838_v34  ;;  %v1820_v39 = vmul.f32 %v5933_v30, %v7055_v31 }
 0x9f7   : > { %v1839_v46 = vmul.f32 %v7116_v1, %v1819_v32 }
 0x9f8   : > { %v1875_v16 = vpack.c.bf16 %v7158_v52, %v7153_v24  ;;  %v1840_v48 = vmul.f32 %v7116_v1, %v1820_v39 }
 0x9f9   : > { %v7166_v6 = vadd.f32 %v7124_v60, %v1839_v46 }
 0x9fa   : > { %5367 = vmatprep.mubr.msk.bf16.mxu0 %vm290_vm0, %v1875_v16  ;;  %v7170_v56 = vadd.f32 %v7124_v60, %v1840_v48 }
 0x9fc   : > { %v1876_v40 = vpack.c.bf16 %v7170_v56, %v7166_v6 }
 0x9fe   : > { %5368 = vmatmul.mubr.msk.bf16.gmra.mrb[56].mxu0 %vm290_vm0, %v1876_v40 }
 0xa14   : > { %v1743_v31 = vpop.xlane.xlu0 %1742 }
 0xa15   : > { %v1773_v12 = vmul.f32 0.03125, %v1743_v31 }
 0xa16   : > { %v1746_v37 = vpop.xlane.xlu1 %1745 }
 0xa17   : > { %v1789_v53 = vadd.f32 1e-06, %v1773_v12  ;;  %v1774_v41 = vmul.f32 0.03125, %v1746_v37 }
 0xa18   : > { %v1749_v26 = vpop.xlane.xlu0 %1748 }
 0xa19   : > { %5934 = vrsqrt.f32 %v1789_v53  ;;  %v1790_v18 = vadd.f32 1e-06, %v1774_v41  ;;  %v1775_v44 = vmul.f32 0.03125, %v1749_v26 }
 0xa1a   : > { %v1752_v50 = vpop.xlane.xlu1 %1751 }
 0xa1b   : > { %5936 = vrsqrt.f32 %v1790_v18  ;;  %v1791_v27 = vadd.f32 1e-06, %v1775_v44  ;;  %v1776_v4 = vmul.f32 0.03125, %v1752_v50  ;;  %v5779_v44 = vld [vmem:[#allocation2 + $0x48] sm:$0xff]  }
 0xa1d   : > { %5938 = vrsqrt.f32 %v1791_v27  ;;  %v1792_v43 = vadd.f32 1e-06, %v1776_v4  ;;  %v1755_v11 = vpop.xlane.xlu0 %1754 }
 0xa1e   : > { %v1777_v13 = vmul.f32 0.03125, %v1755_v11 }
 0xa1f   : > { %5940 = vrsqrt.f32 %v1792_v43  ;;  %v1758_v20 = vpop.xlane.xlu1 %1757 }
 0xa20   : > { %v1793_v2 = vadd.f32 1e-06, %v1777_v13  ;;  %v1778_v35 = vmul.f32 0.03125, %v1758_v20 }
 0xa21   : > { %v1761_v54 = vpop.xlane.xlu0 %1760 }
 0xa22   : > { %5942 = vrsqrt.f32 %v1793_v2  ;;  %v1794_v63 = vadd.f32 1e-06, %v1778_v35  ;;  %v1779_v49 = vmul.f32 0.03125, %v1761_v54 }
 0xa23   : > { %v5935_v25 = vpop.eup %5934  ;;  %v1764_v17 = vpop.xlane.xlu1 %1763 }
 0xa24   : > { %5944 = vrsqrt.f32 %v1794_v63  ;;  %v1795_v62 = vadd.f32 1e-06, %v1779_v49  ;;  %v1780_v23 = vmul.f32 0.03125, %v1764_v17  ;;  %v1821_v0 = vmul.f32 %v5935_v25, %v7066_v15 }
 0xa25   : > { %v5937_v21 = vpop.eup %5936 }
 0xa26   : > { %5946 = vrsqrt.f32 %v1795_v62  ;;  %v1796_v38 = vadd.f32 1e-06, %v1780_v23  ;;  %v1822_v51 = vmul.f32 %v5937_v21, %v7069_v10  ;;  %v1841_v58 = vmul.f32 %v7116_v1, %v1821_v0 }
 0xa27   : > { %v5939_v22 = vpop.eup %5938 }
 0xa28   : > { %5948 = vrsqrt.f32 %v1796_v38  ;;  %v1842_v3 = vmul.f32 %v7116_v1, %v1822_v51  ;;  %v1823_v5 = vmul.f32 %v5939_v22, %v7074_v59  ;;  %v7181_v55 = vadd.f32 %v7124_v60, %v1841_v58 }
 0xa29   : > { %v5941_v36 = vpop.eup %5940 }
 0xa2a   : > { %v7184_v57 = vadd.f32 %v7124_v60, %v1842_v3  ;;  %v1824_v15 = vmul.f32 %v5941_v36, %v7080_v47  ;;  %v1843_v14 = vmul.f32 %v7116_v1, %v1823_v5 }
 0xa2c   : > { %v5943_v10 = vpop.eup %5942  ;;  %v1877_v61 = vpack.c.bf16 %v7184_v57, %v7181_v55  ;;  %v1844_v28 = vmul.f32 %v7116_v1, %v1824_v15  ;;  %v7194_v30 = vadd.f32 %v7124_v60, %v1843_v14 }
 0xa2d   : > { %v1825_v34 = vmul.f32 %v5943_v10, %v7089_v45 }
 0xa2e   : > { %v5945_v59 = vpop.eup %5944  ;;  %5371 = vmatprep.mubr.msk.bf16.mxu0 %vm290_vm0, %v1877_v61  ;;  %v7197_v32 = vadd.f32 %v7124_v60, %v1844_v28 }
 0xa2f   : > { %v1826_v47 = vmul.f32 %v5945_v59, %v7093_v7  ;;  %v1845_v39 = vmul.f32 %v7116_v1, %v1825_v34 }
 0xa30   : > { %v5947_v46 = vpop.eup %5946  ;;  %v1878_v16 = vpack.c.bf16 %v7197_v32, %v7194_v30 }
 0xa31   : > { %v1846_v48 = vmul.f32 %v7116_v1, %v1826_v47  ;;  %v1827_v45 = vmul.f32 %v5947_v46, %v7098_v33  ;;  %v7207_v31 = vadd.f32 %v7124_v60, %v1845_v39 }
 0xa32   : > { %v5949_v40 = vpop.eup %5948  ;;  %5372 = vmatmul.mubr.msk.bf16.gmra.mrb[60].mxu0 %vm290_vm0, %v1878_v16 }
 0xa33   : > { %v7210_v12 = vadd.f32 %v7124_v60, %v1846_v48  ;;  %v1828_v7 = vmul.f32 %v5949_v40, %v7104_v42  ;;  %v1847_v37 = vmul.f32 %v7116_v1, %v1827_v45  ;;  %v5778_v42 = vld [vmem:[#allocation2 + $0x40] sm:$0xff]  }
 0xa34   : > { %5383 = vmatprep.subr.bf16.mxu1 %v5778_v42 }
 0xa35   : > { %v1879_v53 = vpack.c.bf16 %v7210_v12, %v7207_v31  ;;  %v1848_v41 = vmul.f32 %v7116_v1, %v1828_v7  ;;  %v7219_v33 = vadd.f32 %v7124_v60, %v1847_v37  ;;  %5384 = vmatpush3.bf16.msra.mxu1 %v5778_v42  ;;  %v4888_v1 = vld [vmem:[%s8724_s2 + $0x4] ss:$0 sm:$0xff] }
 0xa36   : > { %5385 = vmatprep.subr.bf16.mxu1 %v5779_v44 }
 0xa37   : > { %5375 = vmatprep.mubr.msk.bf16.mxu0 %vm290_vm0, %v1879_v53  ;;  %v7222_v26 = vadd.f32 %v7124_v60, %v1848_v41 }
 0xa39   : > { %v1880_v18 = vpack.c.bf16 %v7222_v26, %v7219_v33  ;;  %5386 = vmatpush3.bf16.msra.mxu1 %v5779_v44 }
 0xa3b   : > { %5376 = vmatmul.mubr.msk.bf16.gmra.mrb[64].mxu0 %vm290_vm0, %v1880_v18 }
 0xac9   : > { %v5365_v50 = vpop.f32.mrb[52].mxu0 }
 0xaca   : > { %v2021_v27 = vadd.f32 %v5365_v50, %v4888_v1  ;;  %v1951_v4 = vpop.f32.mrb[53].mxu0 }
 0xacb   : > { %v2019_v60 = vadd.f32 %v4888_v1, %v1951_v4  ;;  %v5366_v43 = vpop.f32.mrb[54].mxu0 }
 0xacc   : > { %v2022_v11 = vadd.f32 %v5366_v43, %v4888_v1  ;;  %v1954_v13 = vpop.f32.mrb[55].mxu0  ;;  %v2037_v2 = vmax.f32 %v2021_v27, 0.0 }
 0xacd   : > { %v2020_v20 = vadd.f32 %v4888_v1, %v1954_v13  ;;  %v2035_v54 = vmax.f32 %v2019_v60, 0.0 }
 0xace   : > { %v2038_v35 = vmax.f32 %v2022_v11, 0.0 }
 0xacf   : > { %v2036_v63 = vmax.f32 %v2020_v20, 0.0 }
 0xad0   : > { %v2060_v49 = vpack.c.bf16 %v2038_v35, %v2037_v2  ;;  %v7241_v35 = vld [vmem:[%s8724_s2 + $0x5] ss:$0 sm:$0xff] }
 0xad1   : > { %v2059_v25 = vpack.c.bf16 %v2036_v63, %v2035_v54  ;;  %v5369_v17 = vpop.f32.mrb[56].mxu0 }
 0xad2   : > { %v2025_v62 = vadd.f32 %v5369_v17, %v4888_v1  ;;  %v1967_v23 = vpop.f32.mrb[57].mxu0 }
 0xad3   : > { %v2023_v0 = vadd.f32 %v4888_v1, %v1967_v23  ;;  %v5370_v21 = vpop.f32.mrb[58].mxu0  ;;  %5387 = vmatprep.mubr.msk.bf16.mxu1 %vm2091_vm2, %v2059_v25 }
 0xad4   : > { %v2026_v38 = vadd.f32 %v5370_v21, %v4888_v1  ;;  %v1970_v51 = vpop.f32.mrb[59].mxu0  ;;  %5388 = vmatmul.mubr.msk.bf16.vlgmr.msra.gmra.mrb[44].mxu1 %vm2091_vm2, %v2060_v49  ;;  %v2041_v22 = vmax.f32 %v2025_v62, 0.0 }
 0xad5   : > { %v2024_v58 = vadd.f32 %v4888_v1, %v1970_v51  ;;  %v2039_v5 = vmax.f32 %v2023_v0, 0.0 }
 0xad6   : > { %v2042_v3 = vmax.f32 %v2026_v38, 0.0 }
 0xad7   : > { %v2040_v36 = vmax.f32 %v2024_v58, 0.0 }
 0xad8   : > { %v2062_v15 = vpack.c.bf16 %v2042_v3, %v2041_v22 }
 0xad9   : > { %v2061_v14 = vpack.c.bf16 %v2040_v36, %v2039_v5 }
 0xadb   : > { %5391 = vmatprep.mubr.msk.bf16.mxu1 %vm2091_vm2, %v2061_v14 }
 0xadc   : > { %5392 = vmatmul.mubr.msk.bf16.gmra.mrb[48].mxu1 %vm2091_vm2, %v2062_v15 }
 0xb05   : > { %v5373_v10 = vpop.f32.mrb[60].mxu0 }
 0xb06   : > { %v2029_v61 = vadd.f32 %v5373_v10, %v4888_v1  ;;  %v1983_v28 = vpop.f32.mrb[61].mxu0 }
 0xb07   : > { %v2027_v34 = vadd.f32 %v4888_v1, %v1983_v28  ;;  %v5374_v59 = vpop.f32.mrb[62].mxu0 }
 0xb08   : > { %v2030_v47 = vadd.f32 %v5374_v59, %v4888_v1  ;;  %v1986_v39 = vpop.f32.mrb[63].mxu0  ;;  %v2045_v16 = vmax.f32 %v2029_v61, 0.0 }
 0xb09   : > { %v2028_v46 = vadd.f32 %v4888_v1, %v1986_v39  ;;  %v2043_v45 = vmax.f32 %v2027_v34, 0.0 }
 0xb0a   : > { %v2046_v48 = vmax.f32 %v2030_v47, 0.0 }
 0xb0b   : > { %v2044_v40 = vmax.f32 %v2028_v46, 0.0 }
 0xb0c   : > { %v2064_v7 = vpack.c.bf16 %v2046_v48, %v2045_v16 }
 0xb0d   : > { %v2063_v37 = vpack.c.bf16 %v2044_v40, %v2043_v45 }
 0xb0e   : > { %v5377_v53 = vpop.f32.mrb[64].mxu0 }
 0xb0f   : > { %v2033_v41 = vadd.f32 %v5377_v53, %v4888_v1  ;;  %5395 = vmatprep.mubr.msk.bf16.mxu1 %vm2091_vm2, %v2063_v37  ;;  %v1999_v18 = vpop.f32.mrb[65].mxu0 }
 0xb10   : > { %v2031_v42 = vadd.f32 %v4888_v1, %v1999_v18  ;;  %5396 = vmatmul.mubr.msk.bf16.gmra.mrb[52].mxu1 %vm2091_vm2, %v2064_v7  ;;  %v5378_v44 = vpop.f32.mrb[66].mxu0 }
 0xb11   : > { %v2034_v50 = vadd.f32 %v5378_v44, %v4888_v1  ;;  %v2002_v27 = vpop.f32.mrb[67].mxu0  ;;  %v2049_v60 = vmax.f32 %v2033_v41, 0.0 }
 0xb12   : > { %v2032_v4 = vadd.f32 %v4888_v1, %v2002_v27  ;;  %v2047_v11 = vmax.f32 %v2031_v42, 0.0 }
 0xb13   : > { %v2050_v43 = vmax.f32 %v2034_v50, 0.0 }
 0xb14   : > { %v2048_v13 = vmax.f32 %v2032_v4, 0.0 }
 0xb15   : > { %v2066_v20 = vpack.c.bf16 %v2050_v43, %v2049_v60 }
 0xb16   : > { %v2065_v2 = vpack.c.bf16 %v2048_v13, %v2047_v11 }
 0xb18   : > { %5399 = vmatprep.mubr.msk.bf16.mxu1 %vm2091_vm2, %v2065_v2 }
 0xb19   : > { %5400 = vmatmul.mubr.msk.bf16.gmra.mrb[56].mxu1 %vm2091_vm2, %v2066_v20 }
 0xba7   : > { %v5389_v54 = vpop.f32.mrb[44].mxu1 }
 0xba8   : > { %v2150_v63 = vpop.f32.mrb[45].mxu1  ;;  %v2220_v49 = vadd.f32 %v5389_v54, %v7241_v35 }
 0xba9   : > { %v2218_v1 = vadd.f32 %v7241_v35, %v2150_v63  ;;  %v5390_v25 = vpop.f32.mrb[46].mxu1 }
 0xbaa   : > { %v2153_v17 = vpop.f32.mrb[47].mxu1  ;;  %v2221_v23 = vadd.f32 %v5390_v25, %v7241_v35  ;;  %v7251_v21 = vadd.f32 %v2220_v49, %v7141_v29 }
 0xbab   : > { %v7246_v62 = vadd.f32 %v2218_v1, %v7129_v8  ;;  %v2219_v0 = vadd.f32 %v7241_v35, %v2153_v17 }
 0xbac   : > { %v7259_v58 = vadd.f32 %v2221_v23, %v7145_v9 }
 0xbad   : > { %v7254_v38 = vadd.f32 %v2219_v0, %v7132_v19  ;;  %v2252_v51 = vsel %vm290_vm0, %v7246_v62, 0.0  ;;  %v2258_v19 = vsel %vm290_vm0, %v7251_v21, 0.0 }
 0xbae   : > { %2253 = vadd.xlane.f32.xlu0 %v2252_v51  ;;  %v2261_v61 = vsel %vm290_vm0, %v7259_v58, 0.0 }
 0xbaf   : > { %v5393_v22 = vpop.f32.mrb[48].mxu1  ;;  %v2255_v8 = vsel %vm290_vm0, %v7254_v38, 0.0 }
 0xbb0   : > { %2256 = vadd.xlane.f32.xlu1 %v2255_v8  ;;  %v2166_v3 = vpop.f32.mrb[49].mxu1  ;;  %v2224_v5 = vadd.f32 %v5393_v22, %v7241_v35 }
 0xbb1   : > { %v2222_v29 = vadd.f32 %v7241_v35, %v2166_v3  ;;  %v5394_v36 = vpop.f32.mrb[50].mxu1 }
 0xbb2   : > { %2259 = vadd.xlane.f32.xlu0 %v2258_v19  ;;  %v2169_v15 = vpop.f32.mrb[51].mxu1  ;;  %v2225_v9 = vadd.f32 %v5394_v36, %v7241_v35  ;;  %v7275_v28 = vadd.f32 %v2224_v5, %v7166_v6 }
 0xbb3   : > { %v7268_v14 = vadd.f32 %v2222_v29, %v7153_v24  ;;  %v2223_v10 = vadd.f32 %v7241_v35, %v2169_v15 }
 0xbb4   : > { %2262 = vadd.xlane.f32.xlu1 %v2261_v61  ;;  %v7283_v24 = vadd.f32 %v2225_v9, %v7170_v56  ;;  %v2270_v39 = vsel %vm290_vm0, %v7275_v28, 0.0 }
 0xbb5   : > { %v7278_v34 = vadd.f32 %v2223_v10, %v7158_v52  ;;  %v2264_v59 = vsel %vm290_vm0, %v7268_v14, 0.0 }
 0xbb6   : > { %2265 = vadd.xlane.f32.xlu0 %v2264_v59  ;;  %v2273_v6 = vsel %vm290_vm0, %v7283_v24, 0.0 }
 0xbb7   : > { %v2267_v47 = vsel %vm290_vm0, %v7278_v34, 0.0 }
 0xbb8   : > { %2268 = vadd.xlane.f32.xlu1 %v2267_v47 }
 0xbba   : > { %2271 = vadd.xlane.f32.xlu0 %v2270_v39 }
 0xbbc   : > { %2274 = vadd.xlane.f32.xlu1 %v2273_v6 }
 0xbe3   : > { %v5397_v52 = vpop.f32.mrb[52].mxu1 }
 0xbe4   : > { %v2182_v46 = vpop.f32.mrb[53].mxu1  ;;  %v2228_v16 = vadd.f32 %v5397_v52, %v7241_v35 }
 0xbe5   : > { %v2226_v48 = vadd.f32 %v7241_v35, %v2182_v46  ;;  %v5398_v56 = vpop.f32.mrb[54].mxu1 }
 0xbe6   : > { %v2185_v45 = vpop.f32.mrb[55].mxu1  ;;  %v2229_v7 = vadd.f32 %v5398_v56, %v7241_v35  ;;  %v7299_v53 = vadd.f32 %v2228_v16, %v7194_v30 }
 0xbe7   : > { %v7294_v40 = vadd.f32 %v2226_v48, %v7181_v55  ;;  %v2227_v37 = vadd.f32 %v7241_v35, %v2185_v45 }
 0xbe8   : > { %v7307_v42 = vadd.f32 %v2229_v7, %v7197_v32  ;;  %v2282_v50 = vsel %vm290_vm0, %v7299_v53, 0.0 }
 0xbe9   : > { %v7302_v41 = vadd.f32 %v2227_v37, %v7184_v57  ;;  %v2276_v18 = vsel %vm290_vm0, %v7294_v40, 0.0 }
 0xbea   : > { %2277 = vadd.xlane.f32.xlu0 %v2276_v18  ;;  %v2285_v60 = vsel %vm290_vm0, %v7307_v42, 0.0 }
 0xbeb   : > { %v2279_v55 = vsel %vm290_vm0, %v7302_v41, 0.0 }
 0xbec   : > { %2280 = vadd.xlane.f32.xlu1 %v2279_v55  ;;  %v5401_v44 = vpop.f32.mrb[56].mxu1  ;;  %v5780_v55 = vld [vmem:[#allocation2 + $0x50] sm:$0xff]  }
 0xbed   : > { %v2198_v30 = vpop.f32.mrb[57].mxu1  ;;  %v2232_v27 = vadd.f32 %v5401_v44, %v7241_v35  ;;  %5403 = vmatprep.subr.bf16.mxu0 %v5780_v55 }
 0xbee   : > { %2283 = vadd.xlane.f32.xlu0 %v2282_v50  ;;  %v2230_v57 = vadd.f32 %v7241_v35, %v2198_v30  ;;  %v5402_v4 = vpop.f32.mrb[58].mxu1  ;;  %5404 = vmatpush3.bf16.msra.mxu0 %v5780_v55 }
 0xbef   : > { %v2201_v32 = vpop.f32.mrb[59].mxu1  ;;  %v2233_v11 = vadd.f32 %v5402_v4, %v7241_v35  ;;  %v7323_v20 = vadd.f32 %v2232_v27, %v7219_v33 }
 0xbf0   : > { %v7318_v43 = vadd.f32 %v2230_v57, %v7207_v31  ;;  %2286 = vadd.xlane.f32.xlu1 %v2285_v60  ;;  %v2231_v13 = vadd.f32 %v7241_v35, %v2201_v32 }
 0xbf1   : > { %v7331_v63 = vadd.f32 %v2233_v11, %v7222_v26  ;;  %v2294_v35 = vsel %vm290_vm0, %v7323_v20, 0.0 }
 0xbf2   : > { %v7326_v2 = vadd.f32 %v2231_v13, %v7210_v12  ;;  %v2288_v54 = vsel %vm290_vm0, %v7318_v43, 0.0 }
 0xbf3   : > { %2289 = vadd.xlane.f32.xlu0 %v2288_v54  ;;  %v2297_v33 = vsel %vm290_vm0, %v7331_v63, 0.0 }
 0xbf4   : > { %v2291_v31 = vsel %vm290_vm0, %v7326_v2, 0.0 }
 0xbf5   : > { %2292 = vadd.xlane.f32.xlu1 %v2291_v31 }
 0xbf7   : > { %2295 = vadd.xlane.f32.xlu0 %v2294_v35 }
 0xbf9   : > { %2298 = vadd.xlane.f32.xlu1 %v2297_v33 }
 0xc3b   : > { %v2254_v12 = vpop.xlane.xlu0 %2253 }
 0xc3c   : > { %v2300_v49 = vmul.f32 0.03125, %v2254_v12 }
 0xc3d   : > { %v2257_v1 = vpop.xlane.xlu1 %2256 }
 0xc3e   : > { %v7340_v25 = vsub.f32 %v7246_v62, %v2300_v49  ;;  %v2301_v26 = vmul.f32 0.03125, %v2257_v1 }
 0xc3f   : > { %v2260_v17 = vpop.xlane.xlu0 %2259 }
 0xc40   : > { %v7343_v23 = vsub.f32 %v7254_v38, %v2301_v26  ;;  %v2302_v0 = vmul.f32 0.03125, %v2260_v17  ;;  %v2332_v51 = vmul.f32 %v7340_v25, %v7340_v25 }
 0xc41   : > { %v2263_v22 = vpop.xlane.xlu1 %2262 }
 0xc42   : > { %v7348_v8 = vsub.f32 %v7251_v21, %v2302_v0  ;;  %v2303_v3 = vmul.f32 0.03125, %v2263_v22  ;;  %v2348_v5 = vsel %vm290_vm0, %v2332_v51, 0.0  ;;  %v2333_v62 = vmul.f32 %v7343_v23, %v7343_v23 }
 0xc43   : > { %v2266_v29 = vpop.xlane.xlu0 %2265  ;;  %2349 = vadd.xlane.f32.xlu0 %v2348_v5 }
 0xc44   : > { %v7354_v36 = vsub.f32 %v7259_v58, %v2303_v3  ;;  %v2304_v38 = vmul.f32 0.03125, %v2266_v29  ;;  %v2351_v19 = vsel %vm290_vm0, %v2333_v62, 0.0  ;;  %v2334_v15 = vmul.f32 %v7348_v8, %v7348_v8 }
 0xc45   : > { %2352 = vadd.xlane.f32.xlu1 %v2351_v19  ;;  %v2269_v21 = vpop.xlane.xlu1 %2268 }
 0xc46   : > { %v7360_v9 = vsub.f32 %v7268_v14, %v2304_v38  ;;  %v2305_v10 = vmul.f32 0.03125, %v2269_v21  ;;  %v2354_v61 = vsel %vm290_vm0, %v2334_v15, 0.0  ;;  %v2335_v59 = vmul.f32 %v7354_v36, %v7354_v36 }
 0xc47   : > { %v2272_v47 = vpop.xlane.xlu0 %2271  ;;  %2355 = vadd.xlane.f32.xlu0 %v2354_v61 }
 0xc48   : > { %v7366_v58 = vsub.f32 %v7278_v34, %v2305_v10  ;;  %v2306_v39 = vmul.f32 0.03125, %v2272_v47  ;;  %v2357_v6 = vsel %vm290_vm0, %v2335_v59, 0.0  ;;  %v2336_v52 = vmul.f32 %v7360_v9, %v7360_v9 }
 0xc49   : > { %2358 = vadd.xlane.f32.xlu1 %v2357_v6  ;;  %v2275_v14 = vpop.xlane.xlu1 %2274 }
 0xc4a   : > { %v7372_v46 = vsub.f32 %v7275_v28, %v2306_v39  ;;  %v2307_v16 = vmul.f32 0.03125, %v2275_v14  ;;  %v2360_v48 = vsel %vm290_vm0, %v2336_v52, 0.0  ;;  %v2337_v56 = vmul.f32 %v7366_v58, %v7366_v58 }
 0xc4b   : > { %2361 = vadd.xlane.f32.xlu0 %v2360_v48 }
 0xc4c   : > { %v7378_v34 = vsub.f32 %v7283_v24, %v2307_v16  ;;  %v2363_v45 = vsel %vm290_vm0, %v2337_v56, 0.0  ;;  %v2338_v7 = vmul.f32 %v7372_v46, %v7372_v46  ;;  %v5781_v24 = vld [vmem:[#allocation2 + $0x58] sm:$0xff]  }
 0xc4d   : > { %2364 = vadd.xlane.f32.xlu1 %v2363_v45  ;;  %5405 = vmatprep.subr.bf16.mxu0 %v5781_v24 }
 0xc4e   : > { %v2366_v37 = vsel %vm290_vm0, %v2338_v7, 0.0  ;;  %v2339_v28 = vmul.f32 %v7378_v34, %v7378_v34  ;;  %5406 = vmatpush3.bf16.msra.mxu0 %v5781_v24 }
 0xc4f   : > { %2367 = vadd.xlane.f32.xlu0 %v2366_v37 }
 0xc50   : > { %v2369_v18 = vsel %vm290_vm0, %v2339_v28, 0.0 }
 0xc51   : > { %2370 = vadd.xlane.f32.xlu1 %v2369_v18 }
 0xc77   : > { %v2278_v44 = vpop.xlane.xlu0 %2277 }
 0xc78   : > { %v2308_v50 = vmul.f32 0.03125, %v2278_v44 }
 0xc79   : > { %v2281_v30 = vpop.xlane.xlu1 %2280 }
 0xc7a   : > { %v7388_v27 = vsub.f32 %v7294_v40, %v2308_v50  ;;  %v2309_v57 = vmul.f32 0.03125, %v2281_v30 }
 0xc7b   : > { %v2284_v4 = vpop.xlane.xlu0 %2283 }
 0xc7c   : > { %v7391_v60 = vsub.f32 %v7302_v41, %v2309_v57  ;;  %v2310_v32 = vmul.f32 0.03125, %v2284_v4  ;;  %v2340_v11 = vmul.f32 %v7388_v27, %v7388_v27 }
 0xc7d   : > { %v2287_v13 = vpop.xlane.xlu1 %2286 }
 0xc7e   : > { %v7396_v54 = vsub.f32 %v7299_v53, %v2310_v32  ;;  %v2311_v31 = vmul.f32 0.03125, %v2287_v13  ;;  %v2372_v35 = vsel %vm290_vm0, %v2340_v11, 0.0  ;;  %v2341_v40 = vmul.f32 %v7391_v60, %v7391_v60  ;;  %v7438_v11 = vld [vmem:[%s8724_s2 + $0x2] ss:$0 sm:$0xff] }
 0xc7f   : > { %2373 = vadd.xlane.f32.xlu0 %v2372_v35 }
 0xc80   : > { %v7402_v33 = vsub.f32 %v7307_v42, %v2311_v31  ;;  %v2290_v41 = vpop.xlane.xlu0 %2289  ;;  %v2375_v12 = vsel %vm290_vm0, %v2341_v40, 0.0  ;;  %v2342_v49 = vmul.f32 %v7396_v54, %v7396_v54 }
 0xc81   : > { %v2312_v1 = vmul.f32 0.03125, %v2290_v41  ;;  %2376 = vadd.xlane.f32.xlu1 %v2375_v12 }
 0xc82   : > { %v2378_v53 = vsel %vm290_vm0, %v2342_v49, 0.0  ;;  %v2293_v26 = vpop.xlane.xlu1 %2292  ;;  %v2343_v17 = vmul.f32 %v7402_v33, %v7402_v33 }
 0xc83   : > { %v7411_v0 = vsub.f32 %v7318_v43, %v2312_v1  ;;  %2379 = vadd.xlane.f32.xlu0 %v2378_v53  ;;  %v2313_v42 = vmul.f32 0.03125, %v2293_v26  ;;  %v7446_v53 = vld [vmem:[%s8724_s2 + $0x3] ss:$0 sm:$0xff] }
 0xc84   : > { %v2296_v51 = vpop.xlane.xlu0 %2295  ;;  %v2381_v22 = vsel %vm290_vm0, %v2343_v17, 0.0 }
 0xc85   : > { %v7415_v3 = vsub.f32 %v7326_v2, %v2313_v42  ;;  %v2314_v5 = vmul.f32 0.03125, %v2296_v51  ;;  %2382 = vadd.xlane.f32.xlu1 %v2381_v22  ;;  %v2344_v62 = vmul.f32 %v7411_v0, %v7411_v0 }
 0xc86   : > { %v2299_v29 = vpop.xlane.xlu1 %2298 }
 0xc87   : > { %v7420_v38 = vsub.f32 %v7323_v20, %v2314_v5  ;;  %v2315_v19 = vmul.f32 0.03125, %v2299_v29  ;;  %v2384_v43 = vsel %vm290_vm0, %v2344_v62, 0.0  ;;  %v2345_v15 = vmul.f32 %v7415_v3, %v7415_v3 }
 0xc88   : > { %2385 = vadd.xlane.f32.xlu0 %v2384_v43 }
 0xc89   : > { %v7426_v21 = vsub.f32 %v7331_v63, %v2315_v19  ;;  %v2387_v2 = vsel %vm290_vm0, %v2345_v15, 0.0  ;;  %v2346_v10 = vmul.f32 %v7420_v38, %v7420_v38 }
 0xc8a   : > { %2388 = vadd.xlane.f32.xlu1 %v2387_v2 }
 0xc8b   : > { %v2390_v61 = vsel %vm290_vm0, %v2346_v10, 0.0  ;;  %v2347_v20 = vmul.f32 %v7426_v21, %v7426_v21 }
 0xc8c   : > { %2391 = vadd.xlane.f32.xlu0 %v2390_v61 }
 0xc8d   : > { %v2393_v59 = vsel %vm290_vm0, %v2347_v20, 0.0 }
 0xc8e   : > { %2394 = vadd.xlane.f32.xlu1 %v2393_v59 }
 0xcd0   : > { %v2350_v47 = vpop.xlane.xlu0 %2349 }
 0xcd1   : > { %v2396_v39 = vmul.f32 0.03125, %v2350_v47 }
 0xcd2   : > { %v2353_v6 = vpop.xlane.xlu1 %2352 }
 0xcd3   : > { %v2412_v63 = vadd.f32 1e-06, %v2396_v39  ;;  %v2397_v52 = vmul.f32 0.03125, %v2353_v6 }
 0xcd4   : > { %v2356_v14 = vpop.xlane.xlu0 %2355 }
 0xcd5   : > { %5950 = vrsqrt.f32 %v2412_v63  ;;  %v2413_v16 = vadd.f32 1e-06, %v2397_v52  ;;  %v2398_v48 = vmul.f32 0.03125, %v2356_v14 }
 0xcd6   : > { %v2359_v56 = vpop.xlane.xlu1 %2358 }
 0xcd7   : > { %5952 = vrsqrt.f32 %v2413_v16  ;;  %v2414_v45 = vadd.f32 1e-06, %v2398_v48  ;;  %v2399_v7 = vmul.f32 0.03125, %v2359_v56 }
 0xcd8   : > { %v2362_v37 = vpop.xlane.xlu0 %2361 }
 0xcd9   : > { %5954 = vrsqrt.f32 %v2414_v45  ;;  %v2415_v28 = vadd.f32 1e-06, %v2399_v7  ;;  %v2400_v18 = vmul.f32 0.03125, %v2362_v37 }
 0xcda   : > { %v2365_v55 = vpop.xlane.xlu1 %2364 }
 0xcdb   : > { %5956 = vrsqrt.f32 %v2415_v28  ;;  %v2416_v24 = vadd.f32 1e-06, %v2400_v18  ;;  %v2401_v44 = vmul.f32 0.03125, %v2365_v55 }
 0xcdc   : > { %v2368_v50 = vpop.xlane.xlu0 %2367 }
 0xcdd   : > { %5958 = vrsqrt.f32 %v2416_v24  ;;  %v2417_v30 = vadd.f32 1e-06, %v2401_v44  ;;  %v2402_v57 = vmul.f32 0.03125, %v2368_v50 }
 0xcde   : > { %v2371_v4 = vpop.xlane.xlu1 %2370 }
 0xcdf   : > { %v5951_v32 = vpop.eup %5950  ;;  %5960 = vrsqrt.f32 %v2417_v30  ;;  %v2418_v13 = vadd.f32 1e-06, %v2402_v57  ;;  %v2403_v31 = vmul.f32 0.03125, %v2371_v4 }
 0xce0   : > { %v2444_v35 = vmul.f32 %v5951_v32, %v7340_v25 }
 0xce1   : > { %v5953_v40 = vpop.eup %5952  ;;  %5962 = vrsqrt.f32 %v2418_v13  ;;  %v2419_v41 = vadd.f32 1e-06, %v2403_v31 }
 0xce2   : > { %v2445_v12 = vmul.f32 %v5953_v40, %v7343_v23  ;;  %v2464_v49 = vmul.f32 %v7438_v11, %v2444_v35 }
 0xce3   : > { %v5955_v1 = vpop.eup %5954  ;;  %5964 = vrsqrt.f32 %v2419_v41 }
 0xce4   : > { %v2446_v26 = vmul.f32 %v5955_v1, %v7348_v8  ;;  %v2465_v17 = vmul.f32 %v7438_v11, %v2445_v12  ;;  %v7453_v23 = vadd.f32 %v7446_v53, %v2464_v49 }
 0xce5   : > { %v5957_v42 = vpop.eup %5956 }
 0xce6   : > { %v2466_v25 = vmul.f32 %v7438_v11, %v2446_v26  ;;  %v2447_v51 = vmul.f32 %v5957_v42, %v7354_v36  ;;  %v7456_v22 = vadd.f32 %v7446_v53, %v2465_v17 }
 0xce7   : > { %v5959_v5 = vpop.eup %5958 }
 0xce8   : > { %v2467_v62 = vmul.f32 %v7438_v11, %v2447_v51  ;;  %v2505_v29 = vpack.c.bf16 %v7456_v22, %v7453_v23  ;;  %v2448_v8 = vmul.f32 %v5959_v5, %v7360_v9  ;;  %v7463_v43 = vadd.f32 %v7446_v53, %v2466_v25 }
 0xce9   : > { %v5961_v19 = vpop.eup %5960 }
 0xcea   : > { %v7466_v36 = vadd.f32 %v7446_v53, %v2467_v62  ;;  %5407 = vmatprep.mubr.msk.bf16.mxu0 %vm290_vm0, %v2505_v29  ;;  %v2449_v15 = vmul.f32 %v5961_v19, %v7366_v58  ;;  %v2468_v2 = vmul.f32 %v7438_v11, %v2448_v8 }
 0xceb   : > { %v5963_v10 = vpop.eup %5962 }
 0xcec   : > { %v2506_v61 = vpack.c.bf16 %v7466_v36, %v7463_v43  ;;  %v2469_v20 = vmul.f32 %v7438_v11, %v2449_v15  ;;  %v2450_v9 = vmul.f32 %v5963_v10, %v7372_v46  ;;  %v7477_v47 = vadd.f32 %v7446_v53, %v2468_v2 }
 0xced   : > { %v5965_v59 = vpop.eup %5964 }
 0xcee   : > { %5408 = vmatmul.mubr.msk.bf16.vlgmr.msra.gmra.mrb[68].mxu0 %vm290_vm0, %v2506_v61  ;;  %v7480_v39 = vadd.f32 %v7446_v53, %v2469_v20  ;;  %v2451_v58 = vmul.f32 %v5965_v59, %v7378_v34  ;;  %v2470_v6 = vmul.f32 %v7438_v11, %v2450_v9 }
 0xcf0   : > { %v2507_v63 = vpack.c.bf16 %v7480_v39, %v7477_v47  ;;  %v2471_v52 = vmul.f32 %v7438_v11, %v2451_v58  ;;  %v7489_v46 = vadd.f32 %v7446_v53, %v2470_v6 }
 0xcf2   : > { %5411 = vmatprep.mubr.msk.bf16.mxu0 %vm290_vm0, %v2507_v63  ;;  %v7492_v14 = vadd.f32 %v7446_v53, %v2471_v52 }
 0xcf4   : > { %8743 = vst [vmem:[#allocation5_spill] sm:$0xff] %v7492_v14  ;;  %v2508_v16 = vpack.c.bf16 %v7492_v14, %v7489_v46 }
 0xcf6   : > { %5412 = vmatmul.mubr.msk.bf16.gmra.mrb[72].mxu0 %vm290_vm0, %v2508_v16 }
 0xd0c   : > { %v2374_v34 = vpop.xlane.xlu0 %2373 }
 0xd0d   : > { %v2404_v48 = vmul.f32 0.03125, %v2374_v34 }
 0xd0e   : > { %v2377_v56 = vpop.xlane.xlu1 %2376 }
 0xd0f   : > { %v2420_v45 = vadd.f32 1e-06, %v2404_v48  ;;  %v2405_v7 = vmul.f32 0.03125, %v2377_v56 }
 0xd10   : > { %v2380_v37 = vpop.xlane.xlu0 %2379 }
 0xd11   : > { %5966 = vrsqrt.f32 %v2420_v45  ;;  %v2421_v28 = vadd.f32 1e-06, %v2405_v7  ;;  %v2406_v18 = vmul.f32 0.03125, %v2380_v37 }
 0xd12   : > { %v2383_v55 = vpop.xlane.xlu1 %2382 }
 0xd13   : > { %5968 = vrsqrt.f32 %v2421_v28  ;;  %v2422_v24 = vadd.f32 1e-06, %v2406_v18  ;;  %v2407_v44 = vmul.f32 0.03125, %v2383_v55 }
 0xd15   : > { %5970 = vrsqrt.f32 %v2422_v24  ;;  %v2423_v50 = vadd.f32 1e-06, %v2407_v44  ;;  %v2386_v30 = vpop.xlane.xlu0 %2385 }
 0xd16   : > { %v2408_v57 = vmul.f32 0.03125, %v2386_v30 }
 0xd17   : > { %5972 = vrsqrt.f32 %v2423_v50  ;;  %v2389_v4 = vpop.xlane.xlu1 %2388 }
 0xd18   : > { %v2424_v32 = vadd.f32 1e-06, %v2408_v57  ;;  %v2409_v13 = vmul.f32 0.03125, %v2389_v4 }
 0xd19   : > { %v2392_v31 = vpop.xlane.xlu0 %2391 }
 0xd1a   : > { %5974 = vrsqrt.f32 %v2424_v32  ;;  %v2425_v35 = vadd.f32 1e-06, %v2409_v13  ;;  %v2410_v40 = vmul.f32 0.03125, %v2392_v31 }
 0xd1b   : > { %v5967_v41 = vpop.eup %5966  ;;  %v2395_v12 = vpop.xlane.xlu1 %2394 }
 0xd1c   : > { %5976 = vrsqrt.f32 %v2425_v35  ;;  %v2426_v49 = vadd.f32 1e-06, %v2410_v40  ;;  %v2411_v1 = vmul.f32 0.03125, %v2395_v12  ;;  %v2452_v26 = vmul.f32 %v5967_v41, %v7388_v27 }
 0xd1d   : > { %v5969_v17 = vpop.eup %5968 }
 0xd1e   : > { %5978 = vrsqrt.f32 %v2426_v49  ;;  %v2427_v42 = vadd.f32 1e-06, %v2411_v1  ;;  %v2453_v25 = vmul.f32 %v5969_v17, %v7391_v60  ;;  %v2472_v51 = vmul.f32 %v7438_v11, %v2452_v26 }
 0xd1f   : > { %v5971_v5 = vpop.eup %5970 }
 0xd20   : > { %5980 = vrsqrt.f32 %v2427_v42  ;;  %v2473_v62 = vmul.f32 %v7438_v11, %v2453_v25  ;;  %v2454_v29 = vmul.f32 %v5971_v5, %v7396_v54  ;;  %v7503_v19 = vadd.f32 %v7446_v53, %v2472_v51 }
 0xd21   : > { %v5973_v8 = vpop.eup %5972 }
 0xd22   : > { %8744 = vst [vmem:[#allocation6_spill] sm:$0xff] %v7503_v19  ;;  %v7506_v15 = vadd.f32 %v7446_v53, %v2473_v62  ;;  %v2455_v27 = vmul.f32 %v5973_v8, %v7402_v33  ;;  %v2474_v2 = vmul.f32 %v7438_v11, %v2454_v29 }
 0xd24   : > { %8745 = vst [vmem:[#allocation7_spill] sm:$0xff] %v7506_v15  ;;  %v5975_v60 = vpop.eup %5974  ;;  %v2509_v10 = vpack.c.bf16 %v7506_v15, %v7503_v19  ;;  %v2475_v61 = vmul.f32 %v7438_v11, %v2455_v27  ;;  %v7516_v9 = vadd.f32 %v7446_v53, %v2474_v2 }
 0xd25   : > { %v2456_v20 = vmul.f32 %v5975_v60, %v7411_v0 }
 0xd26   : > { %v5977_v54 = vpop.eup %5976  ;;  %5415 = vmatprep.mubr.msk.bf16.mxu0 %vm290_vm0, %v2509_v10  ;;  %8746 = vst [vmem:[#allocation8_spill] sm:$0xff] %v7516_v9  ;;  %v7519_v59 = vadd.f32 %v7446_v53, %v2475_v61 }
 0xd27   : > { %v2457_v33 = vmul.f32 %v5977_v54, %v7415_v3  ;;  %v2476_v58 = vmul.f32 %v7438_v11, %v2456_v20 }
 0xd28   : > { %8747 = vst [vmem:[#allocation9_spill] sm:$0xff] %v7519_v59  ;;  %v5979_v6 = vpop.eup %5978  ;;  %v2510_v63 = vpack.c.bf16 %v7519_v59, %v7516_v9 }
 0xd29   : > { %v2477_v52 = vmul.f32 %v7438_v11, %v2457_v33  ;;  %v2458_v0 = vmul.f32 %v5979_v6, %v7420_v38  ;;  %v7529_v34 = vadd.f32 %v7446_v53, %v2476_v58 }
 0xd2a   : > { %v5981_v16 = vpop.eup %5980  ;;  %5416 = vmatmul.mubr.msk.bf16.gmra.mrb[76].mxu0 %vm290_vm0, %v2510_v63 }
 0xd2b   : > { %8748 = vst [vmem:[#allocation10_spill] sm:$0xff] %v7529_v34  ;;  %v7532_v48 = vadd.f32 %v7446_v53, %v2477_v52  ;;  %v2459_v3 = vmul.f32 %v5981_v16, %v7426_v21  ;;  %v2478_v56 = vmul.f32 %v7438_v11, %v2458_v0 }
 0xd2d   : > { %8749 = vst [vmem:[#allocation11_spill] sm:$0xff] %v7532_v48  ;;  %v2511_v45 = vpack.c.bf16 %v7532_v48, %v7529_v34  ;;  %v2479_v7 = vmul.f32 %v7438_v11, %v2459_v3  ;;  %v7541_v38 = vadd.f32 %v7446_v53, %v2478_v56 }
 0xd2f   : > { %5419 = vmatprep.mubr.msk.bf16.mxu0 %vm290_vm0, %v2511_v45  ;;  %8750 = vst [vmem:[#allocation12_spill] sm:$0xff] %v7541_v38  ;;  %v7544_v37 = vadd.f32 %v7446_v53, %v2479_v7 }
 0xd31   : > { %8751 = vst [vmem:[#allocation13_spill] sm:$0xff] %v7544_v37  ;;  %v2512_v28 = vpack.c.bf16 %v7544_v37, %v7541_v38 }
 0xd33   : > { %5420 = vmatmul.mubr.msk.bf16.gmra.mrb[80].mxu0 %vm290_vm0, %v2512_v28 }
 0xdc1   : > { %v5409_v21 = vpop.f32.mrb[68].mxu0 }
 0xdc2   : > { %v2583_v18 = vpop.f32.mrb[69].mxu0 }
 0xdc3   : > { %v5410_v55 = vpop.f32.mrb[70].mxu0 }
 0xdc4   : > { %v7549_v24 = vpack.c.bf16 %v5410_v55, %v5409_v21  ;;  %v2586_v44 = vpop.f32.mrb[71].mxu0 }
 0xdc5   : > { %v7551_v11 = vpack.c.bf16 %v2586_v44, %v2583_v18 }
 0xdc6   : > { %2664 = vrot.lane.b32.xlu1 %v7549_v24, %s6249_s11 }
 0xdc7   : > { %2662 = vrot.lane.b32.xlu0 %v7551_v11, %s6249_s11  ;;  %5439 = vmatprep.mubr.msk.bf16.mxu1 %vm444_vm1, %v7551_v11 }
 0xdc9   : > { %v5413_v53 = vpop.f32.mrb[72].mxu0 }
 0xdca   : > { %v2599_v50 = vpop.f32.mrb[73].mxu0 }
 0xdcb   : > { %v5414_v30 = vpop.f32.mrb[74].mxu0 }
 0xdcc   : > { %v7559_v57 = vpack.c.bf16 %v5414_v30, %v5413_v53  ;;  %v2602_v4 = vpop.f32.mrb[75].mxu0 }
 0xdcd   : > { %v7561_v32 = vpack.c.bf16 %v2602_v4, %v2599_v50  ;;  %v7630_v50 = vld [vmem:[%s6443_s16 + $0x10] sm:$0xff] }
 0xdce   : > { %2668 = vrot.lane.b32.xlu0 %v7559_v57, %s6249_s11 }
 0xdcf   : > { %2666 = vrot.lane.b32.xlu1 %v7561_v32, %s6249_s11 }
 0xdfd   : > { %v5417_v13 = vpop.f32.mrb[76].mxu0 }
 0xdfe   : > { %v2615_v31 = vpop.f32.mrb[77].mxu0 }
 0xdff   : > { %v5418_v35 = vpop.f32.mrb[78].mxu0 }
 0xe00   : > { %v7567_v40 = vpack.c.bf16 %v5418_v35, %v5417_v13  ;;  %v2618_v41 = vpop.f32.mrb[79].mxu0  ;;  %v7636_v13 = vld [vmem:[%s6443_s16] sm:$0xff] }
 0xe01   : > { %v7569_v12 = vpack.c.bf16 %v2618_v41, %v2615_v31  ;;  %v7644_v41 = vld [vmem:[%s6443_s16 + $0x18] sm:$0xff] }
 0xe02   : > { %2672 = vrot.lane.b32.xlu0 %v7567_v40, %s6249_s11 }
 0xe03   : > { %2670 = vrot.lane.b32.xlu1 %v7569_v12, %s6249_s11 }
 0xe06   : > { %v5421_v49 = vpop.f32.mrb[80].mxu0 }
 0xe07   : > { %v2631_v1 = vpop.f32.mrb[81].mxu0 }
 0xe08   : > { %v5422_v26 = vpop.f32.mrb[82].mxu0 }
 0xe09   : > { %v7575_v17 = vpack.c.bf16 %v5422_v26, %v5421_v49  ;;  %v2634_v42 = vpop.f32.mrb[83].mxu0 }
 0xe0a   : > { %v7577_v25 = vpack.c.bf16 %v2634_v42, %v2631_v1 }
 0xe0b   : > { %2676 = vrot.lane.b32.xlu0 %v7575_v17, %s6249_s11 }
 0xe0c   : > { %2674 = vrot.lane.b32.xlu1 %v7577_v25, %s6249_s11 }
 0xe0f   : > { %3007 = vrot.lane.b32.xlu0 %v7551_v11, %s6250_s12 }
 0xe10   : > { %3009 = vrot.lane.b32.xlu1 %v7549_v24, %s6250_s12 }
 0xe13   : > { %3011 = vrot.lane.b32.xlu0 %v7561_v32, %s6250_s12 }
 0xe14   : > { %3013 = vrot.lane.b32.xlu1 %v7559_v57, %s6250_s12 }
 0xe17   : > { %3015 = vrot.lane.b32.xlu0 %v7569_v12, %s6250_s12 }
 0xe18   : > { %3019 = vrot.lane.b32.xlu1 %v7577_v25, %s6250_s12 }
 0xe1b   : > { %3017 = vrot.lane.b32.xlu0 %v7567_v40, %s6250_s12 }
 0xe1f   : > { %3021 = vrot.lane.b32.xlu0 %v7575_v17, %s6250_s12 }
 0xe38   : > { %v2665_v62 = vpop.permute.xlu1 %2664 }
 0xe39   : > { %v2663_v51 = vpop.permute.xlu0 %2662  ;;  %v2706_v29 = vsel %vm444_vm1, %v2665_v62, 0 }
 0xe3a   : > { %5647 = vmatprep.subr.msk.bf16.mxu1 %vm444_vm1, %v2663_v51  ;;  %v2703_v5 = vsel %vm444_vm1, %v2663_v51, 0 }
 0xe3b   : > { %5424 = vmatpush3.bf16.xpose.msra.mxu1 %v2703_v5 }
 0xe3c   : > { %5648 = vmatprep.subr.msk.bf16.mxu1 %vm444_vm1, %v2665_v62 }
 0xe40   : > { %v2669_v2 = vpop.permute.xlu0 %2668 }
 0xe41   : > { %v2667_v8 = vpop.permute.xlu1 %2666  ;;  %v2712_v60 = vsel %vm444_vm1, %v2669_v2, 0 }
 0xe42   : > { %v2709_v27 = vsel %vm444_vm1, %v2667_v8, 0 }
 0xe43   : > { %5426 = vmatpush3.bf16.xpose.msra.mxu1 %v2706_v29 }
 0xe44   : > { %5649 = vmatprep.subr.msk.bf16.mxu1 %vm444_vm1, %v2667_v8 }
 0xe4b   : > { %5428 = vmatpush3.bf16.xpose.msra.mxu1 %v2709_v27 }
 0xe4c   : > { %5650 = vmatprep.subr.msk.bf16.mxu1 %vm444_vm1, %v2669_v2 }
 0xe53   : > { %5430 = vmatpush3.bf16.xpose.msra.mxu1 %v2712_v60 }
 0xe74   : > { %v2673_v20 = vpop.permute.xlu0 %2672 }
 0xe75   : > { %v2671_v10 = vpop.permute.xlu1 %2670  ;;  %v2718_v33 = vsel %vm444_vm1, %v2673_v20, 0 }
 0xe76   : > { %5651 = vmatprep.subr.msk.bf16.mxu1 %vm444_vm1, %v2671_v10  ;;  %v2715_v61 = vsel %vm444_vm1, %v2671_v10, 0 }
 0xe77   : > { %5432 = vmatpush3.bf16.xpose.msra.mxu1 %v2715_v61 }
 0xe78   : > { %5652 = vmatprep.subr.msk.bf16.mxu1 %vm444_vm1, %v2673_v20  ;;  %v7655_v20 = vld [vmem:[%s6443_s16 + $0x8] sm:$0xff] }
 0xe7d   : > { %v2677_v54 = vpop.permute.xlu0 %2676 }
 0xe7e   : > { %v2675_v58 = vpop.permute.xlu1 %2674  ;;  %v2724_v56 = vsel %vm444_vm1, %v2677_v54, 0 }
 0xe7f   : > { %5434 = vmatpush3.bf16.xpose.msra.mxu1 %v2718_v33  ;;  %v2721_v52 = vsel %vm444_vm1, %v2675_v58, 0 }
 0xe80   : > { %5653 = vmatprep.subr.msk.bf16.mxu1 %vm444_vm1, %v2675_v58 }
 0xe81   : > { %v3008_v6 = vpop.permute.xlu0 %3007 }
 0xe82   : > { %5455 = vmatprep.subr.bf16.mxu0 %v3008_v6  ;;  %v3010_v63 = vpop.permute.xlu1 %3009 }
 0xe83   : > { %5456 = vmatpush3.bf16.msra.mxu0 %v3008_v6  ;;  %v7662_v6 = vld [vmem:[%s6443_s16 + $0x30] sm:$0xff] }
 0xe84   : > { %5457 = vmatprep.subr.bf16.mxu0 %v3010_v63 }
 0xe85   : > { %v3012_v0 = vpop.permute.xlu0 %3011 }
 0xe86   : > { %v3014_v16 = vpop.permute.xlu1 %3013 }
 0xe87   : > { %5436 = vmatpush3.bf16.xpose.msra.mxu1 %v2721_v52  ;;  %5458 = vmatpush3.bf16.msra.mxu0 %v3010_v63 }
 0xe88   : > { %5654 = vmatprep.subr.msk.bf16.mxu1 %vm444_vm1, %v2677_v54  ;;  %5459 = vmatprep.subr.bf16.mxu0 %v3012_v0 }
 0xe89   : > { %v3016_v3 = vpop.permute.xlu0 %3015 }
 0xe8a   : > { %v3020_v7 = vpop.permute.xlu1 %3019 }
 0xe8b   : > { %5460 = vmatpush3.bf16.msra.mxu0 %v3012_v0  ;;  %v7668_v0 = vld [vmem:[%s6443_s16 + $0x38] sm:$0xff] }
 0xe8c   : > { %5461 = vmatprep.subr.bf16.mxu0 %v3014_v16 }
 0xe8d   : > { %v3018_v45 = vpop.permute.xlu0 %3017 }
 0xe8f   : > { %5438 = vmatpush3.bf16.xpose.msra.mxu1 %v2724_v56  ;;  %5462 = vmatpush3.bf16.msra.mxu0 %v3014_v16  ;;  %v7676_v56 = vld [vmem:[%s6443_s16 + $0x20] sm:$0xff] }
 0xe90   : > { %5463 = vmatprep.subr.bf16.mxu0 %v3016_v3 }
 0xe91   : > { %v3022_v28 = vpop.permute.xlu0 %3021 }
 0xe93   : > { %5464 = vmatpush3.bf16.msra.mxu0 %v3016_v3 }
 0xe94   : > { %5465 = vmatprep.subr.bf16.mxu0 %v3018_v45 }
 0xe96   : > { %5440 = vmatmul.mubr.msk.bf16.vlgmr.msra.gmra.mrb[60].mxu1 %vm444_vm1, %v7549_v24 }
 0xe97   : > { %5443 = vmatprep.mubr.msk.bf16.mxu1 %vm444_vm1, %v7561_v32  ;;  %5466 = vmatpush3.bf16.msra.mxu0 %v3018_v45 }
 0xe98   : > { %5467 = vmatprep.subr.bf16.mxu0 %v3020_v7 }
 0xe9b   : > { %5468 = vmatpush3.bf16.msra.mxu0 %v3020_v7 }
 0xe9c   : > { %5469 = vmatprep.subr.bf16.mxu0 %v3022_v28 }
 0xe9e   : > { %5444 = vmatmul.mubr.msk.bf16.gmra.mrb[64].mxu1 %vm444_vm1, %v7559_v57 }
 0xe9f   : > { %5447 = vmatprep.mubr.msk.bf16.mxu1 %vm444_vm1, %v7569_v12  ;;  %5470 = vmatpush3.bf16.msra.mxu0 %v3022_v28  ;;  %v7682_v28 = vld [vmem:[%s6443_s16 + $0x28] sm:$0xff] }
 0xea6   : > { %5448 = vmatmul.mubr.msk.bf16.gmra.mrb[68].mxu1 %vm444_vm1, %v7567_v40 }
 0xea7   : > { %5451 = vmatprep.mubr.msk.bf16.mxu1 %vm444_vm1, %v7577_v25 }
 0xeae   : > { %5452 = vmatmul.mubr.msk.bf16.gmra.mrb[72].mxu1 %vm444_vm1, %v7575_v17 }
 0xf69   : > { %v5441_v21 = vpop.f32.mrb[60].mxu1 }
 0xf6a   : > { %v2825_v18 = vmul.f32 0.25, %v5441_v21  ;;  %v2760_v55 = vpop.f32.mrb[61].mxu1 }
 0xf6b   : > { %v2823_v44 = vmul.f32 0.25, %v2760_v55  ;;  %v5442_v53 = vpop.f32.mrb[62].mxu1  ;;  %v7690_v55 = vld [vmem:[%s6443_s16 + $0x50] sm:$0xff] }
 0xf6c   : > { %v7633_v30 = vadd.f32 %v7630_v50, %v2825_v18  ;;  %v2763_v4 = vpop.f32.mrb[63].mxu1  ;;  %v2826_v35 = vmul.f32 0.25, %v5442_v53 }
 0xf6d   : > { %v7639_v31 = vadd.f32 %v7636_v13, %v2823_v44  ;;  %v2824_v61 = vmul.f32 0.25, %v2763_v4  ;;  %v7696_v4 = vld [vmem:[%s6443_s16 + $0x58] sm:$0xff] }
 0xf6e   : > { %2859 = vmax.xlane.f32.xlu0 %v7633_v30  ;;  %v7647_v49 = vadd.f32 %v7644_v41, %v2826_v35 }
 0xf6f   : > { %2855 = vmax.xlane.f32.xlu1 %v7639_v31  ;;  %v7658_v54 = vadd.f32 %v7655_v20, %v2824_v61 }
 0xf71   : > { %v5445_v1 = vpop.f32.mrb[64].mxu1 }
 0xf72   : > { %v2776_v26 = vpop.f32.mrb[65].mxu1  ;;  %v2829_v33 = vmul.f32 0.25, %v5445_v1 }
 0xf73   : > { %2861 = vmax.xlane.f32.xlu1 %v7647_v49  ;;  %v5446_v42 = vpop.f32.mrb[66].mxu1  ;;  %v2827_v52 = vmul.f32 0.25, %v2776_v26  ;;  %v7704_v26 = vld [vmem:[%s6443_s16 + $0x40] sm:$0xff] }
 0xf74   : > { %v2779_v51 = vpop.f32.mrb[67].mxu1  ;;  %v2830_v58 = vmul.f32 0.25, %v5446_v42  ;;  %v7665_v63 = vadd.f32 %v7662_v6, %v2829_v33 }
 0xf75   : > { %v2828_v3 = vmul.f32 0.25, %v2779_v51  ;;  %v7679_v45 = vadd.f32 %v7676_v56, %v2827_v52 }
 0xf76   : > { %v7671_v16 = vadd.f32 %v7668_v0, %v2830_v58  ;;  %v7724_v58 = vld [vmem:[%s6443_s16 + $0x78] sm:$0xff] }
 0xf77   : > { %v7685_v21 = vadd.f32 %v7682_v28, %v2828_v3 }
 0xf79   : > { %v5449_v5 = vpop.f32.mrb[68].mxu1 }
 0xf7a   : > { %v2792_v62 = vpop.f32.mrb[69].mxu1  ;;  %v2833_v7 = vmul.f32 0.25, %v5449_v5  ;;  %v7710_v5 = vld [vmem:[%s6443_s16 + $0x48] sm:$0xff] }
 0xf7b   : > { %v5450_v29 = vpop.f32.mrb[70].mxu1  ;;  %v2831_v53 = vmul.f32 0.25, %v2792_v62 }
 0xf7c   : > { %v2795_v8 = vpop.f32.mrb[71].mxu1  ;;  %v2834_v18 = vmul.f32 0.25, %v5450_v29  ;;  %v7693_v44 = vadd.f32 %v7690_v55, %v2833_v7  ;;  %v7738_v7 = vld [vmem:[%s6443_s16 + $0x68] sm:$0xff] }
 0xf7d   : > { %v2832_v1 = vmul.f32 0.25, %v2795_v8  ;;  %v7707_v42 = vadd.f32 %v7704_v26, %v2831_v53  ;;  %v7718_v8 = vld [vmem:[%s6443_s16 + $0x70] sm:$0xff] }
 0xf7e   : > { %v7699_v35 = vadd.f32 %v7696_v4, %v2834_v18 }
 0xf7f   : > { %v7713_v62 = vadd.f32 %v7710_v5, %v2832_v1 }
 0xf81   : > { %v5453_v27 = vpop.f32.mrb[72].mxu1 }
 0xf82   : > { %v2808_v2 = vpop.f32.mrb[73].mxu1  ;;  %v2837_v51 = vmul.f32 0.25, %v5453_v27 }
 0xf83   : > { %v5454_v60 = vpop.f32.mrb[74].mxu1  ;;  %v2835_v33 = vmul.f32 0.25, %v2808_v2 }
 0xf84   : > { %3146 = vrot.lane.b32.xlu0 %v7549_v24, %s6251_s17  ;;  %3144 = vrot.lane.b32.xlu1 %v7551_v11, %s6251_s17  ;;  %v2811_v10 = vpop.f32.mrb[75].mxu1  ;;  %v2838_v29 = vmul.f32 0.25, %v5454_v60  ;;  %v7721_v61 = vadd.f32 %v7718_v8, %v2837_v51  ;;  %v7732_v60 = vld [vmem:[%s6443_s16 + $0x60] sm:$0xff] }
 0xf85   : > { %v2836_v52 = vmul.f32 0.25, %v2811_v10  ;;  %v7735_v3 = vadd.f32 %v7732_v60, %v2835_v33 }
 0xf86   : > { %v7727_v27 = vadd.f32 %v7724_v58, %v2838_v29 }
 0xf87   : > { %v7741_v18 = vadd.f32 %v7738_v7, %v2836_v52 }
 0xfa3   : > { %2857 = vmax.xlane.f32.xlu0 %v7658_v54 }
 0xfa7   : > { %2867 = vmax.xlane.f32.xlu0 %v7665_v63 }
 0xfa8   : > { %2869 = vmax.xlane.f32.xlu1 %v7671_v16 }
 0xfab   : > { %2863 = vmax.xlane.f32.xlu0 %v7679_v45 }
 0xfac   : > { %2865 = vmax.xlane.f32.xlu1 %v7685_v21 }
 0xfaf   : > { %2875 = vmax.xlane.f32.xlu0 %v7693_v44 }
 0xfb0   : > { %2877 = vmax.xlane.f32.xlu1 %v7699_v35 }
 0xfb3   : > { %2871 = vmax.xlane.f32.xlu0 %v7707_v42 }
 0xfb4   : > { %2873 = vmax.xlane.f32.xlu1 %v7713_v62 }
 0xfb7   : > { %2883 = vmax.xlane.f32.xlu0 %v7721_v61 }
 0xfb8   : > { %2885 = vmax.xlane.f32.xlu1 %v7727_v27 }
 0xfbb   : > { %2879 = vmax.xlane.f32.xlu0 %v7735_v3 }
 0xfbc   : > { %2881 = vmax.xlane.f32.xlu1 %v7741_v18 }
 0xfd1   : > { %3148 = vrot.lane.b32.xlu0 %v7561_v32, %s6251_s17 }
 0xffb   : > { %v2860_v2 = vpop.xlane.xlu0 %2859 }
 0xffc   : > { %v2889_v10 = vsub.f32 %v7633_v30, %v2860_v2  ;;  %v2856_v53 = vpop.xlane.xlu1 %2855 }
 0xffd   : > { %v2887_v1 = vsub.f32 %v7639_v31, %v2856_v53 }
 0xffe   : > { %v2907_v51 = vmul.f32 1.442695, %v2889_v10 }
 0xfff   : > { %v2903_v29 = vmul.f32 1.442695, %v2887_v1 }
0x1000   : > { %5982 = vpow2.f32 %v2907_v51  ;;  %v2862_v33 = vpop.xlane.xlu1 %2861 }
0x1001   : > { %v2890_v52 = vsub.f32 %v7647_v49, %v2862_v33  ;;  %5984 = vpow2.f32 %v2903_v29  ;;  %v7765_v49 = vpop.permute.xlu0 %3146 }
0x1003   : > { %v2909_v37 = vmul.f32 1.442695, %v2890_v52 }
0x1004   : > { %v7750_v48 = vpop.permute.xlu1 %3144 }
0x1005   : > { %5655 = vmatprep.subr.msk.bf16.mxu0 %vm444_vm1, %v7750_v48  ;;  %5986 = vpow2.f32 %v2909_v37 }
0x100a   : > { %v7754_v38 = vpop.eup %5982 }
0x100b   : > { %2939 = vadd.xlane.f32.xlu1 %v7754_v38  ;;  %v7757_v30 = vpop.eup %5984 }
0x100f   : > { %2935 = vadd.xlane.f32.xlu1 %v7757_v30  ;;  %v7760_v31 = vpop.eup %5986 }
0x1013   : > { %2941 = vadd.xlane.f32.xlu1 %v7760_v31 }
0x1024   : > { %3150 = vrot.lane.b32.xlu1 %v7559_v57, %s6251_s17 }
0x1030   : > { %v2858_v2 = vpop.xlane.xlu0 %2857 }
0x1031   : > { %v2888_v37 = vsub.f32 %v7658_v54, %v2858_v2 }
0x1033   : > { %v2905_v10 = vmul.f32 1.442695, %v2888_v37 }
0x1034   : > { %v2868_v53 = vpop.xlane.xlu0 %2867 }
0x1035   : > { %5988 = vpow2.f32 %v2905_v10  ;;  %v2870_v1 = vpop.xlane.xlu1 %2869 }
0x1036   : > { %v2894_v29 = vsub.f32 %v7671_v16, %v2870_v1 }
0x1038   : > { %v2864_v51 = vpop.xlane.xlu0 %2863  ;;  %v2917_v9 = vmul.f32 1.442695, %v2894_v29 }
0x1039   : > { %v2891_v33 = vsub.f32 %v7679_v45, %v2864_v51  ;;  %v2866_v52 = vpop.xlane.xlu1 %2865 }
0x103b   : > { %v2911_v34 = vmul.f32 1.442695, %v2891_v33 }
0x103c   : > { %v2876_v59 = vpop.xlane.xlu0 %2875 }
0x103d   : > { %5990 = vpow2.f32 %v2911_v34  ;;  %v2897_v15 = vsub.f32 %v7693_v44, %v2876_v59  ;;  %v2878_v19 = vpop.xlane.xlu1 %2877 }
0x103e   : > { %5992 = vpow2.f32 %v2917_v9  ;;  %v2898_v45 = vsub.f32 %v7699_v35, %v2878_v19 }
0x103f   : > { %v7771_v14 = vpop.eup %5988  ;;  %v2923_v2 = vmul.f32 1.442695, %v2897_v15 }
0x1040   : > { %v2872_v54 = vpop.xlane.xlu0 %2871  ;;  %2937 = vadd.xlane.f32.xlu0 %v7771_v14  ;;  %v2925_v59 = vmul.f32 1.442695, %v2898_v45 }
0x1041   : > { %v2895_v37 = vsub.f32 %v7707_v42, %v2872_v54  ;;  %v2874_v16 = vpop.xlane.xlu1 %2873  ;;  %5994 = vpow2.f32 %v2923_v2  ;;  %v2893_v54 = vsub.f32 %v7665_v63, %v2868_v53 }
0x1042   : > { %v2896_v34 = vsub.f32 %v7713_v62, %v2874_v16  ;;  %v2892_v16 = vsub.f32 %v7685_v21, %v2866_v52 }
0x1043   : > { %v2919_v10 = vmul.f32 1.442695, %v2895_v37  ;;  %v2915_v37 = vmul.f32 1.442695, %v2893_v54 }
0x1044   : > { %v2921_v15 = vmul.f32 1.442695, %v2896_v34  ;;  %v2884_v2 = vpop.xlane.xlu0 %2883  ;;  %v2913_v45 = vmul.f32 1.442695, %v2892_v16 }
0x1045   : > { %v2886_v1 = vpop.xlane.xlu1 %2885  ;;  %5996 = vpow2.f32 %v2919_v10  ;;  %v2901_v10 = vsub.f32 %v7721_v61, %v2884_v2 }
0x1046   : > { %5998 = vpow2.f32 %v2925_v59 }
0x1047   : > { %v7776_v51 = vpop.eup %5990  ;;  %6000 = vpow2.f32 %v2921_v15  ;;  %v2931_v34 = vmul.f32 1.442695, %v2901_v10  ;;  %v2902_v15 = vsub.f32 %v7727_v27, %v2886_v1 }
0x1048   : > { %2943 = vadd.xlane.f32.xlu1 %v7776_v51  ;;  %v7780_v29 = vpop.eup %5992  ;;  %v2880_v59 = vpop.xlane.xlu0 %2879 }
0x1049   : > { %v2882_v44 = vpop.xlane.xlu1 %2881  ;;  %v2933_v21 = vmul.f32 1.442695, %v2902_v15 }
0x104a   : > { %v2900_v9 = vsub.f32 %v7741_v18, %v2882_v44  ;;  %v2899_v44 = vsub.f32 %v7735_v3, %v2880_v59 }
0x104b   : > { %v7784_v19 = vpop.eup %5994 }
0x104c   : > { %2949 = vadd.xlane.f32.xlu1 %v7780_v29  ;;  %v2929_v35 = vmul.f32 1.442695, %v2900_v9  ;;  %v2927_v63 = vmul.f32 1.442695, %v2899_v44  ;;  %v3149_v54 = vpop.permute.xlu0 %3148 }
0x104e   : > { %6002 = vpow2.f32 %v2929_v35 }
0x104f   : > { %v7787_v42 = vpop.eup %5996  ;;  %6004 = vpow2.f32 %v2915_v37 }
0x1050   : > { %2955 = vadd.xlane.f32.xlu1 %v7784_v19  ;;  %v7792_v62 = vpop.eup %5998  ;;  %6006 = vpow2.f32 %v2913_v45 }
0x1051   : > { %v7795_v33 = vpop.eup %6000  ;;  %6008 = vpow2.f32 %v2931_v34 }
0x1052   : > { %6010 = vpow2.f32 %v2927_v63 }
0x1053   : > { %6012 = vpow2.f32 %v2933_v21 }
0x1054   : > { %2951 = vadd.xlane.f32.xlu1 %v7787_v42 }
0x1056   : > { %3152 = vrot.lane.b32.xlu0 %v7569_v12, %s6251_s17 }
0x1058   : > { %2957 = vadd.xlane.f32.xlu1 %v7792_v62  ;;  %v7798_v18 = vpop.eup %6002 }
0x1059   : > { %v7808_v53 = vpop.eup %6004 }
0x105a   : > { %v7813_v61 = vpop.eup %6006 }
0x105b   : > { %v7818_v3 = vpop.eup %6008 }
0x105c   : > { %2953 = vadd.xlane.f32.xlu1 %v7795_v33  ;;  %v7823_v27 = vpop.eup %6010 }
0x105d   : > { %v7828_v52 = vpop.eup %6012 }
0x1060   : > { %2961 = vadd.xlane.f32.xlu1 %v7798_v18 }
0x1071   : > { %3154 = vrot.lane.b32.xlu1 %v7567_v40, %s6251_s17 }
0x1075   : > { %2947 = vadd.xlane.f32.xlu0 %v7808_v53  ;;  %3128 = vrot.lane.b32.xlu1 %v7551_v11, %s6252_s18 }
0x1079   : > { %2945 = vadd.xlane.f32.xlu0 %v7813_v61  ;;  %3132 = vrot.lane.b32.xlu1 %v7561_v32, %s6252_s18 }
0x107d   : > { %2963 = vadd.xlane.f32.xlu0 %v7818_v3  ;;  %3136 = vrot.lane.b32.xlu1 %v7569_v12, %s6252_s18 }
0x1081   : > { %2959 = vadd.xlane.f32.xlu0 %v7823_v27  ;;  %3140 = vrot.lane.b32.xlu1 %v7577_v25, %s6252_s18 }
0x1085   : > { %2965 = vadd.xlane.f32.xlu0 %v7828_v52  ;;  %3491 = vrot.lane.b32.xlu1 %v7549_v24, %s6253_s19 }
0x1098   : > { %v2940_v1 = vpop.xlane.xlu1 %2939 }
0x109b   : > { %3156 = vrot.lane.b32.xlu0 %v7577_v25, %s6251_s17 }
0x109c   : > { %v2936_v9 = vpop.xlane.xlu1 %2935 }
0x109f   : > { %3158 = vrot.lane.b32.xlu0 %v7575_v17, %s6251_s17 }
0x10a0   : > { %v2942_v35 = vpop.xlane.xlu1 %2941 }
0x10a1   : > { %6014 = vrcp.f32 %v2942_v35 }
0x10a2   : > { %6016 = vrcp.f32 %v2936_v9 }
0x10a3   : > { %3130 = vrot.lane.b32.xlu0 %v7549_v24, %s6252_s18  ;;  %6018 = vrcp.f32 %v2940_v1  ;;  %v3185_v1 = vsel %vm444_vm1, %v7750_v48, 0 }
0x10a4   : > { %v3151_v2 = vpop.permute.xlu1 %3150 }
0x10a5   : > { %v3194_v48 = vsel %vm444_vm1, %v3151_v2, 0 }
0x10a7   : > { %3134 = vrot.lane.b32.xlu0 %v7559_v57, %s6252_s18 }
0x10ab   : > { %3138 = vrot.lane.b32.xlu0 %v7567_v40, %s6252_s18  ;;  %v6015_v37 = vpop.eup %6014 }
0x10ac   : > { %v6017_v45 = vpop.eup %6016  ;;  %v2986_v34 = vmul.f32 %v6015_v37, %v7760_v31 }
0x10ad   : > { %v6019_v10 = vpop.eup %6018  ;;  %v2983_v44 = vmul.f32 %v6017_v45, %v7757_v30  ;;  %v3188_v30 = vsel %vm444_vm1, %v7765_v49, 0 }
0x10ae   : > { %v2985_v15 = vmul.f32 %v6019_v10, %v7754_v38  ;;  %v3191_v38 = vsel %vm444_vm1, %v3149_v54, 0 }
0x10af   : > { %3142 = vrot.lane.b32.xlu0 %v7575_v17, %s6252_s18 }
0x10b0   : > { %v3000_v9 = vpack.c.bf16 %v2986_v34, %v2985_v15 }
0x10b3   : > { %3489 = vrot.lane.b32.xlu0 %v7551_v11, %s6253_s19 }
0x10cd   : > { %v2938_v24 = vpop.xlane.xlu0 %2937 }
0x10ce   : > { %6020 = vrcp.f32 %v2938_v24 }
0x10d1   : > { %v3153_v37 = vpop.permute.xlu0 %3152 }
0x10d5   : > { %v2944_v16 = vpop.xlane.xlu1 %2943 }
0x10d6   : > { %6022 = vrcp.f32 %v2944_v16 }
0x10d8   : > { %v6021_v59 = vpop.eup %6020 }
0x10d9   : > { %v2984_v11 = vmul.f32 %v6021_v59, %v7771_v14  ;;  %v2950_v63 = vpop.xlane.xlu1 %2949 }
0x10da   : > { %6024 = vrcp.f32 %v2950_v63 }
0x10db   : > { %v2999_v21 = vpack.c.bf16 %v2984_v11, %v2983_v44 }
0x10dd   : > { %5471 = vmatprep.mubr.bf16.mxu0 %v2999_v21  ;;  %v2956_v35 = vpop.xlane.xlu1 %2955 }
0x10de   : > { %5472 = vmatmul.mubr.bf16.vlgmr.msra.gmra.mrb[84].mxu0 %v3000_v9 }
0x10df   : > { %5488 = vmatpush3.bf16.xpose.msra.mxu0 %v3185_v1 }
0x10e0   : > { %5656 = vmatprep.subr.msk.bf16.mxu0 %vm444_vm1, %v7765_v49  ;;  %v3197_v49 = vsel %vm444_vm1, %v3153_v37, 0  ;;  %v6023_v44 = vpop.eup %6022 }
0x10e1   : > { %v2952_v31 = vpop.xlane.xlu1 %2951 }
0x10e4   : > { %v6025_v11 = vpop.eup %6024 }
0x10e5   : > { %v2958_v14 = vpop.xlane.xlu1 %2957 }
0x10e7   : > { %5490 = vmatpush3.bf16.xpose.msra.mxu0 %v3188_v30 }
0x10e8   : > { %5657 = vmatprep.subr.msk.bf16.mxu0 %vm444_vm1, %v3149_v54 }
0x10e9   : > { %v2954_v24 = vpop.xlane.xlu1 %2953 }
0x10ed   : > { %v2962_v45 = vpop.xlane.xlu1 %2961 }
0x10ef   : > { %5492 = vmatpush3.bf16.xpose.msra.mxu0 %v3191_v38 }
0x10f0   : > { %5658 = vmatprep.subr.msk.bf16.mxu0 %vm444_vm1, %v3151_v2 }
0x10f1   : > { %v3155_v10 = vpop.permute.xlu1 %3154 }
0x10f2   : > { %v3200_v2 = vsel %vm444_vm1, %v3155_v10, 0 }
0x10f7   : > { %5494 = vmatpush3.bf16.xpose.msra.mxu0 %v3194_v48 }
0x10f8   : > { %5659 = vmatprep.subr.msk.bf16.mxu0 %vm444_vm1, %v3153_v37 }
0x10ff   : > { %5496 = vmatpush3.bf16.xpose.msra.mxu0 %v3197_v49 }
0x1100   : > { %5660 = vmatprep.subr.msk.bf16.mxu0 %vm444_vm1, %v3155_v10 }
0x1102   : > { %v2948_v59 = vpop.xlane.xlu0 %2947 }
0x1103   : > { %6026 = vrcp.f32 %v2948_v59 }
0x1104   : > { %6028 = vrcp.f32 %v2954_v24 }
0x1105   : > { %6030 = vrcp.f32 %v2952_v31  ;;  %v2987_v31 = vmul.f32 %v6023_v44, %v7776_v51 }
0x1106   : > { %v2946_v54 = vpop.xlane.xlu0 %2945 }
0x1107   : > { %6032 = vrcp.f32 %v2946_v54  ;;  %5498 = vmatpush3.bf16.xpose.msra.mxu0 %v3200_v2 }
0x1108   : > { %6034 = vrcp.f32 %v2958_v14  ;;  %v2990_v14 = vmul.f32 %v6025_v11, %v7780_v29 }
0x1109   : > { %6036 = vrcp.f32 %v2956_v35 }
0x110a   : > { %v2964_v34 = vpop.xlane.xlu0 %2963  ;;  %6038 = vrcp.f32 %v2962_v45 }
0x110d   : > { %v6027_v15 = vpop.eup %6026 }
0x110e   : > { %v2960_v21 = vpop.xlane.xlu0 %2959  ;;  %v6029_v9 = vpop.eup %6028  ;;  %v2989_v1 = vmul.f32 %v6027_v15, %v7808_v53 }
0x110f   : > { %6040 = vrcp.f32 %v2960_v21  ;;  %v6031_v16 = vpop.eup %6030  ;;  %v2992_v24 = vmul.f32 %v6029_v9, %v7795_v33  ;;  %v3129_v33 = vpop.permute.xlu1 %3128 }
0x1110   : > { %v2991_v48 = vmul.f32 %v6031_v16, %v7787_v42  ;;  %v3002_v37 = vpack.c.bf16 %v2990_v14, %v2989_v1 }
0x1111   : > { %v6033_v63 = vpop.eup %6032 }
0x1112   : > { %v2966_v30 = vpop.xlane.xlu0 %2965  ;;  %v2988_v38 = vmul.f32 %v6033_v63, %v7813_v61  ;;  %v6035_v45 = vpop.eup %6034  ;;  %v3003_v10 = vpack.c.bf16 %v2992_v24, %v2991_v48 }
0x1113   : > { %6042 = vrcp.f32 %v2966_v30  ;;  %v6037_v53 = vpop.eup %6036  ;;  %v2994_v59 = vmul.f32 %v6035_v45, %v7792_v62  ;;  %v3133_v15 = vpop.permute.xlu1 %3132 }
0x1114   : > { %v3001_v35 = vpack.c.bf16 %v2988_v38, %v2987_v31  ;;  %6044 = vrcp.f32 %v2964_v34  ;;  %v6039_v61 = vpop.eup %6038  ;;  %v2993_v2 = vmul.f32 %v6037_v53, %v7784_v19 }
0x1115   : > { %v2996_v34 = vmul.f32 %v6039_v61, %v7798_v18 }
0x1116   : > { %v3157_v49 = vpop.permute.xlu0 %3156  ;;  %5475 = vmatprep.mubr.bf16.mxu0 %v3001_v35  ;;  %v3004_v44 = vpack.c.bf16 %v2994_v59, %v2993_v2 }
0x1117   : > { %5476 = vmatmul.mubr.bf16.gmra.mrb[88].mxu0 %v3002_v37  ;;  %5661 = vmatprep.subr.msk.bf16.mxu0 %vm444_vm1, %v3157_v49  ;;  %v3203_v51 = vsel %vm444_vm1, %v3157_v49, 0  ;;  %v3137_v30 = vpop.permute.xlu1 %3136 }
0x1118   : > { %5479 = vmatprep.mubr.bf16.mxu0 %v3003_v10  ;;  %5500 = vmatpush3.bf16.xpose.msra.mxu0 %v3203_v51 }
0x1119   : > { %v6041_v29 = vpop.eup %6040 }
0x111a   : > { %v3159_v42 = vpop.permute.xlu0 %3158  ;;  %v2995_v54 = vmul.f32 %v6041_v29, %v7823_v27 }
0x111b   : > { %5662 = vmatprep.subr.msk.bf16.mxu0 %vm444_vm1, %v3159_v42  ;;  %v3206_v16 = vsel %vm444_vm1, %v3159_v42, 0  ;;  %v3141_v18 = vpop.permute.xlu1 %3140 }
0x111c   : > { %v3005_v9 = vpack.c.bf16 %v2996_v34, %v2995_v54 }
0x111d   : > { %v6043_v11 = vpop.eup %6042 }
0x111e   : > { %v3131_v21 = vpop.permute.xlu0 %3130  ;;  %v6045_v63 = vpop.eup %6044  ;;  %v2998_v62 = vmul.f32 %v6043_v11, %v7828_v52 }
0x111f   : > { %5480 = vmatmul.mubr.bf16.gmra.mrb[92].mxu0 %v3004_v44  ;;  %v2997_v1 = vmul.f32 %v6045_v63, %v7818_v3  ;;  %v3492_v14 = vpop.permute.xlu1 %3491 }
0x1120   : > { %5483 = vmatprep.mubr.bf16.mxu0 %v3005_v9  ;;  %5502 = vmatpush3.bf16.xpose.msra.mxu0 %v3206_v16 }
0x1121   : > { %v3006_v19 = vpack.c.bf16 %v2998_v62, %v2997_v1 }
0x1122   : > { %v3135_v27 = vpop.permute.xlu0 %3134 }
0x1126   : > { %v3139_v31 = vpop.permute.xlu0 %3138 }
0x1127   : > { %5484 = vmatmul.mubr.bf16.gmra.mrb[96].mxu0 %v3006_v19 }
0x1128   : > { %5503 = vmatprep.mubr.msk.bf16.mxu0 %vm444_vm1, %v3129_v33 }
0x112a   : > { %v3143_v38 = vpop.permute.xlu0 %3142 }
0x112e   : > { %v3490_v24 = vpop.permute.xlu0 %3489 }
0x112f   : > { %5504 = vmatmul.mubr.msk.bf16.vlgmr.msra.gmra.mrb[100].mxu0 %vm444_vm1, %v3131_v21  ;;  %5519 = vmatprep.subr.bf16.mxu1 %v3490_v24 }
0x1130   : > { %5507 = vmatprep.mubr.msk.bf16.mxu0 %vm444_vm1, %v3133_v15  ;;  %5520 = vmatpush3.bf16.msra.mxu1 %v3490_v24 }
0x1131   : > { %5521 = vmatprep.subr.bf16.mxu1 %v3492_v14 }
0x1134   : > { %5522 = vmatpush3.bf16.msra.mxu1 %v3492_v14 }
0x1137   : > { %5508 = vmatmul.mubr.msk.bf16.gmra.mrb[104].mxu0 %vm444_vm1, %v3135_v27 }
0x1138   : > { %5511 = vmatprep.mubr.msk.bf16.mxu0 %vm444_vm1, %v3137_v30 }
0x113f   : > { %5512 = vmatmul.mubr.msk.bf16.gmra.mrb[108].mxu0 %vm444_vm1, %v3139_v31 }
0x1140   : > { %5515 = vmatprep.mubr.msk.bf16.mxu0 %vm444_vm1, %v3141_v18 }
0x1147   : > { %5516 = vmatmul.mubr.msk.bf16.gmra.mrb[112].mxu0 %vm444_vm1, %v3143_v38 }
0x11b1   : > { %v7889_v3 = vpop.f32.mrb[84].mxu0 }
0x11b2   : > { %v7891_v52 = vpop.f32.mrb[85].mxu0 }
0x11b3   : > { %v7893_v35 = vpop.f32.mrb[86].mxu0 }
0x11b4   : > { %v7895_v48 = vpop.f32.mrb[87].mxu0 }
0x11ea   : > { %v7897_v37 = vpop.f32.mrb[88].mxu0 }
0x11eb   : > { %v7899_v45 = vpop.f32.mrb[89].mxu0 }
0x11ec   : > { %v7901_v49 = vpop.f32.mrb[90].mxu0 }
0x11ed   : > { %v7903_v10 = vpop.f32.mrb[91].mxu0 }
0x11f2   : > { %v7905_v53 = vpop.f32.mrb[92].mxu0 }
0x11f3   : > { %v7907_v51 = vpop.f32.mrb[93].mxu0 }
0x11f4   : > { %v7909_v61 = vpop.f32.mrb[94].mxu0 }
0x11f5   : > { %v7911_v33 = vpop.f32.mrb[95].mxu0 }
0x11fa   : > { %v7913_v29 = vpop.f32.mrb[96].mxu0 }
0x11fb   : > { %v7915_v59 = vpop.f32.mrb[97].mxu0 }
0x11fc   : > { %v7917_v42 = vpop.f32.mrb[98].mxu0 }
0x11fd   : > { %v7919_v54 = vpop.f32.mrb[99].mxu0 }
0x1202   : > { %v5505_v2 = vpop.f32.mrb[100].mxu0 }
0x1203   : > { %v3307_v34 = vmul.f32 0.25, %v5505_v2  ;;  %v3242_v44 = vpop.f32.mrb[101].mxu0 }
0x1204   : > { %v3305_v11 = vmul.f32 0.25, %v3242_v44  ;;  %v5506_v15 = vpop.f32.mrb[102].mxu0 }
0x1205   : > { %v7922_v21 = vadd.f32 %v7630_v50, %v3307_v34  ;;  %v3245_v9 = vpop.f32.mrb[103].mxu0  ;;  %v3308_v63 = vmul.f32 0.25, %v5506_v15 }
0x1206   : > { %v7925_v16 = vadd.f32 %v7636_v13, %v3305_v11  ;;  %v3306_v62 = vmul.f32 0.25, %v3245_v9 }
0x1207   : > { %3341 = vmax.xlane.f32.xlu0 %v7922_v21  ;;  %v7933_v1 = vadd.f32 %v7644_v41, %v3308_v63 }
0x1208   : > { %v7929_v27 = vadd.f32 %v7655_v20, %v3306_v62  ;;  %3337 = vmax.xlane.f32.xlu1 %v7925_v16 }
0x120a   : > { %v5509_v30 = vpop.f32.mrb[104].mxu0 }
0x120b   : > { %v3311_v19 = vmul.f32 0.25, %v5509_v30  ;;  %3339 = vmax.xlane.f32.xlu0 %v7929_v27  ;;  %v3258_v50 = vpop.f32.mrb[105].mxu0 }
0x120c   : > { %3343 = vmax.xlane.f32.xlu1 %v7933_v1  ;;  %v5510_v13 = vpop.f32.mrb[106].mxu0  ;;  %v3309_v18 = vmul.f32 0.25, %v3258_v50 }
0x120d   : > { %v7938_v31 = vadd.f32 %v7662_v6, %v3311_v19  ;;  %v3312_v38 = vmul.f32 0.25, %v5510_v13  ;;  %v3261_v20 = vpop.f32.mrb[107].mxu0 }
0x120e   : > { %v3310_v14 = vmul.f32 0.25, %v3261_v20  ;;  %v7945_v41 = vadd.f32 %v7676_v56, %v3309_v18 }
0x120f   : > { %v7941_v24 = vadd.f32 %v7668_v0, %v3312_v38  ;;  %3349 = vmax.xlane.f32.xlu0 %v7938_v31 }
0x1210   : > { %v7949_v34 = vadd.f32 %v7682_v28, %v3310_v14 }
0x1211   : > { %3351 = vmax.xlane.f32.xlu1 %v7941_v24 }
0x1212   : > { %v5513_v2 = vpop.f32.mrb[108].mxu0 }
0x1213   : > { %v3315_v6 = vmul.f32 0.25, %v5513_v2  ;;  %3345 = vmax.xlane.f32.xlu0 %v7945_v41  ;;  %v3274_v44 = vpop.f32.mrb[109].mxu0 }
0x1214   : > { %v5514_v11 = vpop.f32.mrb[110].mxu0  ;;  %v3313_v15 = vmul.f32 0.25, %v3274_v44 }
0x1215   : > { %v7953_v0 = vadd.f32 %v7690_v55, %v3315_v6  ;;  %v3316_v9 = vmul.f32 0.25, %v5514_v11  ;;  %3347 = vmax.xlane.f32.xlu1 %v7949_v34  ;;  %v3277_v56 = vpop.f32.mrb[111].mxu0 }
0x1216   : > { %v3314_v62 = vmul.f32 0.25, %v3277_v56  ;;  %v7961_v28 = vadd.f32 %v7704_v26, %v3313_v15 }
0x1217   : > { %v7957_v63 = vadd.f32 %v7696_v4, %v3316_v9  ;;  %3357 = vmax.xlane.f32.xlu0 %v7953_v0 }
0x1218   : > { %v7965_v55 = vadd.f32 %v7710_v5, %v3314_v62 }
0x1219   : > { %3359 = vmax.xlane.f32.xlu1 %v7957_v63 }
0x121a   : > { %v5517_v30 = vpop.f32.mrb[112].mxu0 }
0x121b   : > { %v3319_v19 = vmul.f32 0.25, %v5517_v30  ;;  %3353 = vmax.xlane.f32.xlu0 %v7961_v28  ;;  %v3290_v50 = vpop.f32.mrb[113].mxu0 }
0x121c   : > { %v5518_v13 = vpop.f32.mrb[114].mxu0  ;;  %v3317_v18 = vmul.f32 0.25, %v3290_v50 }
0x121d   : > { %v7969_v4 = vadd.f32 %v7718_v8, %v3319_v19  ;;  %3355 = vmax.xlane.f32.xlu1 %v7965_v55  ;;  %v3293_v38 = vpop.f32.mrb[115].mxu0  ;;  %v3320_v5 = vmul.f32 0.25, %v5518_v13 }
0x121e   : > { %v7974_v26 = vadd.f32 %v7732_v60, %v3317_v18  ;;  %v3318_v60 = vmul.f32 0.25, %v3293_v38 }
0x121f   : > { %3365 = vmax.xlane.f32.xlu0 %v7969_v4  ;;  %v7986_v8 = vadd.f32 %v7724_v58, %v3320_v5 }
0x1220   : > { %v7990_v20 = vadd.f32 %v7738_v7, %v3318_v60 }
0x1223   : > { %3361 = vmax.xlane.f32.xlu0 %v7974_v26 }
0x122e   : > { %3497 = vrot.lane.b32.xlu1 %v7569_v12, %s6253_s19 }
0x1239   : > { %3493 = vrot.lane.b32.xlu0 %v7561_v32, %s6253_s19 }
0x123d   : > { %3495 = vrot.lane.b32.xlu0 %v7559_v57, %s6253_s19 }
0x1241   : > { %3501 = vrot.lane.b32.xlu0 %v7577_v25, %s6253_s19 }
0x1252   : > { %3367 = vmax.xlane.f32.xlu1 %v7986_v8 }
0x1256   : > { %3363 = vmax.xlane.f32.xlu1 %v7990_v20 }
0x1267   : > { %3499 = vrot.lane.b32.xlu1 %v7567_v40, %s6253_s19 }
0x1294   : > { %v3342_v32 = vpop.xlane.xlu0 %3341 }
0x1295   : > { %v3371_v57 = vsub.f32 %v7922_v21, %v3342_v32  ;;  %v3338_v12 = vpop.xlane.xlu1 %3337 }
0x1296   : > { %v3369_v25 = vsub.f32 %v7925_v16, %v3338_v12 }
0x1297   : > { %v3389_v14 = vmul.f32 1.442695, %v3371_v57 }
0x1298   : > { %v3340_v58 = vpop.xlane.xlu0 %3339  ;;  %v3385_v2 = vmul.f32 1.442695, %v3369_v25 }
0x1299   : > { %6046 = vpow2.f32 %v3389_v14  ;;  %v3344_v6 = vpop.xlane.xlu1 %3343  ;;  %v3370_v7 = vsub.f32 %v7929_v27, %v3340_v58 }
0x129a   : > { %v3372_v44 = vsub.f32 %v7933_v1, %v3344_v6  ;;  %6048 = vpow2.f32 %v3385_v2 }
0x129b   : > { %v3387_v21 = vmul.f32 1.442695, %v3370_v7 }
0x129c   : > { %v3391_v11 = vmul.f32 1.442695, %v3372_v44  ;;  %v3350_v15 = vpop.xlane.xlu0 %3349 }
0x129d   : > { %v3375_v40 = vsub.f32 %v7938_v31, %v3350_v15 }
0x129e   : > { %v3352_v9 = vpop.xlane.xlu1 %3351  ;;  %6050 = vpow2.f32 %v3391_v11 }
0x129f   : > { %v3397_v56 = vmul.f32 1.442695, %v3375_v40  ;;  %v3376_v16 = vsub.f32 %v7941_v24, %v3352_v9 }
0x12a0   : > { %v3346_v62 = vpop.xlane.xlu0 %3345 }
0x12a1   : > { %6052 = vpow2.f32 %v3397_v56  ;;  %v3373_v30 = vsub.f32 %v7945_v41, %v3346_v62  ;;  %v3399_v13 = vmul.f32 1.442695, %v3376_v16 }
0x12a2   : > { %v3348_v19 = vpop.xlane.xlu1 %3347  ;;  %6054 = vpow2.f32 %v3387_v21 }
0x12a3   : > { %v8002_v50 = vpop.eup %6046  ;;  %v3393_v1 = vmul.f32 1.442695, %v3373_v30  ;;  %v3374_v27 = vsub.f32 %v7949_v34, %v3348_v19 }
0x12a4   : > { %v3358_v18 = vpop.xlane.xlu0 %3357  ;;  %3421 = vadd.xlane.f32.xlu1 %v8002_v50  ;;  %v8007_v5 = vpop.eup %6048 }
0x12a5   : > { %6056 = vpow2.f32 %v3393_v1  ;;  %v3395_v31 = vmul.f32 1.442695, %v3374_v27  ;;  %v3379_v38 = vsub.f32 %v7953_v0, %v3358_v18 }
0x12a6   : > { %v3360_v24 = vpop.xlane.xlu1 %3359  ;;  %6058 = vpow2.f32 %v3399_v13 }
0x12a7   : > { %6060 = vpow2.f32 %v3395_v31  ;;  %v3405_v60 = vmul.f32 1.442695, %v3379_v38  ;;  %v3380_v0 = vsub.f32 %v7957_v63, %v3360_v24 }
0x12a8   : > { %v3354_v41 = vpop.xlane.xlu0 %3353  ;;  %3417 = vadd.xlane.f32.xlu1 %v8007_v5  ;;  %v8011_v32 = vpop.eup %6050 }
0x12a9   : > { %v3377_v34 = vsub.f32 %v7961_v28, %v3354_v41  ;;  %6062 = vpow2.f32 %v3405_v60  ;;  %v3407_v63 = vmul.f32 1.442695, %v3380_v0 }
0x12aa   : > { %v3356_v57 = vpop.xlane.xlu1 %3355 }
0x12ab   : > { %v8013_v12 = vpop.eup %6052  ;;  %v3378_v25 = vsub.f32 %v7965_v55, %v3356_v57  ;;  %v3401_v58 = vmul.f32 1.442695, %v3377_v34 }
0x12ac   : > { %v3366_v14 = vpop.xlane.xlu0 %3365  ;;  %3429 = vadd.xlane.f32.xlu0 %v8013_v12  ;;  %3423 = vadd.xlane.f32.xlu1 %v8011_v32  ;;  %v8020_v28 = vpop.eup %6054 }
0x12ad   : > { %v3403_v2 = vmul.f32 1.442695, %v3378_v25  ;;  %v3383_v6 = vsub.f32 %v7969_v4, %v3366_v14 }
0x12ae   : > { %v3498_v16 = vpop.permute.xlu1 %3497 }
0x12af   : > { %v8022_v44 = vpop.eup %6056  ;;  %6064 = vpow2.f32 %v3403_v2  ;;  %v3413_v7 = vmul.f32 1.442695, %v3383_v6 }
0x12b0   : > { %3425 = vadd.xlane.f32.xlu0 %v8022_v44  ;;  %v3362_v55 = vpop.xlane.xlu0 %3361  ;;  %3419 = vadd.xlane.f32.xlu1 %v8020_v28  ;;  %6066 = vpow2.f32 %v3401_v58  ;;  %v8027_v15 = vpop.eup %6058 }
0x12b1   : > { %v3381_v11 = vsub.f32 %v7974_v26, %v3362_v55  ;;  %v8029_v40 = vpop.eup %6060  ;;  %6068 = vpow2.f32 %v3413_v7 }
0x12b2   : > { %6070 = vpow2.f32 %v3407_v63 }
0x12b3   : > { %v3409_v4 = vmul.f32 1.442695, %v3381_v11  ;;  %v8033_v56 = vpop.eup %6062 }
0x12b4   : > { %v3494_v9 = vpop.permute.xlu0 %3493  ;;  %3431 = vadd.xlane.f32.xlu0 %v8027_v15  ;;  %3427 = vadd.xlane.f32.xlu1 %v8029_v40 }
0x12b5   : > { %5523 = vmatprep.subr.bf16.mxu1 %v3494_v9  ;;  %6072 = vpow2.f32 %v3409_v4 }
0x12b6   : > { %5524 = vmatpush3.bf16.msra.mxu1 %v3494_v9 }
0x12b8   : > { %v3496_v21 = vpop.permute.xlu0 %3495  ;;  %3437 = vadd.xlane.f32.xlu0 %v8033_v56 }
0x12b9   : > { %v8036_v26 = vpop.eup %6064  ;;  %5525 = vmatprep.subr.bf16.mxu1 %v3496_v21 }
0x12ba   : > { %5526 = vmatpush3.bf16.msra.mxu1 %v3496_v21  ;;  %3435 = vadd.xlane.f32.xlu1 %v8036_v26  ;;  %v8039_v62 = vpop.eup %6066 }
0x12bb   : > { %5527 = vmatprep.subr.bf16.mxu1 %v3498_v16  ;;  %v8042_v30 = vpop.eup %6068 }
0x12bc   : > { %3433 = vadd.xlane.f32.xlu0 %v8039_v62  ;;  %v8045_v19 = vpop.eup %6070  ;;  %v3502_v60 = vpop.permute.xlu0 %3501 }
0x12be   : > { %3445 = vadd.xlane.f32.xlu1 %v8042_v30  ;;  %5528 = vmatpush3.bf16.msra.mxu1 %v3498_v16 }
0x12bf   : > { %v8048_v1 = vpop.eup %6072 }
0x12c0   : > { %3439 = vadd.xlane.f32.xlu0 %v8045_v19 }
0x12c2   : > { %3441 = vadd.xlane.f32.xlu1 %v8048_v1 }
0x12d3   : > { %3503 = vrot.lane.b32.xlu1 %v7575_v17, %s6253_s19 }
0x12df   : > { %v3368_v27 = vpop.xlane.xlu1 %3367 }
0x12e0   : > { %v3384_v18 = vsub.f32 %v7986_v8, %v3368_v27 }
0x12e2   : > { %v3415_v41 = vmul.f32 1.442695, %v3384_v18 }
0x12e3   : > { %v3364_v13 = vpop.xlane.xlu1 %3363 }
0x12e4   : > { %v3382_v31 = vsub.f32 %v7990_v20, %v3364_v13 }
0x12e6   : > { %v3411_v38 = vmul.f32 1.442695, %v3382_v31 }
0x12e7   : > { %v3500_v24 = vpop.permute.xlu1 %3499 }
0x12e8   : > { %6074 = vpow2.f32 %v3411_v38  ;;  %5529 = vmatprep.subr.bf16.mxu1 %v3500_v24 }
0x12e9   : > { %5530 = vmatpush3.bf16.msra.mxu1 %v3500_v24  ;;  %6076 = vpow2.f32 %v3415_v41 }
0x12ea   : > { %5531 = vmatprep.subr.bf16.mxu1 %v3502_v60 }
0x12ed   : > { %5532 = vmatpush3.bf16.msra.mxu1 %v3502_v60 }
0x12f2   : > { %v8055_v34 = vpop.eup %6074 }
0x12f3   : > { %3443 = vadd.xlane.f32.xlu0 %v8055_v34  ;;  %v8058_v17 = vpop.eup %6076 }
0x12f7   : > { %3447 = vadd.xlane.f32.xlu0 %v8058_v17 }
0x1331   : > { %v3422_v8 = vpop.xlane.xlu1 %3421 }
0x1335   : > { %v3418_v20 = vpop.xlane.xlu1 %3417 }
0x1336   : > { %6078 = vrcp.f32 %v3418_v20 }
0x1339   : > { %v3430_v57 = vpop.xlane.xlu0 %3429  ;;  %v3424_v25 = vpop.xlane.xlu1 %3423 }
0x133d   : > { %v3426_v0 = vpop.xlane.xlu0 %3425  ;;  %v3420_v14 = vpop.xlane.xlu1 %3419 }
0x133e   : > { %6080 = vrcp.f32 %v3420_v14 }
0x133f   : > { %6082 = vrcp.f32 %v3424_v25 }
0x1340   : > { %v6079_v7 = vpop.eup %6078 }
0x1341   : > { %v3432_v58 = vpop.xlane.xlu0 %3431  ;;  %v3428_v2 = vpop.xlane.xlu1 %3427  ;;  %v3465_v11 = vmul.f32 %v6079_v7, %v8007_v5 }
0x1342   : > { %6084 = vrcp.f32 %v3428_v2 }
0x1343   : > { %6086 = vrcp.f32 %v3422_v8 }
0x1344   : > { %6088 = vrcp.f32 %v3426_v0 }
0x1345   : > { %v3438_v6 = vpop.xlane.xlu0 %3437  ;;  %6090 = vrcp.f32 %v3432_v58 }
0x1347   : > { %v3436_v55 = vpop.xlane.xlu1 %3435 }
0x1348   : > { %v6081_v63 = vpop.eup %6080 }
0x1349   : > { %v3466_v4 = vmul.f32 %v6081_v63, %v8020_v28  ;;  %v3434_v9 = vpop.xlane.xlu0 %3433  ;;  %v6083_v27 = vpop.eup %6082 }
0x134a   : > { %6092 = vrcp.f32 %v3434_v9  ;;  %v3468_v24 = vmul.f32 %v6083_v27, %v8011_v32 }
0x134b   : > { %v3446_v21 = vpop.xlane.xlu1 %3445  ;;  %v3481_v16 = vpack.c.bf16 %v3466_v4, %v3465_v11  ;;  %6094 = vrcp.f32 %v3430_v57 }
0x134c   : > { %v6085_v18 = vpop.eup %6084  ;;  %6096 = vrcp.f32 %v3436_v55 }
0x134d   : > { %5535 = vmatprep.mubr.bf16.mxu1 %v3481_v16  ;;  %v6087_v31 = vpop.eup %6086  ;;  %v3440_v41 = vpop.xlane.xlu0 %3439  ;;  %v3470_v5 = vmul.f32 %v6085_v18, %v8029_v40 }
0x134e   : > { %v6089_v38 = vpop.eup %6088  ;;  %v3467_v28 = vmul.f32 %v6087_v31, %v8002_v50  ;;  %6098 = vrcp.f32 %v3440_v41 }
0x134f   : > { %v3442_v13 = vpop.xlane.xlu1 %3441  ;;  %v3469_v8 = vmul.f32 %v6089_v38, %v8022_v44  ;;  %v6091_v57 = vpop.eup %6090  ;;  %6100 = vrcp.f32 %v3438_v6  ;;  %v5782_v38 = vld [vmem:[#allocation2 + $0x60] sm:$0xff]  }
0x1350   : > { %v3482_v20 = vpack.c.bf16 %v3468_v24, %v3467_v28  ;;  %v3472_v58 = vmul.f32 %v6091_v57, %v8027_v15  ;;  %6102 = vrcp.f32 %v3442_v13 }
0x1351   : > { %v3483_v25 = vpack.c.bf16 %v3470_v5, %v3469_v8 }
0x1353   : > { %v3504_v60 = vpop.permute.xlu1 %3503 }
0x1354   : > { %5533 = vmatprep.subr.bf16.mxu1 %v3504_v60  ;;  %v6093_v0 = vpop.eup %6092 }
0x1355   : > { %5534 = vmatpush3.bf16.msra.mxu1 %v3504_v60  ;;  %v6095_v14 = vpop.eup %6094  ;;  %v3473_v40 = vmul.f32 %v6093_v0, %v8039_v62 }
0x1356   : > { %v6097_v32 = vpop.eup %6096  ;;  %v3471_v50 = vmul.f32 %v6095_v14, %v8013_v12  ;;  %5551 = vmatprep.subr.bf16.mxu1 %v5782_v38 }
0x1357   : > { %v3474_v2 = vmul.f32 %v6097_v32, %v8036_v26 }
0x1358   : > { %5536 = vmatmul.mubr.bf16.vlgmr.msra.gmra.mrb[76].mxu1 %v3482_v20  ;;  %v3484_v7 = vpack.c.bf16 %v3472_v58, %v3471_v50  ;;  %v6099_v55 = vpop.eup %6098 }
0x1359   : > { %5539 = vmatprep.mubr.bf16.mxu1 %v3483_v25  ;;  %v3485_v44 = vpack.c.bf16 %v3474_v2, %v3473_v40  ;;  %v6101_v63 = vpop.eup %6100  ;;  %v3476_v6 = vmul.f32 %v6099_v55, %v8045_v19  ;;  %5552 = vmatpush3.bf16.msra.mxu1 %v5782_v38 }
0x135a   : > { %v3475_v11 = vmul.f32 %v6101_v63, %v8033_v56  ;;  %v6103_v12 = vpop.eup %6102 }
0x135b   : > { %v3477_v9 = vmul.f32 %v6103_v12, %v8048_v1 }
0x135c   : > { %v3486_v4 = vpack.c.bf16 %v3476_v6, %v3475_v11 }
0x1360   : > { %5540 = vmatmul.mubr.bf16.gmra.mrb[80].mxu1 %v3484_v7 }
0x1361   : > { %5543 = vmatprep.mubr.bf16.mxu1 %v3485_v44 }
0x1368   : > { %5544 = vmatmul.mubr.bf16.gmra.mrb[84].mxu1 %v3486_v4 }
0x1380   : > { %v3444_v15 = vpop.xlane.xlu0 %3443 }
0x1381   : > { %6104 = vrcp.f32 %v3444_v15 }
0x1382   : > { %6106 = vrcp.f32 %v3446_v21  ;;  %v5783_v21 = vld [vmem:[#allocation2 + $0x68] sm:$0xff]  }
0x1383   : > { %5553 = vmatprep.subr.bf16.mxu1 %v5783_v21 }
0x1384   : > { %v3448_v62 = vpop.xlane.xlu0 %3447  ;;  %5554 = vmatpush3.bf16.msra.mxu1 %v5783_v21 }
0x1385   : > { %6108 = vrcp.f32 %v3448_v62 }
0x138b   : > { %v6105_v26 = vpop.eup %6104 }
0x138c   : > { %v3478_v16 = vmul.f32 %v6105_v26, %v8055_v34  ;;  %v6107_v27 = vpop.eup %6106 }
0x138d   : > { %v3479_v56 = vmul.f32 %v6107_v27, %v8042_v30 }
0x138e   : > { %v3487_v18 = vpack.c.bf16 %v3478_v16, %v3477_v9 }
0x138f   : > { %v6109_v31 = vpop.eup %6108 }
0x1390   : > { %5547 = vmatprep.mubr.bf16.mxu1 %v3487_v18  ;;  %v3480_v19 = vmul.f32 %v6109_v31, %v8058_v17 }
0x1392   : > { %v3488_v13 = vpack.c.bf16 %v3480_v19, %v3479_v56 }
0x1394   : > { %5548 = vmatmul.mubr.bf16.gmra.mrb[88].mxu1 %v3488_v13 }
0x142b   : > { %v5537_v24 = vpop.f32.mrb[76].mxu1 }
0x142c   : > { %v3547_v1 = vpop.f32.mrb[77].mxu1 }
0x142d   : > { %v5538_v41 = vpop.f32.mrb[78].mxu1 }
0x142e   : > { %v5735_v34 = vpack.i.bf16 %v5538_v41, %v5537_v24  ;;  %v3550_v60 = vpop.f32.mrb[79].mxu1 }
0x142f   : > { %v5730_v5 = vpack.i.bf16 %v3550_v60, %v3547_v1 }
0x1430   : > { %5736 = vrot.lane.b32.xlu1 %v5735_v34, %s6254_s20 }
0x1431   : > { %5731 = vrot.lane.b32.xlu0 %v5730_v5, %s6254_s20 }
0x1433   : > { %v5541_v30 = vpop.f32.mrb[80].mxu1 }
0x1434   : > { %v3563_v17 = vpop.f32.mrb[81].mxu1 }
0x1435   : > { %v5542_v28 = vpop.f32.mrb[82].mxu1 }
0x1436   : > { %v5745_v8 = vpack.i.bf16 %v5542_v28, %v5541_v30  ;;  %v3566_v20 = vpop.f32.mrb[83].mxu1 }
0x1437   : > { %v5740_v57 = vpack.i.bf16 %v3566_v20, %v3563_v17 }
0x1438   : > { %5746 = vrot.lane.b32.xlu0 %v5745_v8, %s6254_s20 }
0x1439   : > { %5741 = vrot.lane.b32.xlu1 %v5740_v57, %s6254_s20 }
0x143b   : > { %v5545_v25 = vpop.f32.mrb[84].mxu1 }
0x143c   : > { %v3579_v0 = vpop.f32.mrb[85].mxu1 }
0x143d   : > { %v5546_v14 = vpop.f32.mrb[86].mxu1 }
0x143e   : > { %v5755_v32 = vpack.i.bf16 %v5546_v14, %v5545_v25  ;;  %v3582_v58 = vpop.f32.mrb[87].mxu1 }
0x143f   : > { %v5750_v40 = vpack.i.bf16 %v3582_v58, %v3579_v0 }
0x1440   : > { %5756 = vrot.lane.b32.xlu0 %v5755_v32, %s6254_s20 }
0x1441   : > { %5751 = vrot.lane.b32.xlu1 %v5750_v40, %s6254_s20 }
0x1467   : > { %v5549_v50 = vpop.f32.mrb[88].mxu1 }
0x1468   : > { %v3595_v2 = vpop.f32.mrb[89].mxu1 }
0x1469   : > { %v5550_v7 = vpop.f32.mrb[90].mxu1 }
0x146a   : > { %v5765_v55 = vpack.i.bf16 %v5550_v7, %v5549_v50  ;;  %v3598_v44 = vpop.f32.mrb[91].mxu1 }
0x146b   : > { %v5760_v63 = vpack.i.bf16 %v3598_v44, %v3595_v2 }
0x146c   : > { %5766 = vrot.lane.b32.xlu0 %v5765_v55, %s6254_s20 }
0x146d   : > { %5761 = vrot.lane.b32.xlu1 %v5760_v63, %s6254_s20 }
0x14a2   : > { %v5737_v6 = vpop.permute.xlu1 %5736 }
0x14a3   : > { %v5739_v11 = vunpack.i.h.bf16 %v5737_v6  ;;  %v5738_v4 = vunpack.i.l.bf16 %v5737_v6  ;;  %v5732_v15 = vpop.permute.xlu0 %5731 }
0x14a4   : > { %v5734_v62 = vunpack.i.h.bf16 %v5732_v15  ;;  %v5733_v12 = vunpack.i.l.bf16 %v5732_v15 }
0x14a5   : > { %v3677_v26 = vsel %vm444_vm1, %v7893_v35, %v5739_v11  ;;  %v3676_v9 = vsel %vm444_vm1, %v7889_v3, %v5738_v4 }
0x14a6   : > { %v3695_v16 = vpack.c.bf16 %v3677_v26, %v3676_v9  ;;  %v3675_v27 = vsel %vm444_vm1, %v7895_v48, %v5734_v62  ;;  %v3674_v18 = vsel %vm444_vm1, %v7891_v52, %v5733_v12  ;;  %v8752_v26 = vld [vmem:[#allocation5_spill] sm:$0xff] }
0x14a7   : > { %v3694_v31 = vpack.c.bf16 %v3675_v27, %v3674_v18 }
0x14a9   : > { %5555 = vmatprep.mubr.msk.bf16.mxu1 %vm290_vm0, %v3694_v31  ;;  %v8753_v31 = vld [vmem:[#allocation6_spill] sm:$0xff] }
0x14aa   : > { %5556 = vmatmul.mubr.msk.bf16.vlgmr.msra.gmra.mrb[92].mxu1 %vm290_vm0, %v3695_v16  ;;  %v5747_v56 = vpop.permute.xlu0 %5746 }
0x14ab   : > { %v5749_v19 = vunpack.i.h.bf16 %v5747_v56  ;;  %v5748_v13 = vunpack.i.l.bf16 %v5747_v56  ;;  %v5742_v38 = vpop.permute.xlu1 %5741 }
0x14ac   : > { %v5744_v35 = vunpack.i.h.bf16 %v5742_v38  ;;  %v5743_v21 = vunpack.i.l.bf16 %v5742_v38  ;;  %v8754_v38 = vld [vmem:[#allocation7_spill] sm:$0xff] }
0x14ad   : > { %v3681_v3 = vsel %vm444_vm1, %v7901_v49, %v5749_v19  ;;  %v3680_v48 = vsel %vm444_vm1, %v7897_v37, %v5748_v13 }
0x14ae   : > { %v3697_v24 = vpack.c.bf16 %v3681_v3, %v3680_v48  ;;  %v3679_v52 = vsel %vm444_vm1, %v7903_v10, %v5744_v35  ;;  %v3678_v1 = vsel %vm444_vm1, %v7899_v45, %v5743_v21  ;;  %v8755_v21 = vld [vmem:[#allocation8_spill] sm:$0xff]  ;;  %v8756_v48 = vld [vmem:[#allocation9_spill] sm:$0xff] }
0x14af   : > { %v3696_v41 = vpack.c.bf16 %v3679_v52, %v3678_v1 }
0x14b1   : > { %5559 = vmatprep.mubr.msk.bf16.mxu1 %vm290_vm0, %v3696_v41 }
0x14b2   : > { %5560 = vmatmul.mubr.msk.bf16.gmra.mrb[96].mxu1 %vm290_vm0, %v3697_v24  ;;  %v5757_v34 = vpop.permute.xlu0 %5756 }
0x14b3   : > { %v5759_v60 = vunpack.i.h.bf16 %v5757_v34  ;;  %v5758_v5 = vunpack.i.l.bf16 %v5757_v34  ;;  %v5752_v30 = vpop.permute.xlu1 %5751 }
0x14b4   : > { %v5754_v49 = vunpack.i.h.bf16 %v5752_v30  ;;  %v5753_v17 = vunpack.i.l.bf16 %v5752_v30  ;;  %v8757_v30 = vld [vmem:[#allocation10_spill] sm:$0xff] }
0x14b5   : > { %v3685_v37 = vsel %vm444_vm1, %v7909_v61, %v5759_v60  ;;  %v3684_v10 = vsel %vm444_vm1, %v7905_v53, %v5758_v5 }
0x14b6   : > { %v3699_v28 = vpack.c.bf16 %v3685_v37, %v3684_v10  ;;  %v3683_v45 = vsel %vm444_vm1, %v7911_v33, %v5754_v49  ;;  %v3682_v8 = vsel %vm444_vm1, %v7907_v51, %v5753_v17  ;;  %v8758_v10 = vld [vmem:[#allocation12_spill] sm:$0xff] }
0x14b7   : > { %v3698_v20 = vpack.c.bf16 %v3683_v45, %v3682_v8  ;;  %v8759_v45 = vld [vmem:[#allocation11_spill] sm:$0xff] }
0x14b9   : > { %5563 = vmatprep.mubr.msk.bf16.mxu1 %vm290_vm0, %v3698_v20 }
0x14ba   : > { %5564 = vmatmul.mubr.msk.bf16.gmra.mrb[100].mxu1 %vm290_vm0, %v3699_v28 }
0x14de   : > { %v5767_v57 = vpop.permute.xlu0 %5766 }
0x14df   : > { %v5769_v25 = vunpack.i.h.bf16 %v5767_v57  ;;  %v5768_v0 = vunpack.i.l.bf16 %v5767_v57  ;;  %v5762_v14 = vpop.permute.xlu1 %5761  ;;  %v8760_v57 = vld [vmem:[#allocation13_spill] sm:$0xff] }
0x14e0   : > { %v5764_v61 = vunpack.i.h.bf16 %v5762_v14  ;;  %v5763_v32 = vunpack.i.l.bf16 %v5762_v14 }
0x14e1   : > { %v3689_v53 = vsel %vm444_vm1, %v7917_v42, %v5769_v25  ;;  %v3688_v33 = vsel %vm444_vm1, %v7913_v29, %v5768_v0 }
0x14e2   : > { %v3701_v58 = vpack.c.bf16 %v3689_v53, %v3688_v33  ;;  %v3687_v51 = vsel %vm444_vm1, %v7919_v54, %v5764_v61  ;;  %v3686_v40 = vsel %vm444_vm1, %v7915_v59, %v5763_v32 }
0x14e3   : > { %v3700_v50 = vpack.c.bf16 %v3687_v51, %v3686_v40 }
0x14e5   : > { %5567 = vmatprep.mubr.msk.bf16.mxu1 %vm290_vm0, %v3700_v50 }
0x14e6   : > { %5568 = vmatmul.mubr.msk.bf16.gmra.mrb[104].mxu1 %vm290_vm0, %v3701_v58 }
0x157d   : > { %v5557_v2 = vpop.f32.mrb[92].mxu1 }
0x157e   : > { %v3772_v7 = vpop.f32.mrb[93].mxu1  ;;  %v8137_v63 = vadd.f32 %v5557_v2, %v7463_v43 }
0x157f   : > { %v8126_v55 = vadd.f32 %v3772_v7, %v7453_v23  ;;  %v5558_v42 = vpop.f32.mrb[94].mxu1 }
0x1580   : > { %v3775_v44 = vpop.f32.mrb[95].mxu1  ;;  %v8129_v29 = vadd.f32 %v5558_v42, %v7466_v36  ;;  %v3860_v15 = vsel %vm290_vm0, %v8137_v63, 0.0 }
0x1581   : > { %v8132_v54 = vadd.f32 %v3775_v44, %v7456_v22  ;;  %v3854_v59 = vsel %vm290_vm0, %v8126_v55, 0.0 }
0x1582   : > { %3855 = vadd.xlane.f32.xlu1 %v3854_v59  ;;  %v3863_v11 = vsel %vm290_vm0, %v8129_v29, 0.0 }
0x1583   : > { %v3857_v6 = vsel %vm290_vm0, %v8132_v54, 0.0 }
0x1584   : > { %3858 = vadd.xlane.f32.xlu0 %v3857_v6 }
0x1585   : > { %v5561_v23 = vpop.f32.mrb[96].mxu1 }
0x1586   : > { %3864 = vadd.xlane.f32.xlu1 %v3863_v11  ;;  %v3788_v36 = vpop.f32.mrb[97].mxu1  ;;  %v8152_v12 = vadd.f32 %v5561_v23, %v7489_v46 }
0x1587   : > { %v8144_v22 = vadd.f32 %v3788_v36, %v7477_v47  ;;  %v5562_v4 = vpop.f32.mrb[98].mxu1 }
0x1588   : > { %3861 = vadd.xlane.f32.xlu0 %v3860_v15  ;;  %v3791_v43 = vpop.f32.mrb[99].mxu1  ;;  %v8155_v9 = vadd.f32 %v5562_v4, %v8752_v26  ;;  %v3872_v46 = vsel %vm290_vm0, %v8152_v12, 0.0 }
0x1589   : > { %v8149_v62 = vadd.f32 %v3791_v43, %v7480_v39  ;;  %v3866_v16 = vsel %vm290_vm0, %v8144_v22, 0.0 }
0x158a   : > { %v3875_v19 = vsel %vm290_vm0, %v8155_v9, 0.0 }
0x158b   : > { %v3869_v47 = vsel %vm290_vm0, %v8149_v62, 0.0 }
0x158c   : > { %3867 = vadd.xlane.f32.xlu0 %v3866_v16  ;;  %3870 = vadd.xlane.f32.xlu1 %v3869_v47 }
0x158d   : > { %v5565_v27 = vpop.f32.mrb[100].mxu1 }
0x158e   : > { %v3804_v18 = vpop.f32.mrb[101].mxu1  ;;  %v8172_v3 = vadd.f32 %v5565_v27, %v8755_v21 }
0x158f   : > { %v8162_v56 = vadd.f32 %v3804_v18, %v8753_v31  ;;  %v5566_v39 = vpop.f32.mrb[102].mxu1 }
0x1590   : > { %3873 = vadd.xlane.f32.xlu0 %v3872_v46  ;;  %3876 = vadd.xlane.f32.xlu1 %v3875_v19  ;;  %v3807_v13 = vpop.f32.mrb[103].mxu1  ;;  %v8175_v24 = vadd.f32 %v5566_v39, %v8756_v48  ;;  %v3884_v41 = vsel %vm290_vm0, %v8172_v3, 0.0 }
0x1591   : > { %v8169_v35 = vadd.f32 %v3807_v13, %v8754_v38  ;;  %v3878_v52 = vsel %vm290_vm0, %v8162_v56, 0.0 }
0x1592   : > { %v3887_v34 = vsel %vm290_vm0, %v8175_v24, 0.0 }
0x1593   : > { %v3881_v1 = vsel %vm290_vm0, %v8169_v35, 0.0 }
0x1594   : > { %3879 = vadd.xlane.f32.xlu0 %v3878_v52  ;;  %3882 = vadd.xlane.f32.xlu1 %v3881_v1 }
0x1598   : > { %3885 = vadd.xlane.f32.xlu0 %v3884_v41  ;;  %3888 = vadd.xlane.f32.xlu1 %v3887_v34 }
0x15b9   : > { %v5569_v60 = vpop.f32.mrb[104].mxu1 }
0x15ba   : > { %v3820_v5 = vpop.f32.mrb[105].mxu1  ;;  %v8189_v28 = vadd.f32 %v5569_v60, %v8758_v10 }
0x15bb   : > { %v8186_v49 = vadd.f32 %v3820_v5, %v8757_v30  ;;  %v5570_v17 = vpop.f32.mrb[106].mxu1 }
0x15bc   : > { %v3823_v37 = vpop.f32.mrb[107].mxu1  ;;  %v8197_v25 = vadd.f32 %v5570_v17, %v8760_v57  ;;  %v3896_v14 = vsel %vm290_vm0, %v8189_v28, 0.0 }
0x15bd   : > { %v8192_v8 = vadd.f32 %v3823_v37, %v8759_v45  ;;  %v3890_v20 = vsel %vm290_vm0, %v8186_v49, 0.0 }
0x15be   : > { %3891 = vadd.xlane.f32.xlu0 %v3890_v20  ;;  %v3899_v61 = vsel %vm290_vm0, %v8197_v25, 0.0 }
0x15bf   : > { %v3893_v0 = vsel %vm290_vm0, %v8192_v8, 0.0 }
0x15c0   : > { %3894 = vadd.xlane.f32.xlu1 %v3893_v0 }
0x15c2   : > { %3897 = vadd.xlane.f32.xlu0 %v3896_v14 }
0x15c4   : > { %3900 = vadd.xlane.f32.xlu1 %v3899_v61 }
0x160f   : > { %v3856_v32 = vpop.xlane.xlu1 %3855 }
0x1610   : > { %v3902_v53 = vmul.f32 0.03125, %v3856_v32 }
0x1611   : > { %v3859_v33 = vpop.xlane.xlu0 %3858 }
0x1612   : > { %v8206_v58 = vsub.f32 %v8126_v55, %v3902_v53  ;;  %v3903_v51 = vmul.f32 0.03125, %v3859_v33  ;;  %v5785_v53 = vld [vmem:[#allocation2 + $0x78] sm:$0xff]  }
0x1613   : > { %v3865_v40 = vpop.xlane.xlu1 %3864 }
0x1614   : > { %v8209_v50 = vsub.f32 %v8132_v54, %v3903_v51  ;;  %v3905_v2 = vmul.f32 0.03125, %v3865_v40  ;;  %v3934_v7 = vmul.f32 %v8206_v58, %v8206_v58 }
0x1615   : > { %v3862_v42 = vpop.xlane.xlu0 %3861 }
0x1616   : > { %v8214_v44 = vsub.f32 %v8129_v29, %v3905_v2  ;;  %v3904_v59 = vmul.f32 0.03125, %v3862_v42  ;;  %v3950_v6 = vsel %vm290_vm0, %v3934_v7, 0.0  ;;  %v3935_v55 = vmul.f32 %v8209_v50, %v8209_v50 }
0x1617   : > { %3951 = vadd.xlane.f32.xlu0 %v3950_v6 }
0x1618   : > { %v8220_v23 = vsub.f32 %v8137_v63, %v3904_v59  ;;  %v3953_v54 = vsel %vm290_vm0, %v3935_v55, 0.0  ;;  %v3937_v11 = vmul.f32 %v8214_v44, %v8214_v44 }
0x1619   : > { %v3868_v36 = vpop.xlane.xlu0 %3867  ;;  %v3871_v4 = vpop.xlane.xlu1 %3870  ;;  %3954 = vadd.xlane.f32.xlu1 %v3953_v54 }
0x161a   : > { %v3906_v29 = vmul.f32 0.03125, %v3868_v36  ;;  %v3907_v15 = vmul.f32 0.03125, %v3871_v4  ;;  %v3936_v43 = vmul.f32 %v8220_v23, %v8220_v23  ;;  %v3959_v47 = vsel %vm290_vm0, %v3937_v11, 0.0 }
0x161c   : > { %v8228_v26 = vsub.f32 %v8144_v22, %v3906_v29  ;;  %v8231_v16 = vsub.f32 %v8149_v62, %v3907_v15  ;;  %v3956_v63 = vsel %vm290_vm0, %v3936_v43, 0.0 }
0x161d   : > { %v3874_v27 = vpop.xlane.xlu0 %3873  ;;  %v3877_v18 = vpop.xlane.xlu1 %3876  ;;  %3957 = vadd.xlane.f32.xlu0 %v3956_v63  ;;  %3960 = vadd.xlane.f32.xlu1 %v3959_v47  ;;  %v5786_v47 = vld [vmem:[#allocation2 + $0x80] sm:$0xff]  }
0x161e   : > { %v3908_v31 = vmul.f32 0.03125, %v3874_v27  ;;  %v3909_v39 = vmul.f32 0.03125, %v3877_v18  ;;  %v3938_v46 = vmul.f32 %v8228_v26, %v8228_v26  ;;  %v3939_v22 = vmul.f32 %v8231_v16, %v8231_v16  ;;  %v5787_v27 = vld [vmem:[#allocation2 + $0x88] sm:$0xff]   ;;  %5591 = vmatprep.subr.bf16.mxu1 %v5786_v47 }
0x161f   : > { %5592 = vmatpush3.bf16.msra.mxu1 %v5786_v47 }
0x1620   : > { %v8240_v19 = vsub.f32 %v8152_v12, %v3908_v31  ;;  %v8243_v62 = vsub.f32 %v8155_v9, %v3909_v39  ;;  %v3962_v13 = vsel %vm290_vm0, %v3938_v46, 0.0  ;;  %v3965_v38 = vsel %vm290_vm0, %v3939_v22, 0.0  ;;  %5593 = vmatprep.subr.bf16.mxu1 %v5787_v27 }
0x1621   : > { %v3880_v21 = vpop.xlane.xlu0 %3879  ;;  %v3883_v48 = vpop.xlane.xlu1 %3882  ;;  %3963 = vadd.xlane.f32.xlu0 %v3962_v13  ;;  %3966 = vadd.xlane.f32.xlu1 %v3965_v38 }
0x1622   : > { %v3910_v52 = vmul.f32 0.03125, %v3880_v21  ;;  %v3911_v1 = vmul.f32 0.03125, %v3883_v48  ;;  %v3940_v41 = vmul.f32 %v8240_v19, %v8240_v19  ;;  %v3941_v12 = vmul.f32 %v8243_v62, %v8243_v62 }
0x1623   : > { %5594 = vmatpush3.bf16.msra.mxu1 %v5787_v27 }
0x1624   : > { %v8252_v34 = vsub.f32 %v8162_v56, %v3910_v52  ;;  %v8255_v9 = vsub.f32 %v8169_v35, %v3911_v1  ;;  %v3968_v60 = vsel %vm290_vm0, %v3940_v41, 0.0  ;;  %v3971_v5 = vsel %vm290_vm0, %v3941_v12, 0.0 }
0x1625   : > { %v3886_v30 = vpop.xlane.xlu0 %3885  ;;  %v3889_v17 = vpop.xlane.xlu1 %3888  ;;  %3969 = vadd.xlane.f32.xlu0 %v3968_v60  ;;  %3972 = vadd.xlane.f32.xlu1 %v3971_v5 }
0x1626   : > { %v3912_v37 = vmul.f32 0.03125, %v3886_v30  ;;  %v3913_v10 = vmul.f32 0.03125, %v3889_v17  ;;  %v3942_v45 = vmul.f32 %v8252_v34, %v8252_v34  ;;  %v3943_v56 = vmul.f32 %v8255_v9, %v8255_v9 }
0x1628   : > { %v8264_v20 = vsub.f32 %v8172_v3, %v3912_v37  ;;  %v8267_v35 = vsub.f32 %v8175_v24, %v3913_v10  ;;  %v3974_v57 = vsel %vm290_vm0, %v3942_v45, 0.0  ;;  %v3977_v0 = vsel %vm290_vm0, %v3943_v56, 0.0  ;;  %v5784_v24 = vld [vmem:[#allocation2 + $0x70] sm:$0xff]   ;;  %v8304_v56 = vld [vmem:[%s8724_s2 + $0x8] ss:$0 sm:$0xff] }
0x1629   : > { %3975 = vadd.xlane.f32.xlu0 %v3974_v57  ;;  %3978 = vadd.xlane.f32.xlu1 %v3977_v0 }
0x162a   : > { %v3944_v14 = vmul.f32 %v8264_v20, %v8264_v20  ;;  %v3945_v61 = vmul.f32 %v8267_v35, %v8267_v35  ;;  %5571 = vmatprep.subr.bf16.mxu0 %v5784_v24 }
0x162b   : > { %5572 = vmatpush3.bf16.msra.mxu0 %v5784_v24 }
0x162c   : > { %v3980_v32 = vsel %vm290_vm0, %v3944_v14, 0.0  ;;  %v3983_v3 = vsel %vm290_vm0, %v3945_v61, 0.0  ;;  %5573 = vmatprep.subr.bf16.mxu0 %v5785_v53 }
0x162d   : > { %3981 = vadd.xlane.f32.xlu0 %v3980_v32  ;;  %3984 = vadd.xlane.f32.xlu1 %v3983_v3 }
0x162f   : > { %5574 = vmatpush3.bf16.msra.mxu0 %v5785_v53 }
0x164b   : > { %v3892_v33 = vpop.xlane.xlu0 %3891 }
0x164c   : > { %v3914_v51 = vmul.f32 0.03125, %v3892_v33 }
0x164d   : > { %v3895_v40 = vpop.xlane.xlu1 %3894 }
0x164e   : > { %v8278_v2 = vsub.f32 %v8186_v49, %v3914_v51  ;;  %v3915_v7 = vmul.f32 0.03125, %v3895_v40  ;;  %v8312_v40 = vld [vmem:[%s8724_s2 + $0x9] ss:$0 sm:$0xff] }
0x164f   : > { %v3898_v42 = vpop.xlane.xlu0 %3897 }
0x1650   : > { %v8281_v59 = vsub.f32 %v8192_v8, %v3915_v7  ;;  %v3916_v6 = vmul.f32 0.03125, %v3898_v42  ;;  %v3946_v55 = vmul.f32 %v8278_v2, %v8278_v2 }
0x1651   : > { %v3901_v54 = vpop.xlane.xlu1 %3900 }
0x1652   : > { %v8286_v11 = vsub.f32 %v8189_v28, %v3916_v6  ;;  %v3917_v36 = vmul.f32 0.03125, %v3901_v54  ;;  %v3986_v4 = vsel %vm290_vm0, %v3946_v55, 0.0  ;;  %v3947_v49 = vmul.f32 %v8281_v59, %v8281_v59 }
0x1653   : > { %3987 = vadd.xlane.f32.xlu0 %v3986_v4 }
0x1654   : > { %v8292_v29 = vsub.f32 %v8197_v25, %v3917_v36  ;;  %v3989_v8 = vsel %vm290_vm0, %v3947_v49, 0.0  ;;  %v3948_v15 = vmul.f32 %v8286_v11, %v8286_v11 }
0x1655   : > { %3990 = vadd.xlane.f32.xlu1 %v3989_v8 }
0x1656   : > { %v3992_v43 = vsel %vm290_vm0, %v3948_v15, 0.0  ;;  %v3949_v28 = vmul.f32 %v8292_v29, %v8292_v29 }
0x1657   : > { %3993 = vadd.xlane.f32.xlu0 %v3992_v43 }
0x1658   : > { %v3995_v63 = vsel %vm290_vm0, %v3949_v28, 0.0 }
0x1659   : > { %3996 = vadd.xlane.f32.xlu1 %v3995_v63 }
0x16a4   : > { %v3952_v25 = vpop.xlane.xlu0 %3951 }
0x16a5   : > { %v3998_v18 = vmul.f32 0.03125, %v3952_v25 }
0x16a6   : > { %v3955_v31 = vpop.xlane.xlu1 %3954 }
0x16a7   : > { %v4014_v39 = vadd.f32 1e-06, %v3998_v18  ;;  %v3999_v46 = vmul.f32 0.03125, %v3955_v31 }
0x16a9   : > { %6110 = vrsqrt.f32 %v4014_v39  ;;  %v4015_v22 = vadd.f32 1e-06, %v3999_v46 }
0x16aa   : > { %v3958_v13 = vpop.xlane.xlu0 %3957  ;;  %v3961_v38 = vpop.xlane.xlu1 %3960 }
0x16ab   : > { %6112 = vrsqrt.f32 %v4015_v22  ;;  %v4000_v21 = vmul.f32 0.03125, %v3958_v13  ;;  %v4001_v48 = vmul.f32 0.03125, %v3961_v38 }
0x16ad   : > { %v4016_v52 = vadd.f32 1e-06, %v4000_v21  ;;  %v4017_v1 = vadd.f32 1e-06, %v4001_v48 }
0x16ae   : > { %v3964_v41 = vpop.xlane.xlu0 %3963  ;;  %v3967_v12 = vpop.xlane.xlu1 %3966 }
0x16af   : > { %6114 = vrsqrt.f32 %v4016_v52  ;;  %v4002_v60 = vmul.f32 0.03125, %v3964_v41  ;;  %v4003_v5 = vmul.f32 0.03125, %v3967_v12 }
0x16b0   : > { %6116 = vrsqrt.f32 %v4017_v1 }
0x16b1   : > { %v4018_v30 = vadd.f32 1e-06, %v4002_v60  ;;  %v4019_v17 = vadd.f32 1e-06, %v4003_v5 }
0x16b2   : > { %v3970_v37 = vpop.xlane.xlu0 %3969  ;;  %v3973_v10 = vpop.xlane.xlu1 %3972 }
0x16b3   : > { %v6111_v45 = vpop.eup %6110  ;;  %6118 = vrsqrt.f32 %v4018_v30  ;;  %v4004_v57 = vmul.f32 0.03125, %v3970_v37  ;;  %v4005_v0 = vmul.f32 0.03125, %v3973_v10 }
0x16b4   : > { %v4046_v14 = vmul.f32 %v6111_v45, %v8206_v58  ;;  %6120 = vrsqrt.f32 %v4019_v17 }
0x16b5   : > { %v6113_v61 = vpop.eup %6112  ;;  %v4020_v32 = vadd.f32 1e-06, %v4004_v57  ;;  %v4021_v3 = vadd.f32 1e-06, %v4005_v0 }
0x16b6   : > { %v4047_v24 = vmul.f32 %v6113_v61, %v8209_v50  ;;  %v3976_v53 = vpop.xlane.xlu0 %3975  ;;  %v3979_v33 = vpop.xlane.xlu1 %3978  ;;  %v4066_v51 = vmul.f32 %v8304_v56, %v4046_v14 }
0x16b7   : > { %6122 = vrsqrt.f32 %v4020_v32  ;;  %v4006_v7 = vmul.f32 0.03125, %v3976_v53  ;;  %v4007_v42 = vmul.f32 0.03125, %v3979_v33 }
0x16b8   : > { %6124 = vrsqrt.f32 %v4021_v3  ;;  %v4067_v58 = vmul.f32 %v8304_v56, %v4047_v24  ;;  %v8317_v8 = vadd.f32 %v8312_v40, %v4066_v51 }
0x16b9   : > { %v6115_v6 = vpop.eup %6114  ;;  %v4022_v55 = vadd.f32 1e-06, %v4006_v7  ;;  %v4023_v54 = vadd.f32 1e-06, %v4007_v42 }
0x16ba   : > { %v6117_v36 = vpop.eup %6116  ;;  %v4048_v50 = vmul.f32 %v6115_v6, %v8220_v23  ;;  %v3982_v4 = vpop.xlane.xlu0 %3981  ;;  %v8320_v15 = vadd.f32 %v8312_v40, %v4067_v58 }
0x16bb   : > { %v3985_v49 = vpop.xlane.xlu1 %3984  ;;  %v4049_v43 = vmul.f32 %v6117_v36, %v8214_v44  ;;  %6126 = vrsqrt.f32 %v4022_v55  ;;  %v4008_v28 = vmul.f32 0.03125, %v3982_v4 }
0x16bc   : > { %v4009_v63 = vmul.f32 0.03125, %v3985_v49  ;;  %v4068_v47 = vmul.f32 %v8304_v56, %v4048_v50  ;;  %6128 = vrsqrt.f32 %v4023_v54  ;;  %v4106_v27 = vpack.c.bf16 %v8320_v15, %v8317_v8 }
0x16bd   : > { %v6119_v23 = vpop.eup %6118  ;;  %v4069_v25 = vmul.f32 %v8304_v56, %v4049_v43  ;;  %v4024_v18 = vadd.f32 1e-06, %v4008_v28 }
0x16be   : > { %v4025_v31 = vadd.f32 1e-06, %v4009_v63  ;;  %v6121_v39 = vpop.eup %6120  ;;  %v8328_v46 = vadd.f32 %v8312_v40, %v4068_v47  ;;  %v4050_v44 = vmul.f32 %v6119_v23, %v8228_v26  ;;  %5575 = vmatprep.mubr.msk.bf16.mxu0 %vm290_vm0, %v4106_v27 }
0x16bf   : > { %v8333_v22 = vadd.f32 %v8312_v40, %v4069_v25  ;;  %v4051_v13 = vmul.f32 %v6121_v39, %v8231_v16  ;;  %6130 = vrsqrt.f32 %v4024_v18 }
0x16c0   : > { %6132 = vrsqrt.f32 %v4025_v31  ;;  %v4070_v38 = vmul.f32 %v8304_v56, %v4050_v44 }
0x16c1   : > { %v6123_v21 = vpop.eup %6122  ;;  %v4107_v48 = vpack.c.bf16 %v8333_v22, %v8328_v46  ;;  %v4071_v52 = vmul.f32 %v8304_v56, %v4051_v13 }
0x16c2   : > { %v6125_v1 = vpop.eup %6124  ;;  %v4052_v26 = vmul.f32 %v6123_v21, %v8240_v19  ;;  %v8342_v41 = vadd.f32 %v8312_v40, %v4070_v38 }
0x16c3   : > { %v4053_v12 = vmul.f32 %v6125_v1, %v8243_v62  ;;  %5576 = vmatmul.mubr.msk.bf16.vlgmr.msra.gmra.mrb[116].mxu0 %vm290_vm0, %v4107_v48  ;;  %v8347_v16 = vadd.f32 %v8312_v40, %v4071_v52 }
0x16c4   : > { %v4072_v60 = vmul.f32 %v8304_v56, %v4052_v26  ;;  %v5788_v26 = vld [vmem:[#allocation2 + $0x90] sm:$0xff]  }
0x16c5   : > { %v6127_v5 = vpop.eup %6126  ;;  %v4108_v30 = vpack.c.bf16 %v8347_v16, %v8342_v41  ;;  %v4073_v17 = vmul.f32 %v8304_v56, %v4053_v12  ;;  %5595 = vmatprep.subr.bf16.mxu1 %v5788_v26  ;;  %v5789_v12 = vld [vmem:[#allocation2 + $0x98] sm:$0xff]  }
0x16c6   : > { %v6129_v37 = vpop.eup %6128  ;;  %v4054_v19 = vmul.f32 %v6127_v5, %v8252_v34  ;;  %v8355_v10 = vadd.f32 %v8312_v40, %v4072_v60  ;;  %5596 = vmatpush3.bf16.msra.mxu1 %v5788_v26 }
0x16c7   : > { %v4055_v62 = vmul.f32 %v6129_v37, %v8255_v9  ;;  %5579 = vmatprep.mubr.msk.bf16.mxu0 %vm290_vm0, %v4108_v30  ;;  %v8360_v45 = vadd.f32 %v8312_v40, %v4073_v17  ;;  %5597 = vmatprep.subr.bf16.mxu1 %v5789_v12 }
0x16c8   : > { %v4074_v57 = vmul.f32 %v8304_v56, %v4054_v19 }
0x16c9   : > { %v6131_v0 = vpop.eup %6130  ;;  %v4109_v14 = vpack.c.bf16 %v8360_v45, %v8355_v10  ;;  %v4075_v61 = vmul.f32 %v8304_v56, %v4055_v62 }
0x16ca   : > { %v6133_v32 = vpop.eup %6132  ;;  %v4056_v34 = vmul.f32 %v6131_v0, %v8264_v20  ;;  %v8368_v3 = vadd.f32 %v8312_v40, %v4074_v57  ;;  %5598 = vmatpush3.bf16.msra.mxu1 %v5789_v12 }
0x16cb   : > { %v4057_v9 = vmul.f32 %v6133_v32, %v8267_v35  ;;  %5580 = vmatmul.mubr.msk.bf16.gmra.mrb[120].mxu0 %vm290_vm0, %v4109_v14  ;;  %v8373_v24 = vadd.f32 %v8312_v40, %v4075_v61 }
0x16cc   : > { %v4076_v53 = vmul.f32 %v8304_v56, %v4056_v34 }
0x16cd   : > { %v4110_v33 = vpack.c.bf16 %v8373_v24, %v8368_v3  ;;  %v4077_v51 = vmul.f32 %v8304_v56, %v4057_v9 }
0x16ce   : > { %v8380_v7 = vadd.f32 %v8312_v40, %v4076_v53 }
0x16cf   : > { %5583 = vmatprep.mubr.msk.bf16.mxu0 %vm290_vm0, %v4110_v33  ;;  %v8384_v20 = vadd.f32 %v8312_v40, %v4077_v51 }
0x16d1   : > { %v4111_v35 = vpack.c.bf16 %v8384_v20, %v8380_v7 }
0x16d3   : > { %5584 = vmatmul.mubr.msk.bf16.gmra.mrb[124].mxu0 %vm290_vm0, %v4111_v35 }
0x16e0   : > { %v3988_v42 = vpop.xlane.xlu0 %3987 }
0x16e1   : > { %v4010_v58 = vmul.f32 0.03125, %v3988_v42 }
0x16e2   : > { %v3991_v6 = vpop.xlane.xlu1 %3990 }
0x16e3   : > { %v4026_v55 = vadd.f32 1e-06, %v4010_v58  ;;  %v4011_v54 = vmul.f32 0.03125, %v3991_v6 }
0x16e4   : > { %v3994_v36 = vpop.xlane.xlu0 %3993 }
0x16e5   : > { %6134 = vrsqrt.f32 %v4026_v55  ;;  %v4027_v50 = vadd.f32 1e-06, %v4011_v54  ;;  %v4012_v4 = vmul.f32 0.03125, %v3994_v36 }
0x16e6   : > { %v3997_v49 = vpop.xlane.xlu1 %3996 }
0x16e7   : > { %6136 = vrsqrt.f32 %v4027_v50  ;;  %v4028_v43 = vadd.f32 1e-06, %v4012_v4  ;;  %v4013_v28 = vmul.f32 0.03125, %v3997_v49 }
0x16e9   : > { %6138 = vrsqrt.f32 %v4028_v43  ;;  %v4029_v63 = vadd.f32 1e-06, %v4013_v28 }
0x16eb   : > { %6140 = vrsqrt.f32 %v4029_v63 }
0x16ef   : > { %v6135_v47 = vpop.eup %6134 }
0x16f0   : > { %v4058_v27 = vmul.f32 %v6135_v47, %v8278_v2 }
0x16f1   : > { %v6137_v23 = vpop.eup %6136 }
0x16f2   : > { %v4059_v25 = vmul.f32 %v6137_v23, %v8281_v59  ;;  %v4078_v18 = vmul.f32 %v8304_v56, %v4058_v27 }
0x16f3   : > { %v6139_v31 = vpop.eup %6138 }
0x16f4   : > { %v4060_v39 = vmul.f32 %v6139_v31, %v8286_v11  ;;  %v4079_v44 = vmul.f32 %v8304_v56, %v4059_v25  ;;  %v8396_v21 = vadd.f32 %v8312_v40, %v4078_v18 }
0x16f5   : > { %v6141_v13 = vpop.eup %6140 }
0x16f6   : > { %v4061_v38 = vmul.f32 %v6141_v13, %v8292_v29  ;;  %v8399_v48 = vadd.f32 %v8312_v40, %v4079_v44  ;;  %v4080_v2 = vmul.f32 %v8304_v56, %v4060_v39 }
0x16f8   : > { %v4112_v59 = vpack.c.bf16 %v8399_v48, %v8396_v21  ;;  %v4081_v52 = vmul.f32 %v8304_v56, %v4061_v38  ;;  %v8406_v11 = vadd.f32 %v8312_v40, %v4080_v2  ;;  %v4955_v56 = vld [vmem:[%s8724_s2 + $0xc] ss:$0 sm:$0xff] }
0x16fa   : > { %5587 = vmatprep.mubr.msk.bf16.mxu0 %vm290_vm0, %v4112_v59  ;;  %v8410_v29 = vadd.f32 %v8312_v40, %v4081_v52 }
0x16fc   : > { %v4113_v1 = vpack.c.bf16 %v8410_v29, %v8406_v11 }
0x16fe   : > { %5588 = vmatmul.mubr.msk.bf16.gmra.mrb[128].mxu0 %vm290_vm0, %v4113_v1 }
0x1796   : > { %v5577_v60 = vpop.f32.mrb[116].mxu0 }
0x1797   : > { %v4254_v5 = vadd.f32 %v5577_v60, %v4955_v56  ;;  %v4184_v30 = vpop.f32.mrb[117].mxu0 }
0x1798   : > { %v4252_v40 = vadd.f32 %v4955_v56, %v4184_v30  ;;  %v5578_v17 = vpop.f32.mrb[118].mxu0 }
0x1799   : > { %v4255_v37 = vadd.f32 %v5578_v17, %v4955_v56  ;;  %v4187_v19 = vpop.f32.mrb[119].mxu0  ;;  %v4270_v57 = vmax.f32 %v4254_v5, 0.0 }
0x179a   : > { %v4253_v62 = vadd.f32 %v4955_v56, %v4187_v19  ;;  %v4268_v14 = vmax.f32 %v4252_v40, 0.0 }
0x179b   : > { %v4271_v0 = vmax.f32 %v4255_v37, 0.0 }
0x179c   : > { %v4269_v61 = vmax.f32 %v4253_v62, 0.0 }
0x179d   : > { %v4293_v32 = vpack.c.bf16 %v4271_v0, %v4270_v57  ;;  %v8429_v0 = vld [vmem:[%s8724_s2 + $0xd] ss:$0 sm:$0xff] }
0x179e   : > { %v4292_v34 = vpack.c.bf16 %v4269_v61, %v4268_v14  ;;  %v5581_v9 = vpop.f32.mrb[120].mxu0 }
0x179f   : > { %v4258_v53 = vadd.f32 %v5581_v9, %v4955_v56  ;;  %v4200_v33 = vpop.f32.mrb[121].mxu0 }
0x17a0   : > { %v4256_v51 = vadd.f32 %v4955_v56, %v4200_v33  ;;  %v5582_v35 = vpop.f32.mrb[122].mxu0  ;;  %5599 = vmatprep.mubr.msk.bf16.mxu1 %vm2091_vm2, %v4292_v34 }
0x17a1   : > { %v4259_v42 = vadd.f32 %v5582_v35, %v4955_v56  ;;  %v4203_v58 = vpop.f32.mrb[123].mxu0  ;;  %5600 = vmatmul.mubr.msk.bf16.vlgmr.msra.gmra.mrb[108].mxu1 %vm2091_vm2, %v4293_v32  ;;  %v4274_v55 = vmax.f32 %v4258_v53, 0.0 }
0x17a2   : > { %v4257_v6 = vadd.f32 %v4955_v56, %v4203_v58  ;;  %v4272_v36 = vmax.f32 %v4256_v51, 0.0 }
0x17a3   : > { %v4275_v54 = vmax.f32 %v4259_v42, 0.0 }
0x17a4   : > { %v4273_v50 = vmax.f32 %v4257_v6, 0.0 }
0x17a5   : > { %v4295_v4 = vpack.c.bf16 %v4275_v54, %v4274_v55 }
0x17a6   : > { %v4294_v49 = vpack.c.bf16 %v4273_v50, %v4272_v36  ;;  %v5585_v43 = vpop.f32.mrb[124].mxu0 }
0x17a7   : > { %v4262_v28 = vadd.f32 %v5585_v43, %v4955_v56  ;;  %v4216_v63 = vpop.f32.mrb[125].mxu0 }
0x17a8   : > { %v4260_v47 = vadd.f32 %v4955_v56, %v4216_v63  ;;  %v5586_v27 = vpop.f32.mrb[126].mxu0  ;;  %5603 = vmatprep.mubr.msk.bf16.mxu1 %vm2091_vm2, %v4294_v49 }
0x17a9   : > { %v4263_v23 = vadd.f32 %v5586_v27, %v4955_v56  ;;  %v4219_v25 = vpop.f32.mrb[127].mxu0  ;;  %5604 = vmatmul.mubr.msk.bf16.gmra.mrb[112].mxu1 %vm2091_vm2, %v4295_v4  ;;  %v4278_v31 = vmax.f32 %v4262_v28, 0.0 }
0x17aa   : > { %v4261_v18 = vadd.f32 %v4955_v56, %v4219_v25  ;;  %v4276_v44 = vmax.f32 %v4260_v47, 0.0 }
0x17ab   : > { %v4279_v39 = vmax.f32 %v4263_v23, 0.0 }
0x17ac   : > { %v4277_v13 = vmax.f32 %v4261_v18, 0.0 }
0x17ad   : > { %v4297_v38 = vpack.c.bf16 %v4279_v39, %v4278_v31 }
0x17ae   : > { %v4296_v2 = vpack.c.bf16 %v4277_v13, %v4276_v44 }
0x17b0   : > { %5607 = vmatprep.mubr.msk.bf16.mxu1 %vm2091_vm2, %v4296_v2 }
0x17b1   : > { %5608 = vmatmul.mubr.msk.bf16.gmra.mrb[116].mxu1 %vm2091_vm2, %v4297_v38 }
0x17d1   : > { %v5589_v59 = vpop.f32.mrb[128].mxu0 }
0x17d2   : > { %v4266_v52 = vadd.f32 %v5589_v59, %v4955_v56  ;;  %v4232_v1 = vpop.f32.mrb[129].mxu0 }
0x17d3   : > { %v4264_v26 = vadd.f32 %v4955_v56, %v4232_v1  ;;  %v5590_v12 = vpop.f32.mrb[130].mxu0 }
0x17d4   : > { %v4267_v60 = vadd.f32 %v5590_v12, %v4955_v56  ;;  %v4235_v5 = vpop.f32.mrb[131].mxu0  ;;  %v4282_v40 = vmax.f32 %v4266_v52, 0.0 }
0x17d5   : > { %v4265_v30 = vadd.f32 %v4955_v56, %v4235_v5  ;;  %v4280_v37 = vmax.f32 %v4264_v26, 0.0 }
0x17d6   : > { %v4283_v17 = vmax.f32 %v4267_v60, 0.0 }
0x17d7   : > { %v4281_v19 = vmax.f32 %v4265_v30, 0.0 }
0x17d8   : > { %v4299_v62 = vpack.c.bf16 %v4283_v17, %v4282_v40 }
0x17d9   : > { %v4298_v57 = vpack.c.bf16 %v4281_v19, %v4280_v37 }
0x17db   : > { %5611 = vmatprep.mubr.msk.bf16.mxu1 %vm2091_vm2, %v4298_v57 }
0x17dc   : > { %5612 = vmatmul.mubr.msk.bf16.gmra.mrb[120].mxu1 %vm2091_vm2, %v4299_v62 }
0x1874   : > { %v5601_v14 = vpop.f32.mrb[108].mxu1 }
0x1875   : > { %v4452_v61 = vadd.f32 %v5601_v14, %v8429_v0  ;;  %v4382_v32 = vpop.f32.mrb[109].mxu1 }
0x1876   : > { %v4450_v56 = vadd.f32 %v8429_v0, %v4382_v32  ;;  %v5602_v34 = vpop.f32.mrb[110].mxu1 }
0x1877   : > { %v8434_v9 = vadd.f32 %v4452_v61, %v8328_v46  ;;  %v4453_v53 = vadd.f32 %v5602_v34, %v8429_v0  ;;  %v4385_v33 = vpop.f32.mrb[111].mxu1 }
0x1878   : > { %v4451_v51 = vadd.f32 %v8429_v0, %v4385_v33  ;;  %v8439_v35 = vadd.f32 %v4450_v56, %v8317_v8 }
0x1879   : > { %v8442_v42 = vadd.f32 %v4453_v53, %v8333_v22  ;;  %v4490_v58 = vsel %vm290_vm0, %v8434_v9, 0.0 }
0x187a   : > { %4491 = vadd.xlane.f32.xlu0 %v4490_v58  ;;  %v8447_v6 = vadd.f32 %v4451_v51, %v8320_v15  ;;  %v4484_v8 = vsel %vm290_vm0, %v8439_v35, 0.0 }
0x187b   : > { %v4493_v46 = vsel %vm290_vm0, %v8442_v42, 0.0 }
0x187c   : > { %4494 = vadd.xlane.f32.xlu1 %v4493_v46  ;;  %v5605_v55 = vpop.f32.mrb[112].mxu1  ;;  %v4487_v43 = vsel %vm290_vm0, %v8447_v6, 0.0 }
0x187d   : > { %v4456_v54 = vadd.f32 %v5605_v55, %v8429_v0  ;;  %v4398_v36 = vpop.f32.mrb[113].mxu1 }
0x187e   : > { %v4454_v22 = vadd.f32 %v8429_v0, %v4398_v36  ;;  %4485 = vadd.xlane.f32.xlu0 %v4484_v8  ;;  %v5606_v50 = vpop.f32.mrb[114].mxu1 }
0x187f   : > { %v8456_v4 = vadd.f32 %v4456_v54, %v8355_v10  ;;  %v4457_v15 = vadd.f32 %v5606_v50, %v8429_v0  ;;  %v4401_v49 = vpop.f32.mrb[115].mxu1 }
0x1880   : > { %v4455_v28 = vadd.f32 %v8429_v0, %v4401_v49  ;;  %4488 = vadd.xlane.f32.xlu1 %v4487_v43  ;;  %v8463_v63 = vadd.f32 %v4454_v22, %v8342_v41 }
0x1881   : > { %v8466_v47 = vadd.f32 %v4457_v15, %v8360_v45  ;;  %v4502_v27 = vsel %vm290_vm0, %v8456_v4, 0.0 }
0x1882   : > { %4503 = vadd.xlane.f32.xlu0 %v4502_v27  ;;  %v8471_v10 = vadd.f32 %v4455_v28, %v8347_v16  ;;  %v4496_v41 = vsel %vm290_vm0, %v8463_v63, 0.0 }
0x1883   : > { %v4505_v23 = vsel %vm290_vm0, %v8466_v47, 0.0 }
0x1884   : > { %4506 = vadd.xlane.f32.xlu1 %v4505_v23  ;;  %v5609_v25 = vpop.f32.mrb[116].mxu1  ;;  %v4499_v38 = vsel %vm290_vm0, %v8471_v10, 0.0 }
0x1885   : > { %v4460_v18 = vadd.f32 %v5609_v25, %v8429_v0  ;;  %v4414_v31 = vpop.f32.mrb[117].mxu1 }
0x1886   : > { %v4458_v45 = vadd.f32 %v8429_v0, %v4414_v31  ;;  %4497 = vadd.xlane.f32.xlu0 %v4496_v41  ;;  %v5610_v39 = vpop.f32.mrb[118].mxu1 }
0x1887   : > { %v8480_v44 = vadd.f32 %v4460_v18, %v8380_v7  ;;  %v4461_v16 = vadd.f32 %v5610_v39, %v8429_v0  ;;  %v4417_v13 = vpop.f32.mrb[119].mxu1 }
0x1888   : > { %v4459_v2 = vadd.f32 %v8429_v0, %v4417_v13  ;;  %4500 = vadd.xlane.f32.xlu1 %v4499_v38  ;;  %v8487_v59 = vadd.f32 %v4458_v45, %v8368_v3 }
0x1889   : > { %v8490_v52 = vadd.f32 %v4461_v16, %v8384_v20  ;;  %v4514_v1 = vsel %vm290_vm0, %v8480_v44, 0.0 }
0x188a   : > { %4515 = vadd.xlane.f32.xlu0 %v4514_v1  ;;  %v8495_v7 = vadd.f32 %v4459_v2, %v8373_v24  ;;  %v4508_v12 = vsel %vm290_vm0, %v8487_v59, 0.0 }
0x188b   : > { %v4517_v26 = vsel %vm290_vm0, %v8490_v52, 0.0 }
0x188c   : > { %4518 = vadd.xlane.f32.xlu1 %v4517_v26  ;;  %v4511_v3 = vsel %vm290_vm0, %v8495_v7, 0.0 }
0x188e   : > { %4509 = vadd.xlane.f32.xlu0 %v4508_v12 }
0x1890   : > { %4512 = vadd.xlane.f32.xlu1 %v4511_v3 }
0x18af   : > { %v5613_v20 = vpop.f32.mrb[120].mxu1 }
0x18b0   : > { %v4464_v60 = vadd.f32 %v5613_v20, %v8429_v0  ;;  %v4430_v5 = vpop.f32.mrb[121].mxu1 }
0x18b1   : > { %v4462_v30 = vadd.f32 %v8429_v0, %v4430_v5  ;;  %v5614_v24 = vpop.f32.mrb[122].mxu1 }
0x18b2   : > { %v4465_v40 = vadd.f32 %v5614_v24, %v8429_v0  ;;  %v4433_v17 = vpop.f32.mrb[123].mxu1  ;;  %v8511_v62 = vadd.f32 %v4464_v60, %v8406_v11 }
0x18b3   : > { %v8507_v37 = vadd.f32 %v4462_v30, %v8396_v21  ;;  %v4463_v19 = vadd.f32 %v8429_v0, %v4433_v17 }
0x18b4   : > { %v8519_v61 = vadd.f32 %v4465_v40, %v8410_v29  ;;  %v4526_v21 = vsel %vm290_vm0, %v8511_v62, 0.0 }
0x18b5   : > { %v8514_v57 = vadd.f32 %v4463_v19, %v8399_v48  ;;  %v4520_v14 = vsel %vm290_vm0, %v8507_v37, 0.0 }
0x18b6   : > { %4521 = vadd.xlane.f32.xlu0 %v4520_v14  ;;  %v4529_v11 = vsel %vm290_vm0, %v8519_v61, 0.0 }
0x18b7   : > { %v4523_v32 = vsel %vm290_vm0, %v8514_v57, 0.0 }
0x18b8   : > { %4524 = vadd.xlane.f32.xlu1 %v4523_v32 }
0x18ba   : > { %4527 = vadd.xlane.f32.xlu0 %v4526_v21 }
0x18bc   : > { %4530 = vadd.xlane.f32.xlu1 %v4529_v11 }
0x1907   : > { %v4492_v48 = vpop.xlane.xlu0 %4491 }
0x1908   : > { %v4534_v0 = vmul.f32 0.03125, %v4492_v48 }
0x1909   : > { %v4495_v56 = vpop.xlane.xlu1 %4494 }
0x190a   : > { %v8528_v34 = vsub.f32 %v8434_v9, %v4534_v0  ;;  %v4535_v29 = vmul.f32 0.03125, %v4495_v56 }
0x190b   : > { %v4486_v53 = vpop.xlane.xlu0 %4485 }
0x190c   : > { %v8531_v33 = vsub.f32 %v8442_v42, %v4535_v29  ;;  %v4532_v51 = vmul.f32 0.03125, %v4486_v53  ;;  %v4566_v58 = vmul.f32 %v8528_v34, %v8528_v34 }
0x190d   : > { %v4489_v46 = vpop.xlane.xlu1 %4488 }
0x190e   : > { %v8536_v55 = vsub.f32 %v8439_v35, %v4532_v51  ;;  %v4533_v54 = vmul.f32 0.03125, %v4489_v46  ;;  %v4586_v36 = vsel %vm290_vm0, %v4566_v58, 0.0  ;;  %v4567_v9 = vmul.f32 %v8531_v33, %v8531_v33 }
0x190f   : > { %v4504_v8 = vpop.xlane.xlu0 %4503  ;;  %4587 = vadd.xlane.f32.xlu0 %v4586_v36 }
0x1910   : > { %v8542_v22 = vsub.f32 %v8447_v6, %v4533_v54  ;;  %v4538_v42 = vmul.f32 0.03125, %v4504_v8  ;;  %v4589_v50 = vsel %vm290_vm0, %v4567_v9, 0.0  ;;  %v4564_v15 = vmul.f32 %v8536_v55, %v8536_v55 }
0x1911   : > { %4590 = vadd.xlane.f32.xlu1 %v4589_v50  ;;  %v4507_v35 = vpop.xlane.xlu1 %4506 }
0x1912   : > { %v8548_v49 = vsub.f32 %v8456_v4, %v4538_v42  ;;  %v4539_v43 = vmul.f32 0.03125, %v4507_v35  ;;  %v4580_v28 = vsel %vm290_vm0, %v4564_v15, 0.0  ;;  %v4565_v27 = vmul.f32 %v8542_v22, %v8542_v22 }
0x1913   : > { %v4498_v23 = vpop.xlane.xlu0 %4497  ;;  %4581 = vadd.xlane.f32.xlu0 %v4580_v28 }
0x1914   : > { %v8554_v6 = vsub.f32 %v8466_v47, %v4539_v43  ;;  %v4536_v25 = vmul.f32 0.03125, %v4498_v23  ;;  %v4583_v18 = vsel %vm290_vm0, %v4565_v27, 0.0  ;;  %v4570_v31 = vmul.f32 %v8548_v49, %v8548_v49 }
0x1915   : > { %4584 = vadd.xlane.f32.xlu1 %v4583_v18  ;;  %v4501_v4 = vpop.xlane.xlu1 %4500 }
0x1916   : > { %v8560_v41 = vsub.f32 %v8463_v63, %v4536_v25  ;;  %v4537_v45 = vmul.f32 0.03125, %v4501_v4  ;;  %v4598_v39 = vsel %vm290_vm0, %v4570_v31, 0.0  ;;  %v4571_v16 = vmul.f32 %v8554_v6, %v8554_v6 }
0x1917   : > { %v4516_v13 = vpop.xlane.xlu0 %4515  ;;  %4599 = vadd.xlane.f32.xlu0 %v4598_v39 }
0x1918   : > { %v8566_v47 = vsub.f32 %v8471_v10, %v4537_v45  ;;  %v4542_v38 = vmul.f32 0.03125, %v4516_v13  ;;  %v4601_v2 = vsel %vm290_vm0, %v4571_v16, 0.0  ;;  %v4568_v1 = vmul.f32 %v8560_v41, %v8560_v41 }
0x1919   : > { %4602 = vadd.xlane.f32.xlu1 %v4601_v2  ;;  %v4519_v63 = vpop.xlane.xlu1 %4518 }
0x191a   : > { %v8572_v26 = vsub.f32 %v8480_v44, %v4542_v38  ;;  %v4543_v12 = vmul.f32 0.03125, %v4519_v63  ;;  %v4592_v3 = vsel %vm290_vm0, %v4568_v1, 0.0  ;;  %v4569_v20 = vmul.f32 %v8566_v47, %v8566_v47 }
0x191b   : > { %v4510_v60 = vpop.xlane.xlu0 %4509  ;;  %4593 = vadd.xlane.f32.xlu0 %v4592_v3 }
0x191c   : > { %v8578_v10 = vsub.f32 %v8490_v52, %v4543_v12  ;;  %v4540_v5 = vmul.f32 0.03125, %v4510_v60  ;;  %v4595_v30 = vsel %vm290_vm0, %v4569_v20, 0.0  ;;  %v4574_v24 = vmul.f32 %v8572_v26, %v8572_v26 }
0x191d   : > { %4596 = vadd.xlane.f32.xlu1 %v4595_v30  ;;  %v4513_v44 = vpop.xlane.xlu1 %4512 }
0x191e   : > { %v8584_v40 = vsub.f32 %v8487_v59, %v4540_v5  ;;  %v4541_v17 = vmul.f32 0.03125, %v4513_v44  ;;  %v4610_v19 = vsel %vm290_vm0, %v4574_v24, 0.0  ;;  %v4575_v14 = vmul.f32 %v8578_v10, %v8578_v10  ;;  %v8626_v24 = vld [vmem:[%s8724_s2 + $0xa] ss:$0 sm:$0xff] }
0x191f   : > { %4611 = vadd.xlane.f32.xlu0 %v4610_v19 }
0x1920   : > { %v8590_v52 = vsub.f32 %v8495_v7, %v4541_v17  ;;  %v4613_v32 = vsel %vm290_vm0, %v4575_v14, 0.0  ;;  %v4572_v21 = vmul.f32 %v8584_v40, %v8584_v40 }
0x1921   : > { %4614 = vadd.xlane.f32.xlu1 %v4613_v32 }
0x1922   : > { %v4604_v11 = vsel %vm290_vm0, %v4572_v21, 0.0  ;;  %v4573_v59 = vmul.f32 %v8590_v52, %v8590_v52  ;;  %v8632_v21 = vld [vmem:[%s8724_s2 + $0xb] ss:$0 sm:$0xff] }
0x1923   : > { %4605 = vadd.xlane.f32.xlu0 %v4604_v11 }
0x1924   : > { %v4607_v48 = vsel %vm290_vm0, %v4573_v59, 0.0 }
0x1925   : > { %4608 = vadd.xlane.f32.xlu1 %v4607_v48 }
0x1943   : > { %v4522_v0 = vpop.xlane.xlu0 %4521 }
0x1944   : > { %v4544_v56 = vmul.f32 0.03125, %v4522_v0 }
0x1945   : > { %v4525_v29 = vpop.xlane.xlu1 %4524 }
0x1946   : > { %v8600_v7 = vsub.f32 %v8507_v37, %v4544_v56  ;;  %v4545_v53 = vmul.f32 0.03125, %v4525_v29 }
0x1947   : > { %v4528_v51 = vpop.xlane.xlu0 %4527 }
0x1948   : > { %v8603_v58 = vsub.f32 %v8514_v57, %v4545_v53  ;;  %v4546_v46 = vmul.f32 0.03125, %v4528_v51  ;;  %v4576_v54 = vmul.f32 %v8600_v7, %v8600_v7 }
0x1949   : > { %v4531_v36 = vpop.xlane.xlu1 %4530 }
0x194a   : > { %v8608_v9 = vsub.f32 %v8511_v62, %v4546_v46  ;;  %v4547_v8 = vmul.f32 0.03125, %v4531_v36  ;;  %v4616_v42 = vsel %vm290_vm0, %v4576_v54, 0.0  ;;  %v4577_v37 = vmul.f32 %v8603_v58, %v8603_v58 }
0x194b   : > { %4617 = vadd.xlane.f32.xlu0 %v4616_v42 }
0x194c   : > { %v8614_v50 = vsub.f32 %v8519_v61, %v4547_v8  ;;  %v4619_v57 = vsel %vm290_vm0, %v4577_v37, 0.0  ;;  %v4578_v15 = vmul.f32 %v8608_v9, %v8608_v9 }
0x194d   : > { %4620 = vadd.xlane.f32.xlu1 %v4619_v57 }
0x194e   : > { %v4622_v35 = vsel %vm290_vm0, %v4578_v15, 0.0  ;;  %v4579_v62 = vmul.f32 %v8614_v50, %v8614_v50 }
0x194f   : > { %4623 = vadd.xlane.f32.xlu0 %v4622_v35 }
0x1950   : > { %v4625_v43 = vsel %vm290_vm0, %v4579_v62, 0.0 }
0x1951   : > { %4626 = vadd.xlane.f32.xlu1 %v4625_v43 }
0x199c   : > { %v4588_v28 = vpop.xlane.xlu0 %4587 }
0x199d   : > { %v4630_v27 = vmul.f32 0.03125, %v4588_v28 }
0x199e   : > { %v4591_v23 = vpop.xlane.xlu1 %4590 }
0x199f   : > { %v4646_v61 = vadd.f32 1e-06, %v4630_v27  ;;  %v4631_v25 = vmul.f32 0.03125, %v4591_v23 }
0x19a0   : > { %v4582_v18 = vpop.xlane.xlu0 %4581 }
0x19a1   : > { %6142 = vrsqrt.f32 %v4646_v61  ;;  %v4647_v31 = vadd.f32 1e-06, %v4631_v25  ;;  %v4628_v4 = vmul.f32 0.03125, %v4582_v18 }
0x19a2   : > { %v4585_v45 = vpop.xlane.xlu1 %4584 }
0x19a3   : > { %6144 = vrsqrt.f32 %v4647_v31  ;;  %v4644_v39 = vadd.f32 1e-06, %v4628_v4  ;;  %v4629_v16 = vmul.f32 0.03125, %v4585_v45 }
0x19a4   : > { %v4600_v13 = vpop.xlane.xlu0 %4599 }
0x19a5   : > { %6146 = vrsqrt.f32 %v4644_v39  ;;  %v4645_v38 = vadd.f32 1e-06, %v4629_v16  ;;  %v4634_v2 = vmul.f32 0.03125, %v4600_v13 }
0x19a6   : > { %v4603_v1 = vpop.xlane.xlu1 %4602 }
0x19a7   : > { %6148 = vrsqrt.f32 %v4645_v38  ;;  %v4650_v63 = vadd.f32 1e-06, %v4634_v2  ;;  %v4635_v12 = vmul.f32 0.03125, %v4603_v1 }
0x19a8   : > { %v4594_v3 = vpop.xlane.xlu0 %4593 }
0x19a9   : > { %6150 = vrsqrt.f32 %v4650_v63  ;;  %v4651_v20 = vadd.f32 1e-06, %v4635_v12  ;;  %v4632_v60 = vmul.f32 0.03125, %v4594_v3 }
0x19aa   : > { %v4597_v5 = vpop.xlane.xlu1 %4596 }
0x19ab   : > { %v6143_v30 = vpop.eup %6142  ;;  %6152 = vrsqrt.f32 %v4651_v20  ;;  %v4648_v44 = vadd.f32 1e-06, %v4632_v60  ;;  %v4633_v17 = vmul.f32 0.03125, %v4597_v5 }
0x19ac   : > { %v4678_v19 = vmul.f32 %v6143_v30, %v8528_v34  ;;  %v4612_v14 = vpop.xlane.xlu0 %4611 }
0x19ad   : > { %v6145_v32 = vpop.eup %6144  ;;  %6154 = vrsqrt.f32 %v4648_v44  ;;  %v4649_v11 = vadd.f32 1e-06, %v4633_v17  ;;  %v4638_v59 = vmul.f32 0.03125, %v4612_v14 }
0x19ae   : > { %v4698_v48 = vmul.f32 %v8626_v24, %v4678_v19  ;;  %v4679_v0 = vmul.f32 %v6145_v32, %v8531_v33  ;;  %v4615_v56 = vpop.xlane.xlu1 %4614 }
0x19af   : > { %v6147_v29 = vpop.eup %6146  ;;  %6156 = vrsqrt.f32 %v4649_v11  ;;  %v4654_v34 = vadd.f32 1e-06, %v4638_v59  ;;  %v4639_v53 = vmul.f32 0.03125, %v4615_v56 }
0x19b0   : > { %v4718_v51 = vadd.f32 %v8632_v21, %v4698_v48  ;;  %v4699_v46 = vmul.f32 %v8626_v24, %v4679_v0  ;;  %v4676_v54 = vmul.f32 %v6147_v29, %v8536_v55  ;;  %v4606_v36 = vpop.xlane.xlu0 %4605 }
0x19b1   : > { %v6149_v33 = vpop.eup %6148  ;;  %6158 = vrsqrt.f32 %v4654_v34  ;;  %v4655_v8 = vadd.f32 1e-06, %v4639_v53  ;;  %v4636_v42 = vmul.f32 0.03125, %v4606_v36 }
0x19b2   : > { %4734 = vst.msk [vmem:[%s8640_s23 + $0x10] sm:$0xff] %vm290_vm0, %v4718_v51  ;;  %v4719_v37 = vadd.f32 %v8632_v21, %v4699_v46  ;;  %v4696_v57 = vmul.f32 %v8626_v24, %v4676_v54  ;;  %v4677_v15 = vmul.f32 %v6149_v33, %v8542_v22  ;;  %v4609_v35 = vpop.xlane.xlu1 %4608 }
0x19b3   : > { %v6151_v62 = vpop.eup %6150  ;;  %6160 = vrsqrt.f32 %v4655_v8  ;;  %v4652_v43 = vadd.f32 1e-06, %v4636_v42  ;;  %v4637_v55 = vmul.f32 0.03125, %v4609_v35 }
0x19b4   : > { %4735 = vst.msk [vmem:[%s8640_s23 + $0x18] sm:$0xff] %vm290_vm0, %v4719_v37  ;;  %v4716_v28 = vadd.f32 %v8632_v21, %v4696_v57  ;;  %v4697_v27 = vmul.f32 %v8626_v24, %v4677_v15  ;;  %v4682_v23 = vmul.f32 %v6151_v62, %v8548_v49 }
0x19b5   : > { %v6153_v61 = vpop.eup %6152  ;;  %6162 = vrsqrt.f32 %v4652_v43  ;;  %v4653_v25 = vadd.f32 1e-06, %v4637_v55 }
0x19b6   : > { %4732 = vst.msk [vmem:[%s8640_s23] sm:$0xff] %vm290_vm0, %v4716_v28  ;;  %v4717_v22 = vadd.f32 %v8632_v21, %v4697_v27  ;;  %v4702_v18 = vmul.f32 %v8626_v24, %v4682_v23  ;;  %v4683_v31 = vmul.f32 %v6153_v61, %v8554_v6 }
0x19b7   : > { %v6155_v4 = vpop.eup %6154  ;;  %6164 = vrsqrt.f32 %v4653_v25 }
0x19b8   : > { %4733 = vst.msk [vmem:[%s8640_s23 + $0x8] sm:$0xff] %vm290_vm0, %v4717_v22  ;;  %v4722_v45 = vadd.f32 %v8632_v21, %v4702_v18  ;;  %v4703_v49 = vmul.f32 %v8626_v24, %v4683_v31  ;;  %v4680_v39 = vmul.f32 %v6155_v4, %v8560_v41 }
0x19b9   : > { %v6157_v16 = vpop.eup %6156 }
0x19ba   : > { %4738 = vst.msk [vmem:[%s8640_s23 + $0x30] sm:$0xff] %vm290_vm0, %v4722_v45  ;;  %v4723_v13 = vadd.f32 %v8632_v21, %v4703_v49  ;;  %v4700_v38 = vmul.f32 %v8626_v24, %v4680_v39  ;;  %v4681_v6 = vmul.f32 %v6157_v16, %v8566_v47 }
0x19bb   : > { %v6159_v2 = vpop.eup %6158 }
0x19bc   : > { %4739 = vst.msk [vmem:[%s8640_s23 + $0x38] sm:$0xff] %vm290_vm0, %v4723_v13  ;;  %v4720_v1 = vadd.f32 %v8632_v21, %v4700_v38  ;;  %v4701_v63 = vmul.f32 %v8626_v24, %v4681_v6  ;;  %v4686_v41 = vmul.f32 %v6159_v2, %v8572_v26 }
0x19bd   : > { %v6161_v12 = vpop.eup %6160 }
0x19be   : > { %4736 = vst.msk [vmem:[%s8640_s23 + $0x20] sm:$0xff] %vm290_vm0, %v4720_v1  ;;  %v4721_v3 = vadd.f32 %v8632_v21, %v4701_v63  ;;  %v4706_v20 = vmul.f32 %v8626_v24, %v4686_v41  ;;  %v4687_v47 = vmul.f32 %v6161_v12, %v8578_v10 }
0x19bf   : > { %v6163_v60 = vpop.eup %6162 }
0x19c0   : > { %4737 = vst.msk [vmem:[%s8640_s23 + $0x28] sm:$0xff] %vm290_vm0, %v4721_v3  ;;  %v4726_v5 = vadd.f32 %v8632_v21, %v4706_v20  ;;  %v4707_v30 = vmul.f32 %v8626_v24, %v4687_v47  ;;  %v4684_v26 = vmul.f32 %v6163_v60, %v8584_v40 }
0x19c1   : > { %v6165_v44 = vpop.eup %6164 }
0x19c2   : > { %4742 = vst.msk [vmem:[%s8640_s23 + $0x50] sm:$0xff] %vm290_vm0, %v4726_v5  ;;  %v4727_v17 = vadd.f32 %v8632_v21, %v4707_v30  ;;  %v4704_v19 = vmul.f32 %v8626_v24, %v4684_v26  ;;  %v4685_v14 = vmul.f32 %v6165_v44, %v8590_v52 }
0x19c4   : > { %4743 = vst.msk [vmem:[%s8640_s23 + $0x58] sm:$0xff] %vm290_vm0, %v4727_v17  ;;  %v4724_v10 = vadd.f32 %v8632_v21, %v4704_v19  ;;  %v4705_v32 = vmul.f32 %v8626_v24, %v4685_v14 }
0x19c6   : > { %4740 = vst.msk [vmem:[%s8640_s23 + $0x40] sm:$0xff] %vm290_vm0, %v4724_v10  ;;  %v4725_v11 = vadd.f32 %v8632_v21, %v4705_v32 }
0x19c8   : > { %4741 = vst.msk [vmem:[%s8640_s23 + $0x48] sm:$0xff] %vm290_vm0, %v4725_v11 }
0x19d8   : > { %v4618_v40 = vpop.xlane.xlu0 %4617 }
0x19d9   : > { %v4640_v59 = vmul.f32 0.03125, %v4618_v40 }
0x19da   : > { %v4621_v48 = vpop.xlane.xlu1 %4620 }
0x19db   : > { %v4656_v0 = vadd.f32 1e-06, %v4640_v59  ;;  %v4641_v56 = vmul.f32 0.03125, %v4621_v48 }
0x19dc   : > { %v4624_v29 = vpop.xlane.xlu0 %4623 }
0x19dd   : > { %6166 = vrsqrt.f32 %v4656_v0  ;;  %v4657_v52 = vadd.f32 1e-06, %v4641_v56  ;;  %v4642_v34 = vmul.f32 0.03125, %v4624_v29 }
0x19de   : > { %v4627_v53 = vpop.xlane.xlu1 %4626 }
0x19df   : > { %6168 = vrsqrt.f32 %v4657_v52  ;;  %v4658_v51 = vadd.f32 1e-06, %v4642_v34  ;;  %v4643_v46 = vmul.f32 0.03125, %v4627_v53 }
0x19e1   : > { %6170 = vrsqrt.f32 %v4658_v51  ;;  %v4659_v54 = vadd.f32 1e-06, %v4643_v46 }
0x19e3   : > { %6172 = vrsqrt.f32 %v4659_v54 }
0x19e7   : > { %v6167_v36 = vpop.eup %6166 }
0x19e8   : > { %v4688_v33 = vmul.f32 %v6167_v36, %v8600_v7 }
0x19e9   : > { %v6169_v8 = vpop.eup %6168 }
0x19ea   : > { %v4708_v42 = vmul.f32 %v8626_v24, %v4688_v33  ;;  %v4689_v37 = vmul.f32 %v6169_v8, %v8603_v58 }
0x19eb   : > { %v6171_v57 = vpop.eup %6170 }
0x19ec   : > { %v4728_v15 = vadd.f32 %v8632_v21, %v4708_v42  ;;  %v4709_v35 = vmul.f32 %v8626_v24, %v4689_v37  ;;  %v4690_v62 = vmul.f32 %v6171_v57, %v8608_v9 }
0x19ed   : > { %v6173_v43 = vpop.eup %6172 }
0x19ee   : > { %4744 = vst.msk [vmem:[%s8640_s23 + $0x60] sm:$0xff] %vm290_vm0, %v4728_v15  ;;  %v4729_v55 = vadd.f32 %v8632_v21, %v4709_v35  ;;  %v4710_v7 = vmul.f32 %v8626_v24, %v4690_v62  ;;  %v4691_v28 = vmul.f32 %v6173_v43, %v8614_v50 }
0x19f0   : > { %4745 = vst.msk [vmem:[%s8640_s23 + $0x68] sm:$0xff] %vm290_vm0, %v4729_v55  ;;  %v4730_v58 = vadd.f32 %v8632_v21, %v4710_v7  ;;  %v4711_v27 = vmul.f32 %v8626_v24, %v4691_v28 }
0x19f2   : > { %4746 = vst.msk [vmem:[%s8640_s23 + $0x70] sm:$0xff] %vm290_vm0, %v4730_v58  ;;  %v4731_v23 = vadd.f32 %v8632_v21, %v4711_v27 }
0x19f4   : > { %4747 = vst.msk [vmem:[%s8640_s23 + $0x78] sm:$0xff] %vm290_vm0, %v4731_v23 }
0x19f5 PF: > { %s15_s15 = sadd.s32 1, %s6244_s15  }
0x19f6   : > { %p12_p3 = scmp.ge.s32.totalorder %s15_s15, 4  }
0x19f8   :  { %14 = sbr.rel (!%p12_p3) target bundleno = 1 (0x1), region = 76 }
0x19ff   :  { %4769 = vsyncpa [#allocation3], 1 }
0x1a00   :  { %4771 = vsyncpa [#allocation3 + $0x1], 1 }

</bundles_post_ra>
